<compile_context>
chip_gen: v5e
topology: v5e:2x2
jax: 0.10.0
libtpu: 0.0.40
codegen_flags: <defaults>
</compile_context>

<pallas_src>
import math

import jax
import jax.numpy as jnp
from jax.experimental import pallas as pl
from jax.experimental.pallas import tpu as pltpu

BN_EPS = 0.8          # nn.BatchNorm1d(out_feat, 0.8): second positional arg is eps
LEAKY_SLOPE = 0.2


def _leaky_relu(x):
    return jnp.where(x >= 0, x, LEAKY_SLOPE * x)


def generator_kernel(z_ref,
                     w1_ref, b1_ref,
                     w2_ref, b2_ref, g2_ref, be2_ref,
                     w3_ref, b3_ref, g3_ref, be3_ref,
                     w4_ref, b4_ref, g4_ref, be4_ref,
                     w5_ref, b5_ref,
                     o_ref):
    x = z_ref[...]  # f32 block of z

    # block(latent_dim, 128, normalize=False): Linear + LeakyReLU(0.2)
    h = jnp.dot(x.astype(jnp.bfloat16), w1_ref[...],
                preferred_element_type=jnp.float32) + b1_ref[...]
    h = _leaky_relu(h)

    def bn_block(h, w_ref, b_ref, g_ref, be_ref):
        # Linear: bf16 x bf16 -> f32 accumulate on the MXU.
        y = jnp.dot(h.astype(jnp.bfloat16), w_ref[...],
                    preferred_element_type=jnp.float32) + b_ref[...]
        # BatchNorm1d (training mode, biased batch variance), one-pass stats.
        mean = jnp.mean(y, axis=0, keepdims=True)
        var = jnp.maximum(jnp.mean(y * y, axis=0, keepdims=True) - mean * mean, 0.0)
        # Affine folded into a single scale/shift (one FMA over the (B,N) tile).
        scale = g_ref[...] * jax.lax.rsqrt(var + BN_EPS)
        shift = be_ref[...] - mean * scale
        # LeakyReLU(0.2)
        return _leaky_relu(y * scale + shift)

    h = bn_block(h, w2_ref, b2_ref, g2_ref, be2_ref)   # 128 -> 256
    h = bn_block(h, w3_ref, b3_ref, g3_ref, be3_ref)   # 256 -> 512
    h = bn_block(h, w4_ref, b4_ref, g4_ref, be4_ref)   # 512 -> 1024

    # Final Linear(1024, prod(img_shape)) + Tanh
    out = jnp.dot(h.astype(jnp.bfloat16), w5_ref[...],
                  preferred_element_type=jnp.float32) + b5_ref[...]
    o_ref[...] = jnp.tanh(out)


def make_generator(latent_dim, img_shape, key, *, block_batch=None):
    """Build deterministic parameters and return a callable generator(z)."""
    img_dim = int(math.prod(img_shape))
    dims = [latent_dim, 128, 256, 512, 1024, img_dim]

    params = []
    keys = jax.random.split(key, 2 * (len(dims) - 1))
    for i in range(len(dims) - 1):
        fan_in, fan_out = dims[i], dims[i + 1]
        bound = 1.0 / math.sqrt(fan_in)
        w = jax.random.uniform(keys[2 * i], (fan_in, fan_out), jnp.float32,
                               minval=-bound, maxval=bound)
        b = jax.random.uniform(keys[2 * i + 1], (1, fan_out), jnp.float32,
                               minval=-bound, maxval=bound)
        # Weights live in HBM as bf16 (halves the dominant weight DMA).
        params.append((w.astype(jnp.bfloat16), b))

    # BatchNorm affine params for layers 2, 3, 4 (PyTorch defaults: gamma=1, beta=0)
    bn_params = [(jnp.ones((1, d), jnp.float32), jnp.zeros((1, d), jnp.float32))
                 for d in (256, 512, 1024)]

    weight_args = [
        params[0][0], params[0][1],
        params[1][0], params[1][1], bn_params[0][0], bn_params[0][1],
        params[2][0], params[2][1], bn_params[1][0], bn_params[1][1],
        params[3][0], params[3][1], bn_params[2][0], bn_params[2][1],
        params[4][0], params[4][1],
    ]
    weight_bytes = sum(int(a.size) * a.dtype.itemsize for a in weight_args)
    flops_per_row = 2 * sum(dims[i] * dims[i + 1] for i in range(len(dims) - 1))

    def _const_spec(a):
        # Full-array block, constant block index -> DMA'd once, VMEM-resident
        # across all grid steps.
        return pl.BlockSpec(a.shape, lambda i: (0,) * a.ndim)

    def generator(z):
        batch = z.shape[0]
        bb = batch if block_batch is None else int(block_batch)
        assert batch % bb == 0, "batch must be a multiple of block_batch"
        assert bb == batch or bb % 8 == 0, "block_batch must be a multiple of 8"
        grid = (batch // bb,)

        in_specs = ([pl.BlockSpec((bb, latent_dim), lambda i: (i, 0))]
                    + [_const_spec(a) for a in weight_args])
        out_spec = pl.BlockSpec((bb, img_dim), lambda i: (i, 0))

        # Rough VMEM need: resident weights (double-buffer slack) + live f32
        # activations for one batch block. Capped so it also fits v7x (64 MiB).
        act_bytes = 4 * bb * (latent_dim + 128 + 2 * 256 + 2 * 512 + 2 * 1024
                              + 2 * img_dim)
        vmem_need = 2 * weight_bytes + act_bytes + (2 << 20)
        vmem_limit = int(min(max(vmem_need, 16 << 20), 48 << 20))

        cost = pl.CostEstimate(
            flops=int(batch * flops_per_row),
            transcendentals=int(batch * img_dim + 3 * (256 + 512 + 1024)),
            bytes_accessed=int(weight_bytes + z.size * 4 + batch * img_dim * 4),
        )

        flat = pl.pallas_call(
            generator_kernel,
            out_shape=jax.ShapeDtypeStruct((batch, img_dim), jnp.float32),
            grid=grid,
            in_specs=in_specs,
            out_specs=out_spec,
            compiler_params=pltpu.CompilerParams(
                dimension_semantics=("parallel",),
                vmem_limit_bytes=vmem_limit),
            cost_estimate=cost,
        )(z, *weight_args)
        # img = img.view(img.shape[0], *img_shape)  -> NCHW
        return flat.reshape(batch, *img_shape)

    return generator


if __name__ == "__main__":
    latent_dim = 32
    img_shape = (1, 16, 16)   # (C, H, W); prod = 256
    batch = 8

    key = jax.random.PRNGKey(0)
    k_params, k_z = jax.random.split(key)

    # Exact PyTorch single-call semantics: full batch in one block (grid=(1,)),
    # so BatchNorm sees full-batch statistics.
    generator = make_generator(latent_dim, img_shape, k_params)
    z = jax.random.normal(k_z, (batch, latent_dim), dtype=jnp.float32)
    img = generator(z)
    jax.block_until_ready(img)
    assert img.shape == (batch, *img_shape), img.shape
    assert img.dtype == jnp.float32
    assert bool(jnp.all(jnp.isfinite(img)))
    assert bool(jnp.all(jnp.abs(img) <= 1.0))

    # Batched-grid path: 2 independent generator invocations (8 rows each)
    # fused into one pallas_call; weights stay VMEM-resident across grid steps
    # and each block gets its own BN stats (== separate forward() calls).
    gen_tiled = make_generator(latent_dim, img_shape, k_params, block_batch=8)
    z2 = jax.random.normal(jax.random.PRNGKey(1), (16, latent_dim),
                           dtype=jnp.float32)
    img2 = gen_tiled(z2)
    jax.block_until_ready(img2)
    assert img2.shape == (16, *img_shape), img2.shape

    print("KERNEL_OK")
</pallas_src>

<mosaic_0001>
module attributes {stable_mosaic.version = 11 : i64} {
  func.func @generator_kernel(%arg0: i32, %arg1: memref<8x32xf32, #tpu.memory_space<vmem>>, %arg2: memref<32x128xbf16, #tpu.memory_space<vmem>>, %arg3: memref<1x128xf32, #tpu.memory_space<vmem>>, %arg4: memref<128x256xbf16, #tpu.memory_space<vmem>>, %arg5: memref<1x256xf32, #tpu.memory_space<vmem>>, %arg6: memref<1x256xf32, #tpu.memory_space<vmem>>, %arg7: memref<1x256xf32, #tpu.memory_space<vmem>>, %arg8: memref<256x512xbf16, #tpu.memory_space<vmem>>, %arg9: memref<1x512xf32, #tpu.memory_space<vmem>>, %arg10: memref<1x512xf32, #tpu.memory_space<vmem>>, %arg11: memref<1x512xf32, #tpu.memory_space<vmem>>, %arg12: memref<512x1024xbf16, #tpu.memory_space<vmem>>, %arg13: memref<1x1024xf32, #tpu.memory_space<vmem>>, %arg14: memref<1x1024xf32, #tpu.memory_space<vmem>>, %arg15: memref<1x1024xf32, #tpu.memory_space<vmem>>, %arg16: memref<1024x256xbf16, #tpu.memory_space<vmem>>, %arg17: memref<1x256xf32, #tpu.memory_space<vmem>>, %arg18: memref<8x256xf32, #tpu.memory_space<vmem>>) attributes {dimension_semantics = [#tpu.dimension_semantics<parallel>], iteration_bounds = array<i64: 1>, scalar_prefetch = 0 : i64, scratch_operands = 0 : i64, tpu.core_type = #tpu.core_type<tc>, window_params = [{transform_indices = @transform_0, window_bounds = array<i64: 8, 32>}, {pipeline_mode = #tpu.pipeline_mode<synchronous>, transform_indices = @transform_1, window_bounds = array<i64: 32, 128>}, {pipeline_mode = #tpu.pipeline_mode<synchronous>, transform_indices = @transform_2, window_bounds = array<i64: 1, 128>}, {pipeline_mode = #tpu.pipeline_mode<synchronous>, transform_indices = @transform_3, window_bounds = array<i64: 128, 256>}, {pipeline_mode = #tpu.pipeline_mode<synchronous>, transform_indices = @transform_4, window_bounds = array<i64: 1, 256>}, {pipeline_mode = #tpu.pipeline_mode<synchronous>, transform_indices = @transform_5, window_bounds = array<i64: 1, 256>}, {pipeline_mode = #tpu.pipeline_mode<synchronous>, transform_indices = @transform_6, window_bounds = array<i64: 1, 256>}, {pipeline_mode = #tpu.pipeline_mode<synchronous>, transform_indices = @transform_7, window_bounds = array<i64: 256, 512>}, {pipeline_mode = #tpu.pipeline_mode<synchronous>, transform_indices = @transform_8, window_bounds = array<i64: 1, 512>}, {pipeline_mode = #tpu.pipeline_mode<synchronous>, transform_indices = @transform_9, window_bounds = array<i64: 1, 512>}, {pipeline_mode = #tpu.pipeline_mode<synchronous>, transform_indices = @transform_10, window_bounds = array<i64: 1, 512>}, {pipeline_mode = #tpu.pipeline_mode<synchronous>, transform_indices = @transform_11, window_bounds = array<i64: 512, 1024>}, {pipeline_mode = #tpu.pipeline_mode<synchronous>, transform_indices = @transform_12, window_bounds = array<i64: 1, 1024>}, {pipeline_mode = #tpu.pipeline_mode<synchronous>, transform_indices = @transform_13, window_bounds = array<i64: 1, 1024>}, {pipeline_mode = #tpu.pipeline_mode<synchronous>, transform_indices = @transform_14, window_bounds = array<i64: 1, 1024>}, {pipeline_mode = #tpu.pipeline_mode<synchronous>, transform_indices = @transform_15, window_bounds = array<i64: 1024, 256>}, {pipeline_mode = #tpu.pipeline_mode<synchronous>, transform_indices = @transform_16, window_bounds = array<i64: 1, 256>}, {transform_indices = @transform_17, window_bounds = array<i64: 8, 256>}]} {
    %c0 = arith.constant 0 : index
    %c0_0 = arith.constant 0 : index
    %0 = vector.load %arg1[%c0, %c0_0] : memref<8x32xf32, #tpu.memory_space<vmem>>, vector<8x32xf32>
    %1 = arith.truncf %0 : vector<8x32xf32> to vector<8x32xbf16>
    %c0_1 = arith.constant 0 : index
    %c0_2 = arith.constant 0 : index
    %2 = vector.load %arg2[%c0_1, %c0_2] : memref<32x128xbf16, #tpu.memory_space<vmem>>, vector<32x128xbf16>
    %cst = arith.constant dense<0.000000e+00> : vector<8x128xf32>
    %3 = tpu.matmul %1, %2, %cst {dimension_numbers = #tpu.dot_dimension_numbers<[1], [0], [0], [1], [0, 0, 1, 1], [], []>} : vector<8x32xbf16>, vector<32x128xbf16>, vector<8x128xf32> -> vector<8x128xf32>
    %c0_3 = arith.constant 0 : index
    %c0_4 = arith.constant 0 : index
    %4 = vector.load %arg3[%c0_3, %c0_4] : memref<1x128xf32, #tpu.memory_space<vmem>>, vector<1x128xf32>
    %5 = vector.broadcast %4 : vector<1x128xf32> to vector<8x128xf32>
    %6 = arith.addf %3, %5 : vector<8x128xf32>
    %cst_5 = arith.constant 0.000000e+00 : f32
    %7 = vector.broadcast %cst_5 : f32 to vector<8x128xf32>
    %8 = arith.cmpf oge, %6, %7 : vector<8x128xf32>
    %cst_6 = arith.constant 2.000000e-01 : f32
    %9 = vector.broadcast %cst_6 : f32 to vector<8x128xf32>
    %10 = arith.mulf %9, %6 : vector<8x128xf32>
    %11 = arith.select %8, %6, %10 : vector<8x128xi1>, vector<8x128xf32>
    %12 = arith.truncf %11 : vector<8x128xf32> to vector<8x128xbf16>
    %c0_7 = arith.constant 0 : index
    %c0_8 = arith.constant 0 : index
    %13 = vector.load %arg4[%c0_7, %c0_8] : memref<128x256xbf16, #tpu.memory_space<vmem>>, vector<128x256xbf16>
    %cst_9 = arith.constant dense<0.000000e+00> : vector<8x256xf32>
    %14 = tpu.matmul %12, %13, %cst_9 {dimension_numbers = #tpu.dot_dimension_numbers<[1], [0], [0], [1], [0, 0, 1, 1], [], []>} : vector<8x128xbf16>, vector<128x256xbf16>, vector<8x256xf32> -> vector<8x256xf32>
    %c0_10 = arith.constant 0 : index
    %c0_11 = arith.constant 0 : index
    %15 = vector.load %arg5[%c0_10, %c0_11] : memref<1x256xf32, #tpu.memory_space<vmem>>, vector<1x256xf32>
    %16 = vector.broadcast %15 : vector<1x256xf32> to vector<8x256xf32>
    %17 = arith.addf %14, %16 : vector<8x256xf32>
    %cst_12 = arith.constant dense<0.000000e+00> : vector<256xf32>
    %18 = vector.multi_reduction <add>, %17, %cst_12 [0] : vector<8x256xf32> to vector<256xf32>
    %19 = vector.shape_cast %18 : vector<256xf32> to vector<1x256xf32>
    %cst_13 = arith.constant 8.000000e+00 : f32
    %20 = vector.broadcast %cst_13 : f32 to vector<1x256xf32>
    %21 = arith.divf %19, %20 : vector<1x256xf32>
    %22 = arith.mulf %17, %17 : vector<8x256xf32>
    %cst_14 = arith.constant dense<0.000000e+00> : vector<256xf32>
    %23 = vector.multi_reduction <add>, %22, %cst_14 [0] : vector<8x256xf32> to vector<256xf32>
    %24 = vector.shape_cast %23 : vector<256xf32> to vector<1x256xf32>
    %cst_15 = arith.constant 8.000000e+00 : f32
    %25 = vector.broadcast %cst_15 : f32 to vector<1x256xf32>
    %26 = arith.divf %24, %25 : vector<1x256xf32>
    %27 = arith.mulf %21, %21 : vector<1x256xf32>
    %28 = arith.subf %26, %27 : vector<1x256xf32>
    %cst_16 = arith.constant 0.000000e+00 : f32
    %29 = vector.broadcast %cst_16 : f32 to vector<1x256xf32>
    %30 = arith.maximumf %28, %29 : vector<1x256xf32>
    %c0_17 = arith.constant 0 : index
    %c0_18 = arith.constant 0 : index
    %31 = vector.load %arg6[%c0_17, %c0_18] : memref<1x256xf32, #tpu.memory_space<vmem>>, vector<1x256xf32>
    %cst_19 = arith.constant 8.000000e-01 : f32
    %32 = vector.broadcast %cst_19 : f32 to vector<1x256xf32>
    %33 = arith.addf %30, %32 : vector<1x256xf32>
    %34 = math.rsqrt %33 : vector<1x256xf32>
    %35 = arith.mulf %31, %34 : vector<1x256xf32>
    %c0_20 = arith.constant 0 : index
    %c0_21 = arith.constant 0 : index
    %36 = vector.load %arg7[%c0_20, %c0_21] : memref<1x256xf32, #tpu.memory_space<vmem>>, vector<1x256xf32>
    %37 = arith.mulf %21, %35 : vector<1x256xf32>
    %38 = arith.subf %36, %37 : vector<1x256xf32>
    %39 = vector.broadcast %35 : vector<1x256xf32> to vector<8x256xf32>
    %40 = arith.mulf %17, %39 : vector<8x256xf32>
    %41 = vector.broadcast %38 : vector<1x256xf32> to vector<8x256xf32>
    %42 = arith.addf %40, %41 : vector<8x256xf32>
    %cst_22 = arith.constant 0.000000e+00 : f32
    %43 = vector.broadcast %cst_22 : f32 to vector<8x256xf32>
    %44 = arith.cmpf oge, %42, %43 : vector<8x256xf32>
    %cst_23 = arith.constant 2.000000e-01 : f32
    %45 = vector.broadcast %cst_23 : f32 to vector<8x256xf32>
    %46 = arith.mulf %45, %42 : vector<8x256xf32>
    %47 = arith.select %44, %42, %46 : vector<8x256xi1>, vector<8x256xf32>
    %48 = arith.truncf %47 : vector<8x256xf32> to vector<8x256xbf16>
    %c0_24 = arith.constant 0 : index
    %c0_25 = arith.constant 0 : index
    %49 = vector.load %arg8[%c0_24, %c0_25] : memref<256x512xbf16, #tpu.memory_space<vmem>>, vector<256x512xbf16>
    %cst_26 = arith.constant dense<0.000000e+00> : vector<8x512xf32>
    %50 = tpu.matmul %48, %49, %cst_26 {dimension_numbers = #tpu.dot_dimension_numbers<[1], [0], [0], [1], [0, 0, 1, 1], [], []>} : vector<8x256xbf16>, vector<256x512xbf16>, vector<8x512xf32> -> vector<8x512xf32>
    %c0_27 = arith.constant 0 : index
    %c0_28 = arith.constant 0 : index
    %51 = vector.load %arg9[%c0_27, %c0_28] : memref<1x512xf32, #tpu.memory_space<vmem>>, vector<1x512xf32>
    %52 = vector.broadcast %51 : vector<1x512xf32> to vector<8x512xf32>
    %53 = arith.addf %50, %52 : vector<8x512xf32>
    %cst_29 = arith.constant dense<0.000000e+00> : vector<512xf32>
    %54 = vector.multi_reduction <add>, %53, %cst_29 [0] : vector<8x512xf32> to vector<512xf32>
    %55 = vector.shape_cast %54 : vector<512xf32> to vector<1x512xf32>
    %cst_30 = arith.constant 8.000000e+00 : f32
    %56 = vector.broadcast %cst_30 : f32 to vector<1x512xf32>
    %57 = arith.divf %55, %56 : vector<1x512xf32>
    %58 = arith.mulf %53, %53 : vector<8x512xf32>
    %cst_31 = arith.constant dense<0.000000e+00> : vector<512xf32>
    %59 = vector.multi_reduction <add>, %58, %cst_31 [0] : vector<8x512xf32> to vector<512xf32>
    %60 = vector.shape_cast %59 : vector<512xf32> to vector<1x512xf32>
    %cst_32 = arith.constant 8.000000e+00 : f32
    %61 = vector.broadcast %cst_32 : f32 to vector<1x512xf32>
    %62 = arith.divf %60, %61 : vector<1x512xf32>
    %63 = arith.mulf %57, %57 : vector<1x512xf32>
    %64 = arith.subf %62, %63 : vector<1x512xf32>
    %cst_33 = arith.constant 0.000000e+00 : f32
    %65 = vector.broadcast %cst_33 : f32 to vector<1x512xf32>
    %66 = arith.maximumf %64, %65 : vector<1x512xf32>
    %c0_34 = arith.constant 0 : index
    %c0_35 = arith.constant 0 : index
    %67 = vector.load %arg10[%c0_34, %c0_35] : memref<1x512xf32, #tpu.memory_space<vmem>>, vector<1x512xf32>
    %cst_36 = arith.constant 8.000000e-01 : f32
    %68 = vector.broadcast %cst_36 : f32 to vector<1x512xf32>
    %69 = arith.addf %66, %68 : vector<1x512xf32>
    %70 = math.rsqrt %69 : vector<1x512xf32>
    %71 = arith.mulf %67, %70 : vector<1x512xf32>
    %c0_37 = arith.constant 0 : index
    %c0_38 = arith.constant 0 : index
    %72 = vector.load %arg11[%c0_37, %c0_38] : memref<1x512xf32, #tpu.memory_space<vmem>>, vector<1x512xf32>
    %73 = arith.mulf %57, %71 : vector<1x512xf32>
    %74 = arith.subf %72, %73 : vector<1x512xf32>
    %75 = vector.broadcast %71 : vector<1x512xf32> to vector<8x512xf32>
    %76 = arith.mulf %53, %75 : vector<8x512xf32>
    %77 = vector.broadcast %74 : vector<1x512xf32> to vector<8x512xf32>
    %78 = arith.addf %76, %77 : vector<8x512xf32>
    %cst_39 = arith.constant 0.000000e+00 : f32
    %79 = vector.broadcast %cst_39 : f32 to vector<8x512xf32>
    %80 = arith.cmpf oge, %78, %79 : vector<8x512xf32>
    %cst_40 = arith.constant 2.000000e-01 : f32
    %81 = vector.broadcast %cst_40 : f32 to vector<8x512xf32>
    %82 = arith.mulf %81, %78 : vector<8x512xf32>
    %83 = arith.select %80, %78, %82 : vector<8x512xi1>, vector<8x512xf32>
    %84 = arith.truncf %83 : vector<8x512xf32> to vector<8x512xbf16>
    %c0_41 = arith.constant 0 : index
    %c0_42 = arith.constant 0 : index
    %85 = vector.load %arg12[%c0_41, %c0_42] : memref<512x1024xbf16, #tpu.memory_space<vmem>>, vector<512x1024xbf16>
    %cst_43 = arith.constant dense<0.000000e+00> : vector<8x1024xf32>
    %86 = tpu.matmul %84, %85, %cst_43 {dimension_numbers = #tpu.dot_dimension_numbers<[1], [0], [0], [1], [0, 0, 1, 1], [], []>} : vector<8x512xbf16>, vector<512x1024xbf16>, vector<8x1024xf32> -> vector<8x1024xf32>
    %c0_44 = arith.constant 0 : index
    %c0_45 = arith.constant 0 : index
    %87 = vector.load %arg13[%c0_44, %c0_45] : memref<1x1024xf32, #tpu.memory_space<vmem>>, vector<1x1024xf32>
    %88 = vector.broadcast %87 : vector<1x1024xf32> to vector<8x1024xf32>
    %89 = arith.addf %86, %88 : vector<8x1024xf32>
    %cst_46 = arith.constant dense<0.000000e+00> : vector<1024xf32>
    %90 = vector.multi_reduction <add>, %89, %cst_46 [0] : vector<8x1024xf32> to vector<1024xf32>
    %91 = vector.shape_cast %90 : vector<1024xf32> to vector<1x1024xf32>
    %cst_47 = arith.constant 8.000000e+00 : f32
    %92 = vector.broadcast %cst_47 : f32 to vector<1x1024xf32>
    %93 = arith.divf %91, %92 : vector<1x1024xf32>
    %94 = arith.mulf %89, %89 : vector<8x1024xf32>
    %cst_48 = arith.constant dense<0.000000e+00> : vector<1024xf32>
    %95 = vector.multi_reduction <add>, %94, %cst_48 [0] : vector<8x1024xf32> to vector<1024xf32>
    %96 = vector.shape_cast %95 : vector<1024xf32> to vector<1x1024xf32>
    %cst_49 = arith.constant 8.000000e+00 : f32
    %97 = vector.broadcast %cst_49 : f32 to vector<1x1024xf32>
    %98 = arith.divf %96, %97 : vector<1x1024xf32>
    %99 = arith.mulf %93, %93 : vector<1x1024xf32>
    %100 = arith.subf %98, %99 : vector<1x1024xf32>
    %cst_50 = arith.constant 0.000000e+00 : f32
    %101 = vector.broadcast %cst_50 : f32 to vector<1x1024xf32>
    %102 = arith.maximumf %100, %101 : vector<1x1024xf32>
    %c0_51 = arith.constant 0 : index
    %c0_52 = arith.constant 0 : index
    %103 = vector.load %arg14[%c0_51, %c0_52] : memref<1x1024xf32, #tpu.memory_space<vmem>>, vector<1x1024xf32>
    %cst_53 = arith.constant 8.000000e-01 : f32
    %104 = vector.broadcast %cst_53 : f32 to vector<1x1024xf32>
    %105 = arith.addf %102, %104 : vector<1x1024xf32>
    %106 = math.rsqrt %105 : vector<1x1024xf32>
    %107 = arith.mulf %103, %106 : vector<1x1024xf32>
    %c0_54 = arith.constant 0 : index
    %c0_55 = arith.constant 0 : index
    %108 = vector.load %arg15[%c0_54, %c0_55] : memref<1x1024xf32, #tpu.memory_space<vmem>>, vector<1x1024xf32>
    %109 = arith.mulf %93, %107 : vector<1x1024xf32>
    %110 = arith.subf %108, %109 : vector<1x1024xf32>
    %111 = vector.broadcast %107 : vector<1x1024xf32> to vector<8x1024xf32>
    %112 = arith.mulf %89, %111 : vector<8x1024xf32>
    %113 = vector.broadcast %110 : vector<1x1024xf32> to vector<8x1024xf32>
    %114 = arith.addf %112, %113 : vector<8x1024xf32>
    %cst_56 = arith.constant 0.000000e+00 : f32
    %115 = vector.broadcast %cst_56 : f32 to vector<8x1024xf32>
    %116 = arith.cmpf oge, %114, %115 : vector<8x1024xf32>
    %cst_57 = arith.constant 2.000000e-01 : f32
    %117 = vector.broadcast %cst_57 : f32 to vector<8x1024xf32>
    %118 = arith.mulf %117, %114 : vector<8x1024xf32>
    %119 = arith.select %116, %114, %118 : vector<8x1024xi1>, vector<8x1024xf32>
    %120 = arith.truncf %119 : vector<8x1024xf32> to vector<8x1024xbf16>
    %c0_58 = arith.constant 0 : index
    %c0_59 = arith.constant 0 : index
    %121 = vector.load %arg16[%c0_58, %c0_59] : memref<1024x256xbf16, #tpu.memory_space<vmem>>, vector<1024x256xbf16>
    %cst_60 = arith.constant dense<0.000000e+00> : vector<8x256xf32>
    %122 = tpu.matmul %120, %121, %cst_60 {dimension_numbers = #tpu.dot_dimension_numbers<[1], [0], [0], [1], [0, 0, 1, 1], [], []>} : vector<8x1024xbf16>, vector<1024x256xbf16>, vector<8x256xf32> -> vector<8x256xf32>
    %c0_61 = arith.constant 0 : index
    %c0_62 = arith.constant 0 : index
    %123 = vector.load %arg17[%c0_61, %c0_62] : memref<1x256xf32, #tpu.memory_space<vmem>>, vector<1x256xf32>
    %124 = vector.broadcast %123 : vector<1x256xf32> to vector<8x256xf32>
    %125 = arith.addf %122, %124 : vector<8x256xf32>
    %126 = math.tanh %125 : vector<8x256xf32>
    %c0_63 = arith.constant 0 : index
    %c0_64 = arith.constant 0 : index
    %127 = vector.load %arg18[%c0_63, %c0_64] : memref<8x256xf32, #tpu.memory_space<vmem>>, vector<8x256xf32>
    tpu.vector_store %arg18[%c0_63, %c0_64], %126 {strides = array<i32>} : memref<8x256xf32, #tpu.memory_space<vmem>>, vector<8x256xf32>,
    return
  }
  func.func @transform_0(%arg0: i32) -> (i32, i32) {
    %c0_i32 = arith.constant 0 : i32
    %c0_i32_0 = arith.constant 0 : i32
    return %arg0, %c0_i32 : i32, i32
  }
  func.func @transform_1(%arg0: i32) -> (i32, i32) {
    %c0_i32 = arith.constant 0 : i32
    %c0_i32_0 = arith.constant 0 : i32
    %c0_i32_1 = arith.constant 0 : i32
    return %c0_i32, %c0_i32_0 : i32, i32
  }
  func.func @transform_2(%arg0: i32) -> (i32, i32) {
    %c0_i32 = arith.constant 0 : i32
    %c0_i32_0 = arith.constant 0 : i32
    %c0_i32_1 = arith.constant 0 : i32
    return %c0_i32, %c0_i32_0 : i32, i32
  }
  func.func @transform_3(%arg0: i32) -> (i32, i32) {
    %c0_i32 = arith.constant 0 : i32
    %c0_i32_0 = arith.constant 0 : i32
    %c0_i32_1 = arith.constant 0 : i32
    return %c0_i32, %c0_i32_0 : i32, i32
  }
  func.func @transform_4(%arg0: i32) -> (i32, i32) {
    %c0_i32 = arith.constant 0 : i32
    %c0_i32_0 = arith.constant 0 : i32
    %c0_i32_1 = arith.constant 0 : i32
    return %c0_i32, %c0_i32_0 : i32, i32
  }
  func.func @transform_5(%arg0: i32) -> (i32, i32) {
    %c0_i32 = arith.constant 0 : i32
    %c0_i32_0 = arith.constant 0 : i32
    %c0_i32_1 = arith.constant 0 : i32
    return %c0_i32, %c0_i32_0 : i32, i32
  }
  func.func @transform_6(%arg0: i32) -> (i32, i32) {
    %c0_i32 = arith.constant 0 : i32
    %c0_i32_0 = arith.constant 0 : i32
    %c0_i32_1 = arith.constant 0 : i32
    return %c0_i32, %c0_i32_0 : i32, i32
  }
  func.func @transform_7(%arg0: i32) -> (i32, i32) {
    %c0_i32 = arith.constant 0 : i32
    %c0_i32_0 = arith.constant 0 : i32
    %c0_i32_1 = arith.constant 0 : i32
    return %c0_i32, %c0_i32_0 : i32, i32
  }
  func.func @transform_8(%arg0: i32) -> (i32, i32) {
    %c0_i32 = arith.constant 0 : i32
    %c0_i32_0 = arith.constant 0 : i32
    %c0_i32_1 = arith.constant 0 : i32
    return %c0_i32, %c0_i32_0 : i32, i32
  }
  func.func @transform_9(%arg0: i32) -> (i32, i32) {
    %c0_i32 = arith.constant 0 : i32
    %c0_i32_0 = arith.constant 0 : i32
    %c0_i32_1 = arith.constant 0 : i32
    return %c0_i32, %c0_i32_0 : i32, i32
  }
  func.func @transform_10(%arg0: i32) -> (i32, i32) {
    %c0_i32 = arith.constant 0 : i32
    %c0_i32_0 = arith.constant 0 : i32
    %c0_i32_1 = arith.constant 0 : i32
    return %c0_i32, %c0_i32_0 : i32, i32
  }
  func.func @transform_11(%arg0: i32) -> (i32, i32) {
    %c0_i32 = arith.constant 0 : i32
    %c0_i32_0 = arith.constant 0 : i32
    %c0_i32_1 = arith.constant 0 : i32
    return %c0_i32, %c0_i32_0 : i32, i32
  }
  func.func @transform_12(%arg0: i32) -> (i32, i32) {
    %c0_i32 = arith.constant 0 : i32
    %c0_i32_0 = arith.constant 0 : i32
    %c0_i32_1 = arith.constant 0 : i32
    return %c0_i32, %c0_i32_0 : i32, i32
  }
  func.func @transform_13(%arg0: i32) -> (i32, i32) {
    %c0_i32 = arith.constant 0 : i32
    %c0_i32_0 = arith.constant 0 : i32
    %c0_i32_1 = arith.constant 0 : i32
    return %c0_i32, %c0_i32_0 : i32, i32
  }
  func.func @transform_14(%arg0: i32) -> (i32, i32) {
    %c0_i32 = arith.constant 0 : i32
    %c0_i32_0 = arith.constant 0 : i32
    %c0_i32_1 = arith.constant 0 : i32
    return %c0_i32, %c0_i32_0 : i32, i32
  }
  func.func @transform_15(%arg0: i32) -> (i32, i32) {
    %c0_i32 = arith.constant 0 : i32
    %c0_i32_0 = arith.constant 0 : i32
    %c0_i32_1 = arith.constant 0 : i32
    return %c0_i32, %c0_i32_0 : i32, i32
  }
  func.func @transform_16(%arg0: i32) -> (i32, i32) {
    %c0_i32 = arith.constant 0 : i32
    %c0_i32_0 = arith.constant 0 : i32
    %c0_i32_1 = arith.constant 0 : i32
    return %c0_i32, %c0_i32_0 : i32, i32
  }
  func.func @transform_17(%arg0: i32) -> (i32, i32) {
    %c0_i32 = arith.constant 0 : i32
    %c0_i32_0 = arith.constant 0 : i32
    return %arg0, %c0_i32 : i32, i32
  }
}

</mosaic_0001>

<bundles_post_ra>
// kernel: tpu_custom_call.1
= control target key start
LH: loop header
LB: loop body
LE: loop exit
PB: predicated region body
PF: predicated region fallthrough
CT: control target
= control target key end

     0   :  { %s8066_s0 = inlined_call_operand.hbm [shape: f32[8,32], index: 0, kind: input, shape index: {}]   ;;  %s8067_s1 = inlined_call_operand.hbm [shape: bf16[32,128], index: 1, kind: input, shape index: {}]   ;;  %s8068_s2 = inlined_call_operand.hbm [shape: f32[1,128], index: 2, kind: input, shape index: {}]   ;;  %s8069_s3 = inlined_call_operand.hbm [shape: bf16[128,256], index: 3, kind: input, shape index: {}]   ;;  %s8070_s4 = inlined_call_operand.vmem [shape: f32[1,256], index: 4, kind: input, shape index: {}]   ;;  %s8071_s5 = inlined_call_operand.hbm [shape: f32[1,256], index: 5, kind: input, shape index: {}]   ;;  %s8072_s6 = inlined_call_operand.hbm [shape: f32[1,256], index: 6, kind: input, shape index: {}]   ;;  %s8073_s7 = inlined_call_operand.hbm [shape: bf16[256,512], index: 7, kind: input, shape index: {}]   ;;  %s8074_s8 = inlined_call_operand.hbm [shape: f32[1,512], index: 8, kind: input, shape index: {}]   ;;  %s8075_s9 = inlined_call_operand.hbm [shape: f32[1,512], index: 9, kind: input, shape index: {}]   ;;  %s8076_s10 = inlined_call_operand.hbm [shape: f32[1,512], index: 10, kind: input, shape index: {}]   ;;  %s8077_s11 = inlined_call_operand.hbm [shape: bf16[512,1024], index: 11, kind: input, shape index: {}]   ;;  %s8078_s12 = inlined_call_operand.vmem [shape: f32[1,1024], index: 12, kind: input, shape index: {}]   ;;  %s8079_s13 = inlined_call_operand.hbm [shape: f32[1,1024], index: 13, kind: input, shape index: {}]   ;;  %s8080_s14 = inlined_call_operand.hbm [shape: f32[1,1024], index: 14, kind: input, shape index: {}]   ;;  %s8081_s15 = inlined_call_operand.hbm [shape: bf16[1024,256], index: 15, kind: input, shape index: {}]   ;;  %s8082_s16 = inlined_call_operand.vmem [shape: f32[1,256], index: 16, kind: input, shape index: {}]   ;;  %s8083_s17 = inlined_call_operand.hbm [shape: f32[8,256], index: 17, kind: output, shape index: {}]  }
   0x1   :  { %8084 = sst [smem:[#allocation35_spill]] %s8066_s0 }
   0x2   :  { %8085 = sst [smem:[#allocation36_spill]] %s8067_s1 }
   0x3   :  { %22 = vsyncpa [#allocation3], 0 }
   0x4   :  { %23 = vsyncpa [#allocation6], 0 }
   0x5   :  { %24 = vsyncpa [#allocation9], 0 }
   0x6   :  { %25 = vsyncpa [#allocation12], 0 }
   0x7   :  { %26 = vsyncpa [#allocation15], 0 }
   0x8   :  { %27 = vsyncpa [#allocation18], 0 }
   0x9   :  { %28 = vsyncpa [#allocation21], 0 }
   0xa   :  { %29 = vsyncpa [#allocation24], 0  ;;  %s8086_s26 = sld [smem:[#allocation36_spill]] }
  0x10   :  { %s46_s27 = sshll.u32 %s8086_s26, 4  ;;  %s47_s27 = int_to_ptr.hbm [resolvable:$true] %s46_s27 }
  0x11   :  { %30 = vsyncpa [#allocation4], 0  ;;  %s7346_s28 = smov [#allocation5]   ;;  %s70_s18 = sshll.u32 %s8069_s3, 4  ;;  %s71_s18 = int_to_ptr.hbm [resolvable:$true] %s70_s18 }
  0x12   :  { %s48_s29 = sshll.u32 %s7346_s28, 4  ;;  %s7347_s19 = smov 64   ;;  %s49_s29 = int_to_ptr.vmem [resolvable:$true] %s48_s29 }
  0x13   :  { %s7348_s1 = smov 4   ;;  %s7349_s20 = smov [#allocation8]  }
  0x14   :  { %54 = dma.hbm_to_vmem [thread:$0]  %s47_s27, 256, %s49_s29, [#allocation6], %s7347_s19, %s7347_s19, %s7348_s1  }
  0x15   :  { %s72_s21 = sshll.u32 %s7349_s20, 4  ;;  %s7350_s22 = smov 128   ;;  %s73_s21 = int_to_ptr.vmem [resolvable:$true] %s72_s21 }
  0x16   :  { %s7351_s23 = smov 8   ;;  %s97_s26 = sshll.u32 %s8072_s6, 4  ;;  %s98_s26 = int_to_ptr.hbm [resolvable:$true] %s97_s26 }
  0x17   :  { %78 = dma.hbm_to_vmem [thread:$0]  %s71_s18, 2048, %s73_s21, [#allocation9], %s7350_s22, %s7350_s22, %s7351_s23  }
  0x18   :  { %s7352_s28 = smov [#allocation11]   ;;  %s121_s29 = sshll.u32 %s8074_s8, 4  ;;  %s122_s29 = int_to_ptr.hbm [resolvable:$true] %s121_s29 }
  0x19   :  { %s99_s3 = sshll.u32 %s7352_s28, 4  ;;  %s7353_s30 = smov [#allocation14]   ;;  %s100_s3 = int_to_ptr.vmem [resolvable:$true] %s99_s3 }
  0x1a   :  { %102 = dma.hbm_to_vmem [thread:$0]  %s98_s26, 32, %s100_s3, [#allocation12]  }
  0x1b   :  { %s123_s19 = sshll.u32 %s7353_s30, 4  ;;  %s143_s18 = sshll.u32 %s8076_s10, 4  ;;  %s124_s19 = int_to_ptr.vmem [resolvable:$true] %s123_s19  ;;  %s144_s18 = int_to_ptr.hbm [resolvable:$true] %s143_s18 }
  0x1c   :  { %126 = dma.hbm_to_vmem [thread:$0]  %s122_s29, 64, %s124_s19, [#allocation15]  }
  0x1d   :  { %s169_s24 = sshll.u32 %s8079_s13, 4  ;;  %s7354_s25 = smov [#allocation17]   ;;  %s170_s24 = int_to_ptr.hbm [resolvable:$true] %s169_s24 }
  0x1e   :  { %s145_s28 = sshll.u32 %s7354_s25, 4  ;;  %s7355_s8 = smov [#allocation20]   ;;  %s146_s28 = int_to_ptr.vmem [resolvable:$true] %s145_s28 }
  0x1f   :  { %148 = dma.hbm_to_vmem [thread:$0]  %s144_s18, 64, %s146_s28, [#allocation18]  }
  0x20   :  { %s171_s26 = sshll.u32 %s7355_s8, 4  ;;  %s8087_s27 = sld [smem:[#allocation35_spill]]  ;;  %s172_s26 = int_to_ptr.vmem [resolvable:$true] %s171_s26 }
  0x21   :  { %174 = dma.hbm_to_vmem [thread:$0]  %s170_s24, 128, %s172_s26, [#allocation21]  }
  0x22   :  { %s60_s19 = sshll.u32 %s8068_s2, 4  ;;  %s7356_s1 = smov [#allocation2]   ;;  %s61_s19 = int_to_ptr.hbm [resolvable:$true] %s60_s19 }
  0x23   :  { %s38_s13 = sshll.u32 %s7356_s1, 4  ;;  %s7357_s20 = smov [#allocation7]   ;;  %s39_s13 = int_to_ptr.vmem [resolvable:$true] %s38_s13 }
  0x24   :  { %s62_s18 = sshll.u32 %s7357_s20, 4  ;;  %s86_s25 = sshll.u32 %s8071_s5, 4  ;;  %s63_s18 = int_to_ptr.vmem [resolvable:$true] %s62_s18  ;;  %s87_s25 = int_to_ptr.hbm [resolvable:$true] %s86_s25 }
  0x25   :  { %65 = dma.hbm_to_vmem [thread:$0]  %s61_s19, 16, %s63_s18, [#allocation6]  }
  0x26   :  { %s36_s30 = sshll.u32 %s8087_s27, 4  ;;  %s107_s8 = sshll.u32 %s8073_s7, 4  ;;  %s37_s30 = int_to_ptr.hbm [resolvable:$true] %s36_s30  ;;  %s108_s8 = int_to_ptr.hbm [resolvable:$true] %s107_s8 }
  0x27   :  { %41 = dma.hbm_to_vmem [thread:$0]  %s37_s30, 128, %s39_s13, [#allocation3]  }
  0x28   :  { %s7358_s26 = smov [#allocation10]   ;;  %s7359_s3 = smov [#allocation13]  }
  0x29   :  { %s88_s2 = sshll.u32 %s7358_s26, 4  ;;  %s109_s0 = sshll.u32 %s7359_s3, 4  ;;  %s89_s2 = int_to_ptr.vmem [resolvable:$true] %s88_s2  ;;  %s110_s0 = int_to_ptr.vmem [resolvable:$true] %s109_s0 }
  0x2a   :  { %91 = dma.hbm_to_vmem [thread:$0]  %s87_s25, 32, %s89_s2, [#allocation9]  }
  0x2b   :  { %s7360_s27 = smov 256   ;;  %s7361_s30 = smov 16  }
  0x2c   :  { %115 = dma.hbm_to_vmem [thread:$0]  %s108_s8, 8192, %s110_s0, [#allocation12], %s7360_s27, %s7360_s27, %s7361_s30  }
  0x2d   :  { %s132_s29 = sshll.u32 %s8075_s9, 4  ;;  %s7362_s19 = smov [#allocation16]   ;;  %s133_s29 = int_to_ptr.hbm [resolvable:$true] %s132_s29 }
  0x2e   :  { %s134_s1 = sshll.u32 %s7362_s19, 4  ;;  %s153_s20 = sshll.u32 %s8077_s11, 4  ;;  %s135_s1 = int_to_ptr.vmem [resolvable:$true] %s134_s1  ;;  %s154_s20 = int_to_ptr.hbm [resolvable:$true] %s153_s20 }
  0x2f   :  { %137 = dma.hbm_to_vmem [thread:$0]  %s133_s29, 64, %s135_s1, [#allocation15]  }
  0x30   :  { %s7363_s18 = smov [#allocation19]   ;;  %s7364_s21 = smov 512  }
  0x31   :  { %s155_s6 = sshll.u32 %s7363_s18, 4  ;;  %s7365_s25 = smov 32   ;;  %s156_s6 = int_to_ptr.vmem [resolvable:$true] %s155_s6 }
  0x32   :  { %161 = dma.hbm_to_vmem [thread:$0]  %s154_s20, 32768, %s156_s6, [#allocation18], %s7364_s21, %s7364_s21, %s7365_s25  }
  0x33   :  { %s180_s9 = sshll.u32 %s8080_s14, 4  ;;  %s7366_s8 = smov [#allocation22]   ;;  %s181_s9 = int_to_ptr.hbm [resolvable:$true] %s180_s9 }
  0x34   :  { %s182_s26 = sshll.u32 %s7366_s8, 4  ;;  %s190_s11 = sshll.u32 %s8081_s15, 4  ;;  %s183_s26 = int_to_ptr.vmem [resolvable:$true] %s182_s26  ;;  %s191_s11 = int_to_ptr.hbm [resolvable:$true] %s190_s11 }
  0x35   :  { %185 = dma.hbm_to_vmem [thread:$0]  %s181_s9, 128, %s183_s26, [#allocation21]  }
  0x36   :  { %s7367_s0 = smov [#allocation23]  }
  0x37   :  { %s192_s27 = sshll.u32 %s7367_s0, 4  ;;  %s193_s27 = int_to_ptr.vmem [resolvable:$true] %s192_s27 }
  0x38   :  { %198 = dma.hbm_to_vmem [thread:$0]  %s191_s11, 16384, %s193_s27, [#allocation24], %s7350_s22, %s7350_s22, %s7351_s23  }
  0x39   :  { %7328 = dma.done.wait [#allocation3], 128  }
  0x3a   :  { %7329 = vsyncadd [#allocation3], 4294967168 }
  0x3b   :  { %7330 = dma.done.wait [#allocation6], 272  }
  0x3c   :  { %7331 = vsyncadd [#allocation6], 4294967024 }
  0x3d   :  { %7332 = dma.done.wait [#allocation9], 2080  }
  0x3e   :  { %7333 = vsyncadd [#allocation9], 4294965216 }
  0x3f   :  { %7334 = dma.done.wait [#allocation12], 8224  }
  0x40   :  { %7335 = vsyncadd [#allocation12], 4294959072 }
  0x41   :  { %7336 = dma.done.wait [#allocation15], 128  }
  0x42   :  { %7337 = vsyncadd [#allocation15], 4294967168 }
  0x43   :  { %7338 = dma.done.wait [#allocation18], 32832  }
  0x44   :  { %7339 = vsyncadd [#allocation18], 4294934464 }
  0x45   :  { %7340 = dma.done.wait [#allocation21], 256  }
  0x46   :  { %7341 = vsyncadd [#allocation21], 4294967040 }
  0x47   :  { %7342 = dma.done.wait [#allocation24], 16384  }
  0x48   :  { %7343 = vsyncadd [#allocation24], 4294950912  ;;  %v6443_v0 = vld [vmem:[#allocation5 + $0x8] sm:$0xff]  ;;  %v6442_v1 = vld [vmem:[#allocation5] sm:$0xff]  ;;  %vm280_vm0 = vcmask 261120   ;;  %v7368_v59 = vmov 8.0  }
  0x49   :  { %v258_v2 = vld [vmem:[#allocation2] sm:$0xff]  ;;  %v4644_v3 = vld [vmem:[#allocation8 + $0x70] sm:$0xf]  ;;  %v6459_v4 = vld [vmem:[#allocation8 + $0x74] sm:$0xf0]  ;;  %290 = vmatpush.bf16.msra.mxu0 %v6443_v0  ;;  %6933 = vrcp.f32 %v7368_v59  ;;  %vm498_vm8 = vcmask 1040384  }
  0x4a   :  { %v6458_v5 = vld [vmem:[#allocation8 + $0x74] sm:$0xf]  ;;  %v4645_v6 = vor.u32 %v6459_v4, %v4644_v3  ;;  %v4646_v7 = vld [vmem:[#allocation8 + $0x78] sm:$0xf0]  ;;  %v4636_v8 = vld [vmem:[#allocation8 + $0x60] sm:$0xf]  ;;  %v259_v14 = vpack.c.bf16 %v258_v2, %v258_v2 }
  0x4b   :  { %v6457_v9 = vld [vmem:[#allocation8 + $0x64] sm:$0xf0]  ;;  %v4649_v10 = vor.u32 %v6458_v5, %v4646_v7  ;;  %v6456_v11 = vld [vmem:[#allocation8 + $0x64] sm:$0xf]  ;;  %v4638_v12 = vld [vmem:[#allocation8 + $0x68] sm:$0xf0] }
  0x4c   :  { %403 = vmatpush.bf16.msra.mxu1 %v4645_v6  ;;  %v4637_v13 = vor.u32 %v6457_v9, %v4636_v8  ;;  %v4641_v15 = vor.u32 %v6456_v11, %v4638_v12  ;;  %v4628_v16 = vld [vmem:[#allocation8 + $0x50] sm:$0xf]  ;;  %v6455_v17 = vld [vmem:[#allocation8 + $0x54] sm:$0xf0]  ;;  %v6454_v18 = vld [vmem:[#allocation8 + $0x54] sm:$0xf] }
  0x4d   :  { %416 = vmatpush.bf16.msra.mxu2 %v4649_v10  ;;  %291 = vmatpush.bf16.msra.mxu0 %v6442_v1  ;;  %v4630_v19 = vld [vmem:[#allocation8 + $0x58] sm:$0xf0]  ;;  %v4629_v20 = vor.u32 %v6455_v17, %v4628_v16  ;;  %v4620_v22 = vld [vmem:[#allocation8 + $0x40] sm:$0xf]  ;;  %v6453_v23 = vld [vmem:[#allocation8 + $0x44] sm:$0xf0] }
  0x4e   :  { %v4633_v21 = vor.u32 %v6454_v18, %v4630_v19  ;;  %v6452_v24 = vld [vmem:[#allocation8 + $0x44] sm:$0xf]  ;;  %v4622_v25 = vld [vmem:[#allocation8 + $0x48] sm:$0xf0]  ;;  %v4621_v26 = vor.u32 %v6453_v23, %v4620_v22  ;;  %v4612_v28 = vld [vmem:[#allocation8 + $0x30] sm:$0xf] }
  0x4f   :  { %v4625_v27 = vor.u32 %v6452_v24, %v4622_v25  ;;  %v6451_v29 = vld [vmem:[#allocation8 + $0x34] sm:$0xf0]  ;;  %v6450_v30 = vld [vmem:[#allocation8 + $0x34] sm:$0xf]  ;;  %v4614_v31 = vld [vmem:[#allocation8 + $0x38] sm:$0xf0]  ;;  %v7513_v61 = vpop.eup %6933 }
  0x50   :  { %404 = vmatpush.bf16.msra.mxu1 %v4637_v13  ;;  %4585 = vmatmul.msk.bf16.vlgmr.msra.gmra.mxu0 %vm280_vm0, %v259_v14  ;;  %v4613_v32 = vor.u32 %v6451_v29, %v4612_v28  ;;  %v4617_v33 = vor.u32 %v6450_v30, %v4614_v31  ;;  %v4604_v34 = vld [vmem:[#allocation8 + $0x20] sm:$0xf]  ;;  %v6449_v35 = vld [vmem:[#allocation8 + $0x24] sm:$0xf0]  ;;  %v6448_v36 = vld [vmem:[#allocation8 + $0x24] sm:$0xf]  ;;  %vm446_vm2 = vweird.f32 %v7513_v61 }
  0x51   :  { %417 = vmatpush.bf16.msra.mxu2 %v4641_v15  ;;  %v4606_v37 = vld [vmem:[#allocation8 + $0x28] sm:$0xf0]  ;;  %v4605_v38 = vor.u32 %v6449_v35, %v4604_v34  ;;  %v4596_v40 = vld [vmem:[#allocation8 + $0x10] sm:$0xf]  ;;  %v6447_v41 = vld [vmem:[#allocation8 + $0x14] sm:$0xf0] }
  0x52   :  { %v4609_v39 = vor.u32 %v6448_v36, %v4606_v37  ;;  %v6446_v42 = vld [vmem:[#allocation8 + $0x14] sm:$0xf]  ;;  %v4597_v43 = vor.u32 %v6447_v41, %v4596_v40  ;;  %v4598_v44 = vld [vmem:[#allocation8 + $0x18] sm:$0xf0]  ;;  %v4588_v46 = vld [vmem:[#allocation8] sm:$0xf] }
  0x53   :  { %v4601_v45 = vor.u32 %v6446_v42, %v4598_v44  ;;  %v6445_v47 = vld [vmem:[#allocation8 + $0x4] sm:$0xf0]  ;;  %v6444_v48 = vld [vmem:[#allocation8 + $0x4] sm:$0xf]  ;;  %v4590_v50 = vld [vmem:[#allocation8 + $0x8] sm:$0xf0] }
  0x54   :  { %405 = vmatpush.bf16.msra.mxu1 %v4629_v20  ;;  %v4589_v49 = vor.u32 %v6445_v47, %v4588_v46  ;;  %v4593_v51 = vor.u32 %v6444_v48, %v4590_v50  ;;  %v6932_v52 = vld [vmem:[#allocation7] ss:$0 sm:$0xff]  ;;  %v7511_v60 = vld [vmem:[%s8070_s4] sm:$0x3]  ;;  %v6490_v63 = vld [vmem:[#allocation13 + $0xec] sm:$0xf0] }
  0x55   :  { %418 = vmatpush.bf16.msra.mxu2 %v4633_v21  ;;  %v4764_v62 = vld [vmem:[#allocation13 + $0xe0] sm:$0xf]  ;;  %v6522_v2 = vld [vmem:[#allocation13 + $0x1ec] sm:$0xf0]  ;;  %v6488_v3 = vld [vmem:[#allocation13 + $0xe4] sm:$0xf] }
  0x56   :  { %v4892_v0 = vld [vmem:[#allocation13 + $0x1e0] sm:$0xf]  ;;  %v4765_v1 = vor.u32 %v6490_v63, %v4764_v62  ;;  %v4766_v4 = vld [vmem:[#allocation13 + $0xf0] sm:$0xf0]  ;;  %v6520_v7 = vld [vmem:[#allocation13 + $0x1e4] sm:$0xf] }
  0x57   :  { %v4893_v5 = vor.u32 %v6522_v2, %v4892_v0  ;;  %v4769_v6 = vor.u32 %v6488_v3, %v4766_v4  ;;  %v4894_v8 = vld [vmem:[#allocation13 + $0x1f0] sm:$0xf0]  ;;  %v319_v9 = vperm.slane %v7511_v60, 0  ;;  %v442_v10 = vmul.f32 8.0, %v7513_v61  ;;  %v4748_v12 = vld [vmem:[#allocation13 + $0xc0] sm:$0xf] }
  0x58   :  { %406 = vmatpush.bf16.msra.mxu1 %v4621_v26  ;;  %927 = vmatpush.bf16.msra.mxu3 %v4765_v1  ;;  %v4897_v11 = vor.u32 %v6520_v7, %v4894_v8  ;;  %v6486_v13 = vld [vmem:[#allocation13 + $0xcc] sm:$0xf0]  ;;  %v4876_v14 = vld [vmem:[#allocation13 + $0x1c0] sm:$0xf]  ;;  %v6484_v17 = vld [vmem:[#allocation13 + $0xc4] sm:$0xf] }
  0x59   :  { %419 = vmatpush.bf16.msra.mxu2 %v4625_v27  ;;  %940 = vmatpush.bf16.msrb.mxu0 %v4893_v5  ;;  %v4749_v15 = vor.u32 %v6486_v13, %v4748_v12  ;;  %v6518_v16 = vld [vmem:[#allocation13 + $0x1cc] sm:$0xf0]  ;;  %v4750_v18 = vld [vmem:[#allocation13 + $0xd0] sm:$0xf0]  ;;  %v6516_v21 = vld [vmem:[#allocation13 + $0x1c4] sm:$0xf] }
  0x5a   :  { %v4877_v19 = vor.u32 %v6518_v16, %v4876_v14  ;;  %v4753_v20 = vor.u32 %v6484_v17, %v4750_v18  ;;  %v4878_v22 = vld [vmem:[#allocation13 + $0x1d0] sm:$0xf0]  ;;  %v443_v24 = vsub.f32 1.0, %v442_v10  ;;  %v320_v25 = vperm.slane %v7511_v60, 1  ;;  %v4732_v28 = vld [vmem:[#allocation13 + $0xa0] sm:$0xf] }
  0x5b   :  { %v4881_v26 = vor.u32 %v6516_v21, %v4878_v22  ;;  %v6482_v29 = vld [vmem:[#allocation13 + $0xac] sm:$0xf0]  ;;  %v4860_v30 = vld [vmem:[#allocation13 + $0x1a0] sm:$0xf]  ;;  %v4734_v34 = vld [vmem:[#allocation13 + $0xb0] sm:$0xf0] }
  0x5c   :  { %407 = vmatpush.bf16.msra.mxu1 %v4613_v32  ;;  %928 = vmatpush.bf16.msra.mxu3 %v4749_v15  ;;  %v4733_v31 = vor.u32 %v6482_v29, %v4732_v28  ;;  %v6514_v32 = vld [vmem:[#allocation13 + $0x1ac] sm:$0xf0]  ;;  %v4862_v40 = vld [vmem:[#allocation13 + $0x1b0] sm:$0xf0]  ;;  %v444_v41 = vmul.f32 %v7513_v61, %v443_v24  ;;  %v4700_v3 = vld [vmem:[#allocation13 + $0x60] sm:$0xf] }
  0x5d   :  { %420 = vmatpush.bf16.msra.mxu2 %v4617_v33  ;;  %941 = vmatpush.bf16.msrb.mxu0 %v4877_v19  ;;  %v6480_v33 = vld [vmem:[#allocation13 + $0xa4] sm:$0xf]  ;;  %v4861_v37 = vor.u32 %v6514_v32, %v4860_v30  ;;  %v6478_v46 = vld [vmem:[#allocation13 + $0x8c] sm:$0xf0]  ;;  %v4846_v62 = vld [vmem:[#allocation13 + $0x190] sm:$0xf0] }
  0x5e   :  { %v6510_v50 = vld [vmem:[#allocation13 + $0x18c] sm:$0xf0]  ;;  %v4828_v7 = vld [vmem:[#allocation13 + $0x160] sm:$0xf]  ;;  %v4702_v14 = vld [vmem:[#allocation13 + $0x70] sm:$0xf0] }
  0x5f   :  { %v6474_v4 = vld [vmem:[#allocation13 + $0x6c] sm:$0xf0]  ;;  %v6504_v15 = vld [vmem:[#allocation13 + $0x164] sm:$0xf]  ;;  %v4830_v19 = vld [vmem:[#allocation13 + $0x170] sm:$0xf0] }
  0x60   :  { %408 = vmatpush.bf16.msra.mxu1 %v4605_v38  ;;  %v4737_v38 = vor.u32 %v6480_v33, %v4734_v34  ;;  %929 = vmatpush.bf16.msra.mxu3 %v4733_v31  ;;  %v6506_v8 = vld [vmem:[#allocation13 + $0x16c] sm:$0xf0]  ;;  %v4684_v24 = vld [vmem:[#allocation13 + $0x40] sm:$0xf]  ;;  %v4833_v28 = vor.u32 %v6504_v15, %v4830_v19  ;;  %v4782_v15 = vld [vmem:[#allocation13 + $0x110] sm:$0xf0] }
  0x61   :  { %421 = vmatpush.bf16.msra.mxu2 %v4609_v39  ;;  %v6512_v39 = vld [vmem:[#allocation13 + $0x1a4] sm:$0xf]  ;;  %942 = vmatpush.bf16.msrb.mxu0 %v4861_v37  ;;  %v4829_v17 = vor.u32 %v6506_v8, %v4828_v7  ;;  %v4812_v30 = vld [vmem:[#allocation13 + $0x140] sm:$0xf]  ;;  %v6502_v31 = vld [vmem:[#allocation13 + $0x14c] sm:$0xf0] }
  0x62   :  { %v4865_v42 = vor.u32 %v6512_v39, %v4862_v40  ;;  %v6500_v37 = vld [vmem:[#allocation13 + $0x144] sm:$0xf]  ;;  %v4814_v40 = vld [vmem:[#allocation13 + $0x150] sm:$0xf0]  ;;  %s4560_s1 = sshll.u32 %s8083_s17, 4  ;;  %s4561_s1 = int_to_ptr.hbm [resolvable:$true] %s4560_s1 }
  0x63   :  { %v6460_v7 = vld [vmem:[#allocation13 + $0x4] sm:$0xf] }
  0x64   :  { %409 = vmatpush.bf16.msra.mxu1 %v4597_v43 }
  0x65   :  { %422 = vmatpush.bf16.msra.mxu2 %v4601_v45  ;;  %v4716_v45 = vld [vmem:[#allocation13 + $0x80] sm:$0xf] }
  0x66   :  { %v4717_v48 = vor.u32 %v6478_v46, %v4716_v45  ;;  %v4668_v45 = vld [vmem:[#allocation13 + $0x20] sm:$0xf]  ;;  %v6466_v46 = vld [vmem:[#allocation13 + $0x2c] sm:$0xf0] }
  0x68   :  { %410 = vmatpush.bf16.msra.mxu1 %v4589_v49  ;;  %v4844_v49 = vld [vmem:[#allocation13 + $0x180] sm:$0xf]  ;;  %930 = vmatpush.bf16.msra.mxu3 %v4717_v48  ;;  %v4669_v48 = vor.u32 %v6466_v46, %v4668_v45  ;;  %v4740_v45 = vld [vmem:[#allocation13 + $0xa8] sm:$0xf]  ;;  %v6483_v46 = vld [vmem:[#allocation13 + $0xb4] sm:$0xf0] }
  0x69   :  { %423 = vmatpush.bf16.msra.mxu2 %v4593_v51  ;;  %v6476_v51 = vld [vmem:[#allocation13 + $0x84] sm:$0xf] }
  0x6c   :  { %953 = vmatpush.bf16.msrb.mxu1 %v4769_v6  ;;  %v4701_v6 = vor.u32 %v6474_v4, %v4700_v3  ;;  %v6462_v3 = vld [vmem:[#allocation13 + $0xc] sm:$0xf0] }
  0x6d   :  { %966 = vmatpush.bf16.msrb.mxu2 %v4897_v11 }
  0x6e   :  { %931 = vmatpush.bf16.msra.mxu3 %v4701_v6  ;;  %v6494_v6 = vld [vmem:[#allocation13 + $0x10c] sm:$0xf0] }
  0x70   :  { %954 = vmatpush.bf16.msrb.mxu1 %v4753_v20 }
  0x71   :  { %967 = vmatpush.bf16.msrb.mxu2 %v4881_v26 }
  0x74   :  { %955 = vmatpush.bf16.msrb.mxu1 %v4737_v38  ;;  %v4813_v38 = vor.u32 %v6502_v31, %v4812_v30 }
  0x75   :  { %968 = vmatpush.bf16.msrb.mxu2 %v4865_v42 }
  0xcd   :  { %v293_v53 = vpop.f32.mrf.mxu0 }
  0xce   :  { %v294_v54 = vadd.f32 %v6932_v52, %v293_v53 }
  0xd0   :  { %v298_v55 = vmul.f32 0.2, %v294_v54  ;;  %vm297_vm1 = vcmp.ge.f32.partialorder %v294_v54, 0.0 }
  0xd2   :  { %v299_v56 = vsel %vm297_vm1, %v294_v54, %v298_v55  ;;  %v4845_v55 = vor.u32 %v6510_v50, %v4844_v49  ;;  %v4796_v49 = vld [vmem:[#allocation13 + $0x120] sm:$0xf]  ;;  %v6498_v50 = vld [vmem:[#allocation13 + $0x12c] sm:$0xf0] }
  0xd3   :  { %v300_v57 = vpack.c.bf16 %v299_v56, %v299_v56  ;;  %v4718_v56 = vld [vmem:[#allocation13 + $0x90] sm:$0xf0] }
  0xd4   :  { %v4721_v60 = vor.u32 %v6476_v51, %v4718_v56  ;;  %943 = vmatpush.bf16.msrb.mxu0 %v4845_v55  ;;  %v4797_v55 = vor.u32 %v6498_v50, %v4796_v49  ;;  %v6464_v56 = vld [vmem:[#allocation13 + $0x24] sm:$0xf]  ;;  %v4868_v49 = vld [vmem:[#allocation13 + $0x1a8] sm:$0xf]  ;;  %v6515_v50 = vld [vmem:[#allocation13 + $0x1b4] sm:$0xf0] }
  0xd5   :  { %v295_v58 = vpop.f32.mrf.mxu0  ;;  %411 = vmatmul.bf16.vlgmr.msra.gmra.mxu1 %v300_v57  ;;  %424 = vmatmul.bf16.vlgmr.msra.gmra.mxu2 %v300_v57  ;;  %v6508_v57 = vld [vmem:[#allocation13 + $0x184] sm:$0xf] }
  0xd6   :  { %v445_v58 = vadd.f32 %v7513_v61, %v444_v41  ;;  %956 = vmatpush.bf16.msrb.mxu1 %v4721_v60  ;;  %v4849_v5 = vor.u32 %v6508_v57, %v4846_v62  ;;  %v4670_v57 = vld [vmem:[#allocation13 + $0x30] sm:$0xf0] }
  0xd7   :  { %v4798_v60 = vld [vmem:[#allocation13 + $0x130] sm:$0xf0] }
  0xd8   :  { %v7536_v16 = vsel %vm446_vm2, %v7513_v61, %v445_v58  ;;  %969 = vmatpush.bf16.msrb.mxu2 %v4849_v5  ;;  %944 = vmatpush.bf16.msrb.mxu0 %v4829_v17  ;;  %v6468_v61 = vld [vmem:[#allocation13 + $0x44] sm:$0xf]  ;;  %v4673_v58 = vor.u32 %v6464_v56, %v4670_v57  ;;  %v4780_v5 = vld [vmem:[#allocation13 + $0x100] sm:$0xf]  ;;  %v4772_v17 = vld [vmem:[#allocation13 + $0xe8] sm:$0xf] }
  0xd9   :  { %v6513_v56 = vld [vmem:[#allocation13 + $0x1ac] sm:$0xf]  ;;  %v4870_v57 = vld [vmem:[#allocation13 + $0x1b8] sm:$0xf0] }
  0xdc   :  { %970 = vmatpush.bf16.msrb.mxu2 %v4833_v28  ;;  %945 = vmatpush.bf16.msrb.mxu0 %v4813_v38  ;;  %v6521_v28 = vld [vmem:[#allocation13 + $0x1ec] sm:$0xf] }
  0xdd   :  { %v6485_v38 = vld [vmem:[#allocation13 + $0xcc] sm:$0xf] }
  0xe0   :  { %946 = vmatpush.bf16.msrb.mxu0 %v4797_v55  ;;  %v4742_v55 = vld [vmem:[#allocation13 + $0xb8] sm:$0xf0] }
 0x152   :  { %v412_v23 = vpop.f32.mrf.mxu1 }
 0x153   :  { %v7518_v27 = vadd.f32 %v412_v23, %v319_v9  ;;  %v6472_v9 = vld [vmem:[#allocation13 + $0x64] sm:$0xf] }
 0x154   :  { %v4705_v18 = vor.u32 %v6472_v9, %v4702_v14 }
 0x155   :  { %v429_v35 = vrot.slane %v7518_v27, 4  ;;  %v450_v36 = vmul.f32 %v7518_v27, %v7518_v27 }
 0x156   :  { %957 = vmatpush.bf16.msrb.mxu1 %v4705_v18  ;;  %v6491_v18 = vld [vmem:[#allocation13 + $0xf4] sm:$0xf0] }
 0x157   :  { %v430_v43 = vadd.f32 %v429_v35, %v7518_v27  ;;  %v452_v44 = vrot.slane %v450_v36, 4 }
 0x158   :  { %v425_v47 = vpop.f32.mrf.mxu2 }
 0x159   :  { %v431_v52 = vrot.slane %v430_v43, 2  ;;  %v453_v53 = vadd.f32 %v452_v44, %v450_v36  ;;  %v7525_v54 = vadd.f32 %v425_v47, %v320_v25  ;;  %v6470_v25 = vld [vmem:[#allocation13 + $0x4c] sm:$0xf0]  ;;  %v4686_v36 = vld [vmem:[#allocation13 + $0x50] sm:$0xf0]  ;;  %v4817_v47 = vor.u32 %v6500_v37, %v4814_v40 }
 0x15a   :  { %v414_v59 = vpop.f32.mrf.mxu1  ;;  %v4685_v29 = vor.u32 %v6470_v25, %v4684_v24  ;;  %v4689_v39 = vor.u32 %v6468_v61, %v4686_v36  ;;  %v4773_v24 = vor.u32 %v6491_v18, %v4772_v17  ;;  %v4884_v36 = vld [vmem:[#allocation13 + $0x1c8] sm:$0xf]  ;;  %v6519_v37 = vld [vmem:[#allocation13 + $0x1d4] sm:$0xf0] }
 0x15b   :  { %v432_v63 = vadd.f32 %v431_v52, %v430_v43  ;;  %v454_v0 = vrot.slane %v453_v53, 2  ;;  %v435_v1 = vrot.slane %v7525_v54, 4  ;;  %v451_v2 = vmul.f32 %v7525_v54, %v7525_v54  ;;  %971 = vmatpush.bf16.msrb.mxu2 %v4817_v47  ;;  %v6496_v59 = vld [vmem:[#allocation13 + $0x124] sm:$0xf]  ;;  %v4708_v17 = vld [vmem:[#allocation13 + $0x68] sm:$0xf] }
 0x15c   :  { %932 = vmatpush.bf16.msra.mxu3 %v4685_v29  ;;  %958 = vmatpush.bf16.msrb.mxu1 %v4689_v39  ;;  %v4902_v29 = vld [vmem:[#allocation13 + $0x1f8] sm:$0xf0]  ;;  %v4885_v40 = vor.u32 %v6519_v37, %v4884_v36  ;;  %v6475_v18 = vld [vmem:[#allocation13 + $0x74] sm:$0xf0]  ;;  %v6469_v37 = vld [vmem:[#allocation13 + $0x4c] sm:$0xf] }
 0x15d   :  { %v433_v10 = vrot.slane %v432_v63, 1  ;;  %v455_v11 = vadd.f32 %v454_v0, %v453_v53  ;;  %v436_v12 = vadd.f32 %v435_v1, %v7525_v54  ;;  %v458_v13 = vrot.slane %v451_v2, 4  ;;  %v6503_v36 = vld [vmem:[#allocation13 + $0x154] sm:$0xf0] }
 0x15e   :  { %v4801_v1 = vor.u32 %v6496_v59, %v4798_v60  ;;  %v4905_v61 = vor.u32 %v6521_v28, %v4902_v29  ;;  %v4724_v60 = vld [vmem:[#allocation13 + $0x88] sm:$0xf]  ;;  %v4838_v28 = vld [vmem:[#allocation13 + $0x178] sm:$0xf0] }
 0x15f   :  { %v434_v20 = vadd.f32 %v433_v10, %v432_v63  ;;  %v456_v21 = vrot.slane %v455_v11, 1  ;;  %v437_v22 = vrot.slane %v436_v12, 2  ;;  %v459_v23 = vadd.f32 %v458_v13, %v451_v2  ;;  %v4652_v2 = vld [vmem:[#allocation13] sm:$0xf]  ;;  %v6492_v13 = vld [vmem:[#allocation13 + $0x104] sm:$0xf] }
 0x160   :  { %v427_v26 = vpop.f32.mrf.mxu2  ;;  %933 = vmatpush.bf16.msra.mxu3 %v4669_v48  ;;  %959 = vmatpush.bf16.msrb.mxu1 %v4673_v58  ;;  %v4653_v4 = vor.u32 %v6462_v3, %v4652_v2  ;;  %v4869_v58 = vor.u32 %v6515_v50, %v4868_v49  ;;  %v4852_v2 = vld [vmem:[#allocation13 + $0x188] sm:$0xf]  ;;  %v6511_v3 = vld [vmem:[#allocation13 + $0x194] sm:$0xf0] }
 0x161   :  { %v7539_v32 = vmul.f32 %v7536_v16, %v434_v20  ;;  %v457_v33 = vadd.f32 %v456_v21, %v455_v11  ;;  %v438_v34 = vadd.f32 %v437_v22, %v436_v12  ;;  %v460_v35 = vrot.slane %v459_v23, 2  ;;  %v4654_v12 = vld [vmem:[#allocation13 + $0x10] sm:$0xf0]  ;;  %972 = vmatpush.bf16.msrb.mxu2 %v4801_v1  ;;  %v4900_v21 = vld [vmem:[#allocation13 + $0x1e8] sm:$0xf] }
 0x162   :  { %v4781_v11 = vor.u32 %v6494_v6, %v4780_v5  ;;  %v4657_v14 = vor.u32 %v6460_v7, %v4654_v12  ;;  %v4785_v20 = vor.u32 %v6492_v13, %v4782_v15  ;;  %v6523_v22 = vld [vmem:[#allocation13 + $0x1f4] sm:$0xf0]  ;;  %v4774_v26 = vld [vmem:[#allocation13 + $0xf8] sm:$0xf0]  ;;  %v4873_v1 = vor.u32 %v6513_v56, %v4870_v57  ;;  %v6509_v6 = vld [vmem:[#allocation13 + $0x18c] sm:$0xf] }
 0x163   :  { %v464_v41 = vmul.f32 %v457_v33, %v7536_v16  ;;  %v466_v42 = vmul.f32 %v7539_v32, %v7539_v32  ;;  %v439_v43 = vrot.slane %v438_v34, 1  ;;  %v461_v44 = vadd.f32 %v460_v35, %v459_v23  ;;  %v6489_v23 = vld [vmem:[#allocation13 + $0xec] sm:$0xf]  ;;  %v4756_v33 = vld [vmem:[#allocation13 + $0xc8] sm:$0xf] }
 0x164   :  { %934 = vmatpush.bf16.msra.mxu3 %v4653_v4  ;;  %947 = vmatpush.bf16.msrb.mxu0 %v4781_v11  ;;  %v4901_v25 = vor.u32 %v6523_v22, %v4900_v21  ;;  %v4777_v31 = vor.u32 %v6489_v23, %v4774_v26  ;;  %v6477_v4 = vld [vmem:[#allocation13 + $0x8c] sm:$0xf]  ;;  %v4726_v5 = vld [vmem:[#allocation13 + $0x98] sm:$0xf0]  ;;  %v4853_v11 = vor.u32 %v6511_v3, %v4852_v2  ;;  %v4836_v21 = vld [vmem:[#allocation13 + $0x168] sm:$0xf] }
 0x165   :  { %v468_v51 = vsub.f32 %v464_v41, %v466_v42  ;;  %v440_v52 = vadd.f32 %v439_v43, %v438_v34  ;;  %v462_v53 = vrot.slane %v461_v44, 1  ;;  %960 = vmatpush.bf16.msrb.mxu1 %v4657_v14  ;;  %v6487_v34 = vld [vmem:[#allocation13 + $0xd4] sm:$0xf0]  ;;  %973 = vmatpush.bf16.msrb.mxu2 %v4785_v20  ;;  %v4758_v41 = vld [vmem:[#allocation13 + $0xd8] sm:$0xf0]  ;;  %v4729_v12 = vor.u32 %v6477_v4, %v4726_v5 }
 0x166   :  { %v4757_v35 = vor.u32 %v6487_v34, %v4756_v33  ;;  %v6517_v42 = vld [vmem:[#allocation13 + $0x1cc] sm:$0xf]  ;;  %v4761_v43 = vor.u32 %v6485_v38, %v4758_v41  ;;  %v4854_v7 = vld [vmem:[#allocation13 + $0x198] sm:$0xf0]  ;;  %v4709_v20 = vor.u32 %v6475_v18, %v4708_v17  ;;  %v6507_v22 = vld [vmem:[#allocation13 + $0x174] sm:$0xf0] }
 0x167   :  { %v470_v62 = vmax.f32 %v468_v51, 0.0  ;;  %v7545_v63 = vmul.f32 %v7536_v16, %v440_v52  ;;  %v463_v0 = vadd.f32 %v462_v53, %v461_v44  ;;  %v4886_v44 = vld [vmem:[#allocation13 + $0x1d8] sm:$0xf0]  ;;  %v6481_v51 = vld [vmem:[#allocation13 + $0xac] sm:$0xf]  ;;  %v4741_v53 = vor.u32 %v6483_v46, %v4740_v45 }
 0x168   :  { %979 = vmatpush.bf16.msrb.mxu3 %v4773_v24  ;;  %992 = vmatpush.bf16.msra.mxu0 %v4901_v25  ;;  %v4889_v48 = vor.u32 %v6517_v42, %v4886_v44  ;;  %v4745_v59 = vor.u32 %v6481_v51, %v4742_v55  ;;  %v4857_v15 = vor.u32 %v6509_v6, %v4854_v7  ;;  %v6473_v23 = vld [vmem:[#allocation13 + $0x6c] sm:$0xf]  ;;  %v4710_v25 = vld [vmem:[#allocation13 + $0x78] sm:$0xf0]  ;;  %v4692_v33 = vld [vmem:[#allocation13 + $0x48] sm:$0xf] }
 0x169   :  { %v7547_v8 = vadd.f32 0.8, %v470_v62  ;;  %v465_v9 = vmul.f32 %v463_v0, %v7536_v16  ;;  %v467_v10 = vmul.f32 %v7545_v63, %v7545_v63  ;;  %1005 = vmatpush.bf16.msra.mxu1 %v4777_v31  ;;  %1018 = vmatpush.bf16.msra.mxu2 %v4905_v61  ;;  %v6479_v62 = vld [vmem:[#allocation13 + $0x94] sm:$0xf0]  ;;  %v4837_v24 = vor.u32 %v6507_v22, %v4836_v21  ;;  %v6505_v26 = vld [vmem:[#allocation13 + $0x16c] sm:$0xf] }
 0x16a   :  { %v4713_v31 = vor.u32 %v6473_v23, %v4710_v25  ;;  %v4841_v61 = vor.u32 %v6505_v26, %v4838_v28  ;;  %v6471_v34 = vld [vmem:[#allocation13 + $0x54] sm:$0xf0]  ;;  %v4694_v42 = vld [vmem:[#allocation13 + $0x58] sm:$0xf0]  ;;  %v6465_v55 = vld [vmem:[#allocation13 + $0x2c] sm:$0xf] }
 0x16b   :  { %6935 = vrsqrt.f32 %v7547_v8  ;;  %v469_v19 = vsub.f32 %v465_v9, %v467_v10  ;;  %v4725_v9 = vor.u32 %v6479_v62, %v4724_v60  ;;  %v4693_v41 = vor.u32 %v6471_v34, %v4692_v33  ;;  %v4822_v46 = vld [vmem:[#allocation13 + $0x158] sm:$0xf0]  ;;  %v6497_v57 = vld [vmem:[#allocation13 + $0x12c] sm:$0xf]  ;;  %v6463_v4 = vld [vmem:[#allocation13 + $0x14] sm:$0xf0] }
 0x16c   :  { %980 = vmatpush.bf16.msrb.mxu3 %v4757_v35  ;;  %993 = vmatpush.bf16.msra.mxu0 %v4885_v40  ;;  %v4820_v35 = vld [vmem:[#allocation13 + $0x148] sm:$0xf]  ;;  %v4697_v45 = vor.u32 %v6469_v37, %v4694_v42  ;;  %v4678_v56 = vld [vmem:[#allocation13 + $0x38] sm:$0xf0]  ;;  %vm481_vm7 = vweird.f32 %v7547_v8  ;;  %v6495_v7 = vld [vmem:[#allocation13 + $0x114] sm:$0xf0] }
 0x16d   :  { %v471_v30 = vmax.f32 %v469_v19, 0.0  ;;  %1006 = vmatpush.bf16.msra.mxu1 %v4761_v43  ;;  %1019 = vmatpush.bf16.msra.mxu2 %v4889_v48  ;;  %v6501_v43 = vld [vmem:[#allocation13 + $0x14c] sm:$0xf]  ;;  %v4821_v44 = vor.u32 %v6503_v36, %v4820_v35  ;;  %v6467_v48 = vld [vmem:[#allocation13 + $0x34] sm:$0xf0]  ;;  %v4681_v3 = vor.u32 %v6465_v55, %v4678_v56 }
 0x16e   :  { %v4825_v51 = vor.u32 %v6501_v43, %v4822_v46  ;;  %v4788_v5 = vld [vmem:[#allocation13 + $0x108] sm:$0xf]  ;;  %v502_v22 = vld [vmem:[#allocation11] sm:$0x3]  ;;  %v6584_v40 = vld [vmem:[#allocation19 + $0x1dc] sm:$0xf0] }
 0x16f   :  { %v7553_v39 = vadd.f32 0.8, %v471_v30  ;;  %v4789_v17 = vor.u32 %v6495_v7, %v4788_v5  ;;  %v6712_v46 = vld [vmem:[#allocation19 + $0x5dc] sm:$0xf0] }
 0x170   :  { %981 = vmatpush.bf16.msrb.mxu3 %v4741_v53  ;;  %994 = vmatpush.bf16.msra.mxu0 %v4869_v58  ;;  %v6499_v53 = vld [vmem:[#allocation13 + $0x134] sm:$0xf0]  ;;  %v4806_v58 = vld [vmem:[#allocation13 + $0x138] sm:$0xf0]  ;;  %v5100_v55 = vld [vmem:[#allocation19 + $0x180] sm:$0xf] }
 0x171   :  { %v7555_v47 = vpop.eup %6935  ;;  %6937 = vrsqrt.f32 %v7553_v39  ;;  %1007 = vmatpush.bf16.msra.mxu1 %v4745_v59  ;;  %1020 = vmatpush.bf16.msra.mxu2 %v4873_v1  ;;  %vm491_vm4 = vweird.f32 %v7553_v39  ;;  %v472_v59 = vld [vmem:[#allocation10] sm:$0x3]  ;;  %v4809_v6 = vor.u32 %v6497_v57, %v4806_v58  ;;  %v6576_v56 = vld [vmem:[#allocation19 + $0x19c] sm:$0xf0] }
 0x172   :  { %v476_v52 = vmul.f32 %v7555_v47, %v7547_v8  ;;  %vm482_vm6 = vweird.f32 %v7555_v47  ;;  %v5356_v57 = vld [vmem:[#allocation19 + $0x380] sm:$0xf]  ;;  %v5101_v58 = vor.u32 %v6576_v56, %v5100_v55 }
 0x173   :  { %vm483_vm9 = vmor %vm481_vm7, %vm482_vm6  ;;  %v6768_v5 = vld [vmem:[#allocation19 + $0x79c] sm:$0xf0] }
 0x174   :  { %v477_v0 = vmul.f32 %v7555_v47, %v476_v52  ;;  %982 = vmatpush.bf16.msrb.mxu3 %v4725_v9  ;;  %995 = vmatpush.bf16.msra.mxu0 %v4853_v11  ;;  %v4804_v52 = vld [vmem:[#allocation13 + $0x128] sm:$0xf]  ;;  %v6461_v9 = vld [vmem:[#allocation13 + $0xc] sm:$0xf] }
 0x175   :  { %1008 = vmatpush.bf16.msra.mxu1 %v4729_v12  ;;  %1021 = vmatpush.bf16.msra.mxu2 %v4857_v15  ;;  %v4805_v2 = vor.u32 %v6499_v53, %v4804_v52  ;;  %v6493_v12 = vld [vmem:[#allocation13 + $0x10c] sm:$0xf] }
 0x176   :  { %v478_v13 = vmul.f32 0.5, %v477_v0  ;;  %v4660_v0 = vld [vmem:[#allocation13 + $0x8] sm:$0xf]  ;;  %v6552_v55 = vld [vmem:[#allocation19 + $0xdc] sm:$0xf0] }
 0x177   :  { %v7561_v10 = vpop.eup %6937  ;;  %v4661_v15 = vor.u32 %v6463_v4, %v4660_v0  ;;  %v5868_v4 = vld [vmem:[#allocation19 + $0x780] sm:$0xf] }
 0x178   :  { %v486_v14 = vmul.f32 %v7561_v10, %v7553_v39  ;;  %vm492_vm3 = vweird.f32 %v7561_v10  ;;  %v479_v29 = vsub.f32 1.5, %v478_v13  ;;  %983 = vmatpush.bf16.msrb.mxu3 %v4709_v20  ;;  %996 = vmatpush.bf16.msra.mxu0 %v4837_v24  ;;  %v4676_v39 = vld [vmem:[#allocation13 + $0x28] sm:$0xf]  ;;  %v4790_v13 = vld [vmem:[#allocation13 + $0x118] sm:$0xf0]  ;;  %v5869_v7 = vor.u32 %v6768_v5, %v5868_v4 }
 0x179   :  { %vm7570_vm5 = vmor %vm491_vm4, %vm492_vm3  ;;  %1009 = vmatpush.bf16.msra.mxu1 %v4713_v31  ;;  %1022 = vmatpush.bf16.msra.mxu2 %v4841_v61  ;;  %v4677_v62 = vor.u32 %v6467_v48, %v4676_v39  ;;  %v5516_v4 = vld [vmem:[#allocation19 + $0x4c0] sm:$0xf] }
 0x17a   :  { %v487_v19 = vmul.f32 %v7561_v10, %v486_v14  ;;  %v480_v49 = vmul.f32 %v7555_v47, %v479_v29  ;;  %v6680_v5 = vld [vmem:[#allocation19 + $0x4dc] sm:$0xf0] }
 0x17c   :  { %v488_v30 = vmul.f32 0.5, %v487_v19  ;;  %984 = vmatpush.bf16.msrb.mxu3 %v4693_v41  ;;  %997 = vmatpush.bf16.msra.mxu0 %v4821_v44  ;;  %v484_v8 = vsel %vm483_vm9, %v7555_v47, %v480_v49  ;;  %v4793_v47 = vor.u32 %v6493_v12, %v4790_v13  ;;  %v5388_v41 = vld [vmem:[#allocation19 + $0x3c0] sm:$0xf]  ;;  %vm1156_vm9 = vcmask 1042434  }
 0x17d   :  { %1010 = vmatpush.bf16.msra.mxu1 %v4697_v45  ;;  %1023 = vmatpush.bf16.msra.mxu2 %v4825_v51  ;;  %v6648_v44 = vld [vmem:[#allocation19 + $0x3dc] sm:$0xf0] }
 0x17e   :  { %v489_v38 = vsub.f32 1.5, %v488_v30  ;;  %v5644_v45 = vld [vmem:[#allocation19 + $0x5c0] sm:$0xf]  ;;  %v5389_v48 = vor.u32 %v6648_v44, %v5388_v41 }
 0x17f   :  { %v5645_v49 = vor.u32 %v6712_v46, %v5644_v45  ;;  %v6776_v51 = vld [vmem:[#allocation19 + $0x7dc] sm:$0xf0] }
 0x180   :  { %v490_v50 = vmul.f32 %v7561_v10, %v489_v38  ;;  %985 = vmatpush.bf16.msrb.mxu3 %v4677_v62  ;;  %998 = vmatpush.bf16.msra.mxu0 %v4805_v2  ;;  %v5132_v38 = vld [vmem:[#allocation19 + $0x1c0] sm:$0xf] }
 0x181   :  { %1011 = vmatpush.bf16.msra.mxu1 %v4681_v3  ;;  %1024 = vmatpush.bf16.msra.mxu2 %v4809_v6  ;;  %v5133_v43 = vor.u32 %v6584_v40, %v5132_v38  ;;  %v6704_v62 = vld [vmem:[#allocation19 + $0x59c] sm:$0xf0] }
 0x182   :  { %v494_v60 = vsel %vm7570_vm5, %v7561_v10, %v490_v50  ;;  %v4662_v10 = vld [vmem:[#allocation13 + $0x18] sm:$0xf0]  ;;  %v5900_v50 = vld [vmem:[#allocation19 + $0x7c0] sm:$0xf] }
 0x183   :  { %v497_v1 = vrot.slane %v494_v60, 7  ;;  %v4665_v18 = vor.u32 %v6461_v9, %v4662_v10  ;;  %v5901_v53 = vor.u32 %v6776_v51, %v5900_v50  ;;  %v5612_v60 = vld [vmem:[#allocation19 + $0x580] sm:$0xf] }
 0x184   :  { %986 = vmatpush.bf16.msrb.mxu3 %v4661_v15  ;;  %999 = vmatpush.bf16.msra.mxu0 %v4789_v17  ;;  %v5613_v3 = vor.u32 %v6704_v62, %v5612_v60  ;;  %v6568_v12 = vld [vmem:[#allocation19 + $0x15c] sm:$0xf0] }
 0x185   :  { %v499_v11 = vsel %vm498_vm8, %v484_v8, %v497_v1  ;;  %1012 = vmatpush.bf16.msra.mxu1 %v4665_v18  ;;  %1025 = vmatpush.bf16.msra.mxu2 %v4793_v47  ;;  %v5324_v13 = vld [vmem:[#allocation19 + $0x340] sm:$0xf] }
 0x186   :  { %v501_v14 = vmul.f32 %v499_v11, %v472_v59  ;;  %v6640_v59 = vld [vmem:[#allocation19 + $0x39c] sm:$0xf0] }
 0x187   :  { %v5357_v2 = vor.u32 %v6640_v59, %v5356_v57  ;;  %v5068_v11 = vld [vmem:[#allocation19 + $0x140] sm:$0xf] }
 0x188   :  { %v504_v19 = vperm.slane %v501_v14, 0  ;;  %v505_v20 = vperm.slane %v501_v14, 1  ;;  %v5069_v17 = vor.u32 %v6568_v12, %v5068_v11  ;;  %v6632_v18 = vld [vmem:[#allocation19 + $0x35c] sm:$0xf0] }
 0x189   :  { %v5548_v41 = vld [vmem:[#allocation19 + $0x500] sm:$0xf] }
 0x18a   :  { %v509_v21 = vmul.f32 %v505_v20, %v7545_v63  ;;  %v508_v23 = vmul.f32 %v504_v19, %v7539_v32  ;;  %v517_v28 = vmul.f32 %v505_v20, %v7525_v54  ;;  %v516_v30 = vmul.f32 %v504_v19, %v7518_v27  ;;  %v7590_v27 = vld [vmem:[#allocation14] sm:$0xf]  ;;  %v5580_v19 = vld [vmem:[#allocation19 + $0x540] sm:$0xf] }
 0x18b   :  { %v600_v39 = vperm.slane %v7590_v27, 1  ;;  %v599_v52 = vperm.slane %v7590_v27, 0  ;;  %v6696_v20 = vld [vmem:[#allocation19 + $0x55c] sm:$0xf0] }
 0x18c   :  { %v512_v24 = vrot.slane %v509_v21, 7  ;;  %v5260_v60 = vld [vmem:[#allocation19 + $0x2c0] sm:$0xf] }
 0x18d   :  { %v6616_v62 = vld [vmem:[#allocation19 + $0x2dc] sm:$0xf0] }
 0x18e   :  { %v513_v25 = vsel %vm498_vm8, %v508_v23, %v512_v24  ;;  %v5581_v23 = vor.u32 %v6696_v20, %v5580_v19  ;;  %v5836_v24 = vld [vmem:[#allocation19 + $0x740] sm:$0xf] }
 0x18f   :  { %v515_v26 = vsub.f32 %v502_v22, %v513_v25  ;;  %v5325_v22 = vor.u32 %v6632_v18, %v5324_v13  ;;  %v6760_v25 = vld [vmem:[#allocation19 + $0x75c] sm:$0xf0] }
 0x190   :  { %v5772_v11 = vld [vmem:[#allocation19 + $0x6c0] sm:$0xf] }
 0x191   :  { %v520_v29 = vperm.slane %v515_v26, 1  ;;  %v519_v31 = vperm.slane %v515_v26, 0  ;;  %v6744_v12 = vld [vmem:[#allocation19 + $0x6dc] sm:$0xf0] }
 0x192   :  { %v4972_v18 = vld [vmem:[#allocation19 + $0x80] sm:$0xf] }
 0x193   :  { %v524_v61 = vadd.f32 %v520_v29, %v517_v28  ;;  %v523_v33 = vadd.f32 %v519_v31, %v516_v30  ;;  %v5837_v29 = vor.u32 %v6760_v25, %v5836_v24  ;;  %v6544_v19 = vld [vmem:[#allocation19 + $0x9c] sm:$0xf0] }
 0x195   :  { %vm525_vm10 = vcmp.ge.f32.partialorder %v523_v33, 0.0  ;;  %v527_v63 = vmul.f32 0.2, %v523_v33  ;;  %vm526_vm11 = vcmp.ge.f32.partialorder %v524_v61, 0.0  ;;  %v528_v34 = vmul.f32 0.2, %v524_v61 }
 0x197   :  { %v529_v35 = vsel %vm525_vm10, %v523_v33, %v527_v63  ;;  %v530_v36 = vsel %vm526_vm11, %v524_v61, %v528_v34  ;;  %v5036_v61 = vld [vmem:[#allocation19 + $0x100] sm:$0xf]  ;;  %vm1158_vm10 = vcmask 1041408  }
 0x198   :  { %v531_v32 = vpack.c.bf16 %v529_v35, %v529_v35  ;;  %v532_v37 = vpack.c.bf16 %v530_v36, %v530_v36  ;;  %v6560_v33 = vld [vmem:[#allocation19 + $0x11c] sm:$0xf0] }
 0x199   :  { %v5037_v35 = vor.u32 %v6560_v33, %v5036_v61  ;;  %v5292_v36 = vld [vmem:[#allocation19 + $0x300] sm:$0xf] }
 0x19a   :  { %935 = vmatmul.bf16.vlgmr.msra.gmra.mxu3 %v531_v32  ;;  %948 = vmatmul.bf16.vlgmr.msrb.gmra.mxu0 %v532_v37 }
 0x19b   :  { %961 = vmatmul.bf16.vlgmr.msrb.gmra.mxu1 %v531_v32  ;;  %974 = vmatmul.bf16.vlgmr.msrb.gmra.mxu2 %v532_v37 }
 0x19c   :  { %2775 = vmatpush.bf16.msra.mxu3 %v5133_v43  ;;  %2788 = vmatpush.bf16.msrb.mxu0 %v5389_v48  ;;  %v6752_v48 = vld [vmem:[#allocation19 + $0x71c] sm:$0xf0] }
 0x19d   :  { %2801 = vmatpush.bf16.msrb.mxu1 %v5645_v49  ;;  %2814 = vmatpush.bf16.msrb.mxu2 %v5901_v53  ;;  %v5004_v53 = vld [vmem:[#allocation19 + $0xc0] sm:$0xf] }
 0x19e   :  { %v5005_v59 = vor.u32 %v6552_v55, %v5004_v53 }
 0x1a0   :  { %2776 = vmatpush.bf16.msra.mxu3 %v5101_v58  ;;  %2789 = vmatpush.bf16.msrb.mxu0 %v5357_v2  ;;  %v602_v2 = vperm.slane %v7590_v27, 3 }
 0x1a1   :  { %2802 = vmatpush.bf16.msrb.mxu1 %v5613_v3  ;;  %2815 = vmatpush.bf16.msrb.mxu2 %v5869_v7  ;;  %v5261_v3 = vor.u32 %v6616_v62, %v5260_v60  ;;  %v601_v7 = vperm.slane %v7590_v27, 2 }
 0x1a4   :  { %2777 = vmatpush.bf16.msra.mxu3 %v5069_v17  ;;  %2790 = vmatpush.bf16.msrb.mxu0 %v5325_v22  ;;  %v5773_v17 = vor.u32 %v6744_v12, %v5772_v11  ;;  %v5228_v22 = vld [vmem:[#allocation19 + $0x280] sm:$0xf] }
 0x1a5   :  { %2803 = vmatpush.bf16.msrb.mxu1 %v5581_v23  ;;  %2816 = vmatpush.bf16.msrb.mxu2 %v5837_v29  ;;  %v6608_v23 = vld [vmem:[#allocation19 + $0x29c] sm:$0xf0] }
 0x1a6   :  { %v5484_v29 = vld [vmem:[#allocation19 + $0x480] sm:$0xf] }
 0x1a7   :  { %v5164_v12 = vld [vmem:[#allocation19 + $0x200] sm:$0xf] }
 0x1a8   :  { %2778 = vmatpush.bf16.msra.mxu3 %v5037_v35 }
 0x1aa   :  { %987 = vmatmul.bf16.vlgmr.msrb.gmra.mxu3 %v531_v32  ;;  %1000 = vmatmul.bf16.vlgmr.msra.gmra.mxu0 %v532_v37 }
 0x1ab   :  { %1013 = vmatmul.bf16.vlgmr.msra.gmra.mxu1 %v531_v32  ;;  %1026 = vmatmul.bf16.vlgmr.msra.gmra.mxu2 %v532_v37  ;;  %v6624_v32 = vld [vmem:[#allocation19 + $0x31c] sm:$0xf0] }
 0x1ac   :  { %v5293_v40 = vor.u32 %v6624_v32, %v5292_v36  ;;  %2779 = vmatpush.bf16.msra.mxu3 %v5005_v59  ;;  %v6736_v36 = vld [vmem:[#allocation19 + $0x69c] sm:$0xf0] }
 0x1ad   :  { %v6728_v59 = vld [vmem:[#allocation19 + $0x65c] sm:$0xf0] }
 0x1ae   :  { %2791 = vmatpush.bf16.msrb.mxu0 %v5293_v40 }
 0x1b2   :  { %2792 = vmatpush.bf16.msrb.mxu0 %v5261_v3 }
 0x217   :  { %v949_v54 = vpop.f32.mrf.mxu0 }
 0x218   :  { %v962_v42 = vpop.f32.mrf.mxu1 }
 0x219   :  { %v963_v0 = vadd.f32 %v962_v42, %v600_v39  ;;  %v6688_v42 = vld [vmem:[#allocation19 + $0x51c] sm:$0xf0] }
 0x21a   :  { %v5549_v46 = vor.u32 %v6688_v42, %v5548_v41  ;;  %v5804_v39 = vld [vmem:[#allocation19 + $0x700] sm:$0xf] }
 0x21b   :  { %v4940_v41 = vld [vmem:[#allocation19 + $0x40] sm:$0xf] }
 0x21c   :  { %2804 = vmatpush.bf16.msrb.mxu1 %v5549_v46  ;;  %v6536_v42 = vld [vmem:[#allocation19 + $0x5c] sm:$0xf0] }
 0x21d   :  { %v936_v1 = vpop.f32.mrf.mxu3 }
 0x21e   :  { %v937_v8 = vadd.f32 %v936_v1, %v599_v52  ;;  %v975_v6 = vpop.f32.mrf.mxu2  ;;  %v5805_v52 = vor.u32 %v6752_v48, %v5804_v39  ;;  %v4941_v48 = vor.u32 %v6536_v42, %v4940_v41 }
 0x21f   :  { %v7594_v9 = vadd.f32 %v975_v6, %v963_v0  ;;  %v951_v10 = vpop.f32.mrf.mxu0 }
 0x220   :  { %v7596_v14 = vadd.f32 %v949_v54, %v937_v8  ;;  %v964_v15 = vpop.f32.mrf.mxu1  ;;  %2817 = vmatpush.bf16.msrb.mxu2 %v5805_v52  ;;  %v5517_v10 = vor.u32 %v6680_v5, %v5516_v4  ;;  %v6664_v52 = vld [vmem:[#allocation19 + $0x45c] sm:$0xf0] }
 0x221   :  { %v1037_v47 = vrot.slane %v7594_v9, 4  ;;  %v1060_v21 = vmul.f32 %v7594_v9, %v7594_v9  ;;  %v4908_v5 = vld [vmem:[#allocation19] sm:$0xf] }
 0x222   :  { %v1031_v26 = vrot.slane %v7596_v14, 4  ;;  %v1059_v28 = vmul.f32 %v7596_v14, %v7596_v14  ;;  %2805 = vmatpush.bf16.msrb.mxu1 %v5517_v10 }
 0x223   :  { %v1038_v30 = vadd.f32 %v1037_v47, %v7594_v9  ;;  %v1069_v31 = vrot.slane %v1060_v21, 4 }
 0x224   :  { %v1032_v63 = vadd.f32 %v1031_v26, %v7596_v14  ;;  %v1063_v34 = vrot.slane %v1059_v28, 4  ;;  %2818 = vmatpush.bf16.msrb.mxu2 %v5773_v17 }
 0x225   :  { %v1039_v37 = vrot.slane %v1038_v30, 2  ;;  %v1070_v54 = vadd.f32 %v1069_v31, %v1060_v21  ;;  %v938_v38 = vpop.f32.mrf.mxu3  ;;  %v4973_v21 = vor.u32 %v6544_v19, %v4972_v18  ;;  %v5740_v31 = vld [vmem:[#allocation19 + $0x680] sm:$0xf] }
 0x226   :  { %v1033_v43 = vrot.slane %v1032_v63, 2  ;;  %v1064_v44 = vadd.f32 %v1063_v34, %v1059_v28  ;;  %v977_v45 = vpop.f32.mrf.mxu2  ;;  %v5229_v28 = vor.u32 %v6608_v23, %v5228_v22  ;;  %v5741_v40 = vor.u32 %v6736_v36, %v5740_v31 }
 0x227   :  { %v1040_v49 = vadd.f32 %v1039_v37, %v1038_v30  ;;  %v1071_v50 = vrot.slane %v1070_v54, 2  ;;  %v7606_v51 = vpop.f32.mrf.mxu0  ;;  %v6672_v30 = vld [vmem:[#allocation19 + $0x49c] sm:$0xf0]  ;;  %2780 = vmatpush.bf16.msra.mxu3 %v4973_v21 }
 0x228   :  { %v1034_v56 = vadd.f32 %v1033_v43, %v1032_v63  ;;  %v1065_v57 = vrot.slane %v1064_v44, 2  ;;  %v1014_v58 = vpop.f32.mrf.mxu1  ;;  %v5485_v35 = vor.u32 %v6672_v30, %v5484_v29  ;;  %2793 = vmatpush.bf16.msrb.mxu0 %v5229_v28  ;;  %v5196_v43 = vld [vmem:[#allocation19 + $0x240] sm:$0xf]  ;;  %2819 = vmatpush.bf16.msrb.mxu2 %v5741_v40 }
 0x229   :  { %v1041_v0 = vrot.slane %v1040_v49, 1  ;;  %v1072_v1 = vadd.f32 %v1071_v50, %v1070_v54  ;;  %v1015_v25 = vadd.f32 %v1014_v58, %v602_v2  ;;  %v5452_v50 = vld [vmem:[#allocation19 + $0x440] sm:$0xf] }
 0x22a   :  { %v1035_v8 = vrot.slane %v1034_v56, 1  ;;  %v1066_v6 = vadd.f32 %v1065_v57, %v1064_v44  ;;  %2806 = vmatpush.bf16.msrb.mxu1 %v5485_v35  ;;  %v5708_v58 = vld [vmem:[#allocation19 + $0x640] sm:$0xf] }
 0x22b   :  { %v1042_v13 = vadd.f32 %v1041_v0, %v1040_v49  ;;  %v1073_v15 = vrot.slane %v1072_v1, 1  ;;  %v6600_v49 = vld [vmem:[#allocation19 + $0x25c] sm:$0xf0]  ;;  %2781 = vmatpush.bf16.msra.mxu3 %v4941_v48  ;;  %v5453_v0 = vor.u32 %v6664_v52, %v5452_v50  ;;  %v5709_v4 = vor.u32 %v6728_v59, %v5708_v58  ;;  %v6772_v50 = vld [vmem:[#allocation19 + $0x7c4] sm:$0xf] }
 0x22c   :  { %v1036_v20 = vadd.f32 %v1035_v8, %v1034_v56  ;;  %v1067_v47 = vrot.slane %v1066_v6, 1  ;;  %v5197_v57 = vor.u32 %v6600_v49, %v5196_v43  ;;  %v6528_v8 = vld [vmem:[#allocation19 + $0x1c] sm:$0xf0]  ;;  %v5390_v43 = vld [vmem:[#allocation19 + $0x3e0] sm:$0xf0] }
 0x22d   :  { %v7611_v24 = vmul.f32 %v1042_v13, %v7536_v16  ;;  %v1074_v27 = vadd.f32 %v1073_v15, %v1072_v1  ;;  %v988_v26 = vpop.f32.mrf.mxu3  ;;  %v4909_v11 = vor.u32 %v6528_v8, %v4908_v5  ;;  %v6592_v13 = vld [vmem:[#allocation19 + $0x21c] sm:$0xf0]  ;;  %2820 = vmatpush.bf16.msrb.mxu2 %v5709_v4  ;;  %v5646_v49 = vld [vmem:[#allocation19 + $0x5e0] sm:$0xf0] }
 0x22e   :  { %v7614_v61 = vmul.f32 %v1036_v20, %v7536_v16  ;;  %v1068_v33 = vadd.f32 %v1067_v47, %v1066_v6  ;;  %v989_v63 = vadd.f32 %v988_v26, %v601_v7  ;;  %v1027_v34 = vpop.f32.mrf.mxu2  ;;  %2794 = vmatpush.bf16.msrb.mxu0 %v5197_v57  ;;  %2807 = vmatpush.bf16.msrb.mxu1 %v5453_v0  ;;  %v6656_v28 = vld [vmem:[#allocation19 + $0x41c] sm:$0xf0]  ;;  %v6700_v4 = vld [vmem:[#allocation19 + $0x584] sm:$0xf] }
 0x22f   :  { %v1088_v32 = vmul.f32 %v1074_v27, %v7536_v16  ;;  %v1092_v37 = vmul.f32 %v7611_v24, %v7611_v24  ;;  %v7619_v54 = vadd.f32 %v1027_v34, %v1015_v25  ;;  %v1003_v38 = vpop.f32.mrf.mxu0  ;;  %v5165_v20 = vor.u32 %v6592_v13, %v5164_v12  ;;  %2782 = vmatpush.bf16.msra.mxu3 %v4909_v11  ;;  %v5420_v27 = vld [vmem:[#allocation19 + $0x400] sm:$0xf]  ;;  %v5614_v5 = vld [vmem:[#allocation19 + $0x5a0] sm:$0xf0] }
 0x230   :  { %v1087_v44 = vmul.f32 %v1068_v33, %v7536_v16  ;;  %v1091_v45 = vmul.f32 %v7614_v61, %v7614_v61  ;;  %v7625_v46 = vadd.f32 %v7606_v51, %v989_v63  ;;  %v1016_v39 = vpop.f32.mrf.mxu1  ;;  %v5676_v29 = vld [vmem:[#allocation19 + $0x600] sm:$0xf]  ;;  %v6580_v63 = vld [vmem:[#allocation19 + $0x1c4] sm:$0xf]  ;;  %v5421_v36 = vor.u32 %v6656_v28, %v5420_v27 }
 0x231   :  { %v1096_v53 = vsub.f32 %v1088_v32, %v1092_v37  ;;  %v1049_v55 = vrot.slane %v7619_v54, 4  ;;  %v1062_v56 = vmul.f32 %v7619_v54, %v7619_v54  ;;  %v6720_v33 = vld [vmem:[#allocation19 + $0x61c] sm:$0xf0]  ;;  %v5134_v37 = vld [vmem:[#allocation19 + $0x1e0] sm:$0xf0] }
 0x232   :  { %v1095_v60 = vsub.f32 %v1087_v44, %v1091_v45  ;;  %v1043_v51 = vrot.slane %v7625_v46, 4  ;;  %v1061_v62 = vmul.f32 %v7625_v46, %v7625_v46  ;;  %2795 = vmatpush.bf16.msrb.mxu0 %v5165_v20  ;;  %v5677_v32 = vor.u32 %v6720_v33, %v5676_v29  ;;  %v6644_v38 = vld [vmem:[#allocation19 + $0x3c4] sm:$0xf]  ;;  %2808 = vmatpush.bf16.msrb.mxu1 %v5421_v36 }
 0x233   :  { %v1100_v1 = vmax.f32 %v1096_v53, 0.0  ;;  %v1050_v2 = vadd.f32 %v1049_v55, %v7619_v54  ;;  %v1081_v3 = vrot.slane %v1062_v56, 4  ;;  %v5137_v42 = vor.u32 %v6580_v63, %v5134_v37  ;;  %v6708_v44 = vld [vmem:[#allocation19 + $0x5c4] sm:$0xf] }
 0x234   :  { %v1099_v6 = vmax.f32 %v1095_v60, 0.0  ;;  %v1044_v7 = vadd.f32 %v1043_v51, %v7625_v46  ;;  %v1075_v10 = vrot.slane %v1061_v62, 4  ;;  %2821 = vmatpush.bf16.msrb.mxu2 %v5677_v32  ;;  %v5393_v48 = vor.u32 %v6644_v38, %v5390_v43  ;;  %v6572_v60 = vld [vmem:[#allocation19 + $0x184] sm:$0xf] }
 0x235   :  { %v7635_v15 = vadd.f32 0.8, %v1100_v1  ;;  %v1051_v17 = vrot.slane %v1050_v2, 2  ;;  %v1082_v18 = vadd.f32 %v1081_v3, %v1062_v56  ;;  %v990_v19 = vpop.f32.mrf.mxu3  ;;  %2827 = vmatpush.bf16.msrb.mxu3 %v5137_v42  ;;  %v5649_v55 = vor.u32 %v6708_v44, %v5646_v49  ;;  %v5902_v56 = vld [vmem:[#allocation19 + $0x7e0] sm:$0xf0] }
 0x236   :  { %v7637_v47 = vadd.f32 0.8, %v1099_v6  ;;  %v1045_v21 = vrot.slane %v1044_v7, 2  ;;  %v1076_v22 = vadd.f32 %v1075_v10, %v1061_v62  ;;  %v1029_v23 = vpop.f32.mrf.mxu2  ;;  %2840 = vmatpush.bf16.msra.mxu0 %v5393_v48  ;;  %v5905_v59 = vor.u32 %v6772_v50, %v5902_v56  ;;  %v5102_v51 = vld [vmem:[#allocation19 + $0x1a0] sm:$0xf0] }
 0x237   :  { %v1052_v25 = vadd.f32 %v1051_v17, %v1050_v2  ;;  %v1083_v26 = vrot.slane %v1082_v18, 2  ;;  %6939 = vrsqrt.f32 %v7635_v15  ;;  %v6636_v62 = vld [vmem:[#allocation19 + $0x384] sm:$0xf]  ;;  %2853 = vmatpush.bf16.msra.mxu1 %v5649_v55  ;;  %v5105_v13 = vor.u32 %v6572_v60, %v5102_v51 }
 0x238   :  { %v1046_v30 = vadd.f32 %v1045_v21, %v1044_v7  ;;  %v1077_v31 = vrot.slane %v1076_v22, 2  ;;  %6941 = vrsqrt.f32 %v7637_v47  ;;  %v5358_v3 = vld [vmem:[#allocation19 + $0x3a0] sm:$0xf0]  ;;  %2866 = vmatpush.bf16.msra.mxu2 %v5905_v59  ;;  %vm1124_vm13 = vweird.f32 %v7635_v15 }
 0x239   :  { %v1053_v34 = vrot.slane %v1052_v25, 1  ;;  %v1084_v35 = vadd.f32 %v1083_v26, %v1082_v18  ;;  %v6764_v7 = vld [vmem:[#allocation19 + $0x784] sm:$0xf]  ;;  %v5361_v21 = vor.u32 %v6636_v62, %v5358_v3  ;;  %2828 = vmatpush.bf16.msrb.mxu3 %v5105_v13  ;;  %vm1114_vm15 = vweird.f32 %v7637_v47 }
 0x23a   :  { %v1047_v40 = vrot.slane %v1046_v30, 1  ;;  %v1078_v41 = vadd.f32 %v1077_v31, %v1076_v22  ;;  %v5870_v10 = vld [vmem:[#allocation19 + $0x7a0] sm:$0xf0]  ;;  %v5617_v22 = vor.u32 %v6700_v4, %v5614_v5 }
 0x23b   :  { %v1054_v45 = vadd.f32 %v1053_v34, %v1052_v25  ;;  %v1085_v39 = vrot.slane %v1084_v35, 1  ;;  %v6564_v17 = vld [vmem:[#allocation19 + $0x144] sm:$0xf]  ;;  %v5873_v29 = vor.u32 %v6764_v7, %v5870_v10  ;;  %2841 = vmatpush.bf16.msra.mxu0 %v5361_v21 }
 0x23c   :  { %v1048_v52 = vadd.f32 %v1047_v40, %v1046_v30  ;;  %v1079_v53 = vrot.slane %v1078_v41, 1  ;;  %v5070_v18 = vld [vmem:[#allocation19 + $0x160] sm:$0xf0]  ;;  %2854 = vmatpush.bf16.msra.mxu1 %v5617_v22 }
 0x23d   :  { %v7642_v57 = vmul.f32 %v1054_v45, %v7536_v16  ;;  %v1086_v58 = vadd.f32 %v1085_v39, %v1084_v35  ;;  %v7644_v0 = vpop.eup %6939  ;;  %v6628_v23 = vld [vmem:[#allocation19 + $0x344] sm:$0xf]  ;;  %v5073_v30 = vor.u32 %v6564_v17, %v5070_v18  ;;  %2867 = vmatpush.bf16.msra.mxu2 %v5873_v29 }
 0x23e   :  { %v7647_v1 = vmul.f32 %v1048_v52, %v7536_v16  ;;  %v1080_v2 = vadd.f32 %v1079_v53, %v1078_v41  ;;  %v1119_v19 = vmul.f32 %v7644_v0, %v7635_v15  ;;  %v5326_v27 = vld [vmem:[#allocation19 + $0x360] sm:$0xf0]  ;;  %v7657_v26 = vpop.eup %6941  ;;  %vm1125_vm12 = vweird.f32 %v7644_v0 }
 0x23f   :  { %v1090_v8 = vmul.f32 %v1086_v58, %v7536_v16  ;;  %v1094_v6 = vmul.f32 %v7642_v57, %v7642_v57  ;;  %v6692_v25 = vld [vmem:[#allocation19 + $0x544] sm:$0xf]  ;;  %v5329_v34 = vor.u32 %v6628_v23, %v5326_v27  ;;  %v1109_v42 = vmul.f32 %v7657_v26, %v7637_v47  ;;  %2829 = vmatpush.bf16.msrb.mxu3 %v5073_v30  ;;  %vm7688_vm0 = vmor %vm1124_vm13, %vm1125_vm12 }
 0x240   :  { %v1089_v11 = vmul.f32 %v1080_v2, %v7536_v16  ;;  %v1093_v12 = vmul.f32 %v7647_v1, %v7647_v1  ;;  %v5582_v31 = vld [vmem:[#allocation19 + $0x560] sm:$0xf0]  ;;  %v1120_v43 = vmul.f32 %v7644_v0, %v1119_v19  ;;  %vm1115_vm14 = vweird.f32 %v7657_v26 }
 0x241   :  { %v1098_v20 = vsub.f32 %v1090_v8, %v1094_v6  ;;  %v6756_v33 = vld [vmem:[#allocation19 + $0x744] sm:$0xf]  ;;  %v5585_v35 = vor.u32 %v6692_v25, %v5582_v31  ;;  %2842 = vmatpush.bf16.msra.mxu0 %v5329_v34  ;;  %v1110_v2 = vmul.f32 %v7657_v26, %v1109_v42  ;;  %vm7700_vm3 = vmor %vm1114_vm15, %vm1115_vm14 }
 0x242   :  { %v1097_v28 = vsub.f32 %v1089_v11, %v1093_v12  ;;  %v5838_v36 = vld [vmem:[#allocation19 + $0x760] sm:$0xf0]  ;;  %v1121_v3 = vmul.f32 0.5, %v1120_v43 }
 0x243   :  { %v1102_v63 = vmax.f32 %v1098_v20, 0.0  ;;  %v6556_v32 = vld [vmem:[#allocation19 + $0x104] sm:$0xf]  ;;  %v5841_v38 = vor.u32 %v6756_v33, %v5838_v36  ;;  %2855 = vmatpush.bf16.msra.mxu1 %v5585_v35  ;;  %v1111_v23 = vmul.f32 0.5, %v1110_v2  ;;  %v6649_v2 = vld [vmem:[#allocation19 + $0x3e4] sm:$0xf0] }
 0x244   :  { %v1101_v37 = vmax.f32 %v1097_v28, 0.0  ;;  %v5038_v40 = vld [vmem:[#allocation19 + $0x120] sm:$0xf0]  ;;  %v1122_v27 = vsub.f32 1.5, %v1121_v3 }
 0x245   :  { %v6620_v41 = vld [vmem:[#allocation19 + $0x304] sm:$0xf]  ;;  %v7662_v44 = vadd.f32 0.8, %v1102_v63  ;;  %v5041_v48 = vor.u32 %v6556_v32, %v5038_v40  ;;  %2868 = vmatpush.bf16.msra.mxu2 %v5841_v38  ;;  %v1112_v43 = vsub.f32 1.5, %v1111_v23 }
 0x246   :  { %v5294_v45 = vld [vmem:[#allocation19 + $0x320] sm:$0xf0]  ;;  %v7664_v39 = vadd.f32 0.8, %v1101_v37 }
 0x247   :  { %v6684_v49 = vld [vmem:[#allocation19 + $0x504] sm:$0xf]  ;;  %6943 = vrsqrt.f32 %v7662_v44  ;;  %v5297_v52 = vor.u32 %v6620_v41, %v5294_v45  ;;  %2830 = vmatpush.bf16.msrb.mxu3 %v5041_v48  ;;  %v1123_v45 = vmul.f32 %v7644_v0, %v1122_v27  ;;  %v1113_v47 = vmul.f32 %v7657_v26, %v1112_v43 }
 0x248   :  { %v5550_v50 = vld [vmem:[#allocation19 + $0x520] sm:$0xf0]  ;;  %6945 = vrsqrt.f32 %v7664_v39  ;;  %vm1144_vm4 = vweird.f32 %v7662_v44  ;;  %vm1134_vm5 = vweird.f32 %v7664_v39 }
 0x249   :  { %v5553_v53 = vor.u32 %v6684_v49, %v5550_v50  ;;  %v6748_v55 = vld [vmem:[#allocation19 + $0x704] sm:$0xf]  ;;  %2843 = vmatpush.bf16.msra.mxu0 %v5297_v52  ;;  %v1127_v15 = vsel %vm7688_vm0, %v7644_v0, %v1123_v45 }
 0x24a   :  { %v5806_v56 = vld [vmem:[#allocation19 + $0x720] sm:$0xf0] }
 0x24b   :  { %v6548_v58 = vld [vmem:[#allocation19 + $0xc4] sm:$0xf]  ;;  %v5809_v59 = vor.u32 %v6748_v55, %v5806_v56  ;;  %2856 = vmatpush.bf16.msra.mxu1 %v5553_v53 }
 0x24c   :  { %v5006_v60 = vld [vmem:[#allocation19 + $0xe0] sm:$0xf0] }
 0x24d   :  { %v6612_v51 = vld [vmem:[#allocation19 + $0x2c4] sm:$0xf]  ;;  %v5009_v8 = vor.u32 %v6548_v58, %v5006_v60  ;;  %2869 = vmatpush.bf16.msra.mxu2 %v5809_v59  ;;  %v7669_v22 = vpop.eup %6943 }
 0x24e   :  { %v5262_v62 = vld [vmem:[#allocation19 + $0x2e0] sm:$0xf0]  ;;  %v7671_v29 = vpop.eup %6945  ;;  %v1139_v30 = vmul.f32 %v7669_v22, %v7662_v44  ;;  %vm1145_vm1 = vweird.f32 %v7669_v22 }
 0x24f   :  { %v6676_v4 = vld [vmem:[#allocation19 + $0x4c4] sm:$0xf]  ;;  %v5265_v10 = vor.u32 %v6612_v51, %v5262_v62  ;;  %2831 = vmatpush.bf16.msrb.mxu3 %v5009_v8  ;;  %v1129_v33 = vmul.f32 %v7671_v29, %v7664_v39  ;;  %vm1135_vm2 = vweird.f32 %v7671_v29  ;;  %vm1146_vm6 = vmor %vm1144_vm4, %vm1145_vm1  ;;  %v1117_v39 = vsel %vm7700_vm3, %v7657_v26, %v1113_v47 }
 0x250   :  { %v5518_v5 = vld [vmem:[#allocation19 + $0x4e0] sm:$0xf0]  ;;  %v1140_v37 = vmul.f32 %v7669_v22, %v1139_v30  ;;  %vm1136_vm7 = vmor %vm1134_vm5, %vm1135_vm2 }
 0x251   :  { %v6740_v6 = vld [vmem:[#allocation19 + $0x6c4] sm:$0xf]  ;;  %v5521_v11 = vor.u32 %v6676_v4, %v5518_v5  ;;  %2844 = vmatpush.bf16.msra.mxu0 %v5265_v10  ;;  %v1130_v48 = vmul.f32 %v7671_v29, %v1129_v33 }
 0x252   :  { %v5774_v7 = vld [vmem:[#allocation19 + $0x6e0] sm:$0xf0]  ;;  %v1141_v52 = vmul.f32 0.5, %v1140_v37 }
 0x253   :  { %v6540_v12 = vld [vmem:[#allocation19 + $0x84] sm:$0xf]  ;;  %v5777_v18 = vor.u32 %v6740_v6, %v5774_v7  ;;  %2857 = vmatpush.bf16.msra.mxu1 %v5521_v11  ;;  %v1131_v58 = vmul.f32 0.5, %v1130_v48 }
 0x254   :  { %v4974_v13 = vld [vmem:[#allocation19 + $0xa0] sm:$0xf0]  ;;  %v1142_v3 = vsub.f32 1.5, %v1141_v52 }
 0x255   :  { %v6604_v17 = vld [vmem:[#allocation19 + $0x284] sm:$0xf]  ;;  %v4977_v31 = vor.u32 %v6540_v12, %v4974_v13  ;;  %2870 = vmatpush.bf16.msra.mxu2 %v5777_v18  ;;  %v1132_v6 = vsub.f32 1.5, %v1131_v58 }
 0x256   :  { %v5230_v19 = vld [vmem:[#allocation19 + $0x2a0] sm:$0xf0]  ;;  %v1143_v12 = vmul.f32 %v7669_v22, %v1142_v3  ;;  %v5652_v3 = vld [vmem:[#allocation19 + $0x5c8] sm:$0xf] }
 0x257   :  { %v6668_v20 = vld [vmem:[#allocation19 + $0x484] sm:$0xf]  ;;  %v5233_v63 = vor.u32 %v6604_v17, %v5230_v19  ;;  %2832 = vmatpush.bf16.msrb.mxu3 %v4977_v31  ;;  %v1133_v17 = vmul.f32 %v7671_v29, %v1132_v6 }
 0x258   :  { %v5486_v21 = vld [vmem:[#allocation19 + $0x4a0] sm:$0xf0]  ;;  %v1147_v19 = vsel %vm1146_vm6, %v7669_v22, %v1143_v12 }
 0x259   :  { %v6732_v25 = vld [vmem:[#allocation19 + $0x684] sm:$0xf]  ;;  %v5489_v34 = vor.u32 %v6668_v20, %v5486_v21  ;;  %2845 = vmatpush.bf16.msra.mxu0 %v5233_v63  ;;  %v1152_v20 = vrot.slane %v1127_v15, 7  ;;  %v1137_v21 = vsel %vm1136_vm7, %v7671_v29, %v1133_v17  ;;  %v1154_v27 = vrot.slane %v1147_v19, 5  ;;  %v5108_v17 = vld [vmem:[#allocation19 + $0x188] sm:$0xf] }
 0x25a   :  { %v5742_v28 = vld [vmem:[#allocation19 + $0x6a0] sm:$0xf0]  ;;  %v1153_v23 = vrot.slane %v1137_v21, 6  ;;  %v6641_v21 = vld [vmem:[#allocation19 + $0x3a4] sm:$0xf0] }
 0x25b   :  { %v6532_v35 = vld [vmem:[#allocation19 + $0x44] sm:$0xf]  ;;  %v5745_v38 = vor.u32 %v6732_v25, %v5742_v28  ;;  %2858 = vmatpush.bf16.msra.mxu1 %v5489_v34  ;;  %v1103_v25 = vld [vmem:[#allocation16] sm:$0xf]  ;;  %v1155_v28 = vsel %vm498_vm8, %v1117_v39, %v1152_v20  ;;  %v5364_v39 = vld [vmem:[#allocation19 + $0x388] sm:$0xf] }
 0x25c   :  { %v4942_v36 = vld [vmem:[#allocation19 + $0x60] sm:$0xf0]  ;;  %v1157_v22 = vsel %vm1156_vm9, %v1153_v23, %v1154_v27  ;;  %v5620_v23 = vld [vmem:[#allocation19 + $0x588] sm:$0xf] }
 0x25d   :  { %v6596_v32 = vld [vmem:[#allocation19 + $0x244] sm:$0xf]  ;;  %v4945_v53 = vor.u32 %v6532_v35, %v4942_v36  ;;  %2871 = vmatpush.bf16.msra.mxu2 %v5745_v38  ;;  %v1159_v30 = vsel %vm1158_vm10, %v1155_v28, %v1157_v22  ;;  %v6705_v27 = vld [vmem:[#allocation19 + $0x5a4] sm:$0xf0] }
 0x25e   :  { %v5198_v40 = vld [vmem:[#allocation19 + $0x260] sm:$0xf0]  ;;  %v1161_v31 = vmul.f32 %v1159_v30, %v1103_v25  ;;  %v5876_v25 = vld [vmem:[#allocation19 + $0x788] sm:$0xf]  ;;  %v5365_v30 = vor.u32 %v6641_v21, %v5364_v39 }
 0x25f   :  { %v6660_v41 = vld [vmem:[#allocation19 + $0x444] sm:$0xf]  ;;  %v5201_v59 = vor.u32 %v6596_v32, %v5198_v40  ;;  %2833 = vmatpush.bf16.msrb.mxu3 %v4945_v53  ;;  %v6769_v28 = vld [vmem:[#allocation19 + $0x7a4] sm:$0xf0] }
 0x260   :  { %v5454_v42 = vld [vmem:[#allocation19 + $0x460] sm:$0xf0]  ;;  %v1164_v33 = vperm.slane %v1161_v31, 0  ;;  %v1165_v26 = vperm.slane %v1161_v31, 1  ;;  %v1166_v63 = vperm.slane %v1161_v31, 2  ;;  %v1167_v29 = vperm.slane %v1161_v31, 3 }
 0x261   :  { %v6724_v49 = vld [vmem:[#allocation19 + $0x644] sm:$0xf]  ;;  %v5457_v60 = vor.u32 %v6660_v41, %v5454_v42  ;;  %2846 = vmatpush.bf16.msra.mxu0 %v5201_v59  ;;  %v1162_v41 = vld [vmem:[#allocation17] sm:$0xf]  ;;  %v5076_v31 = vld [vmem:[#allocation19 + $0x148] sm:$0xf] }
 0x262   :  { %v5710_v50 = vld [vmem:[#allocation19 + $0x660] sm:$0xf0]  ;;  %v1173_v34 = vmul.f32 %v1165_v26, %v7611_v24  ;;  %v1174_v35 = vmul.f32 %v1166_v63, %v7647_v1  ;;  %v1175_v36 = vmul.f32 %v1167_v29, %v7642_v57  ;;  %v1172_v32 = vmul.f32 %v1164_v33, %v7614_v61  ;;  %v5204_v21 = vld [vmem:[#allocation19 + $0x248] sm:$0xf] }
 0x263   :  { %v6524_v55 = vld [vmem:[#allocation19 + $0x4] sm:$0xf]  ;;  %v5713_v4 = vor.u32 %v6724_v49, %v5710_v50  ;;  %2859 = vmatpush.bf16.msra.mxu1 %v5457_v60  ;;  %v1188_v49 = vmul.f32 %v1164_v33, %v7596_v14  ;;  %v1189_v24 = vmul.f32 %v1165_v26, %v7594_v9  ;;  %v1190_v1 = vmul.f32 %v1166_v63, %v7625_v46  ;;  %v6713_v14 = vld [vmem:[#allocation19 + $0x5e4] sm:$0xf0] }
 0x264   :  { %v4910_v56 = vld [vmem:[#allocation19 + $0x20] sm:$0xf0]  ;;  %v1180_v37 = vrot.slane %v1173_v34, 7  ;;  %v1181_v38 = vrot.slane %v1174_v35, 6  ;;  %v1182_v40 = vrot.slane %v1175_v36, 5  ;;  %v1191_v57 = vmul.f32 %v1167_v29, %v7619_v54 }
 0x265   :  { %v6588_v51 = vld [vmem:[#allocation19 + $0x204] sm:$0xf]  ;;  %v4913_v13 = vor.u32 %v6524_v55, %v4910_v56  ;;  %2872 = vmatpush.bf16.msra.mxu2 %v5713_v4  ;;  %v5140_v55 = vld [vmem:[#allocation19 + $0x1c8] sm:$0xf]  ;;  %v5653_v20 = vor.u32 %v6713_v14, %v5652_v3  ;;  %v5621_v26 = vor.u32 %v6705_v27, %v5620_v23  ;;  %v5877_v63 = vor.u32 %v6769_v28, %v5876_v25 }
 0x266   :  { %v5166_v62 = vld [vmem:[#allocation19 + $0x220] sm:$0xf0]  ;;  %v1183_v42 = vsel %vm498_vm8, %v1172_v32, %v1180_v37  ;;  %v1184_v43 = vsel %vm1156_vm9, %v1181_v38, %v1182_v40  ;;  %v5908_v4 = vld [vmem:[#allocation19 + $0x7c8] sm:$0xf] }
 0x267   :  { %v6652_v5 = vld [vmem:[#allocation19 + $0x404] sm:$0xf]  ;;  %v5169_v0 = vor.u32 %v6588_v51, %v5166_v62  ;;  %2834 = vmatpush.bf16.msrb.mxu3 %v4913_v13  ;;  %v1185_v45 = vsel %vm1158_vm10, %v1183_v42, %v1184_v43  ;;  %v6585_v51 = vld [vmem:[#allocation19 + $0x1e4] sm:$0xf0] }
 0x268   :  { %v5422_v8 = vld [vmem:[#allocation19 + $0x420] sm:$0xf0]  ;;  %v1187_v48 = vsub.f32 %v1162_v41, %v1185_v45  ;;  %v5396_v62 = vld [vmem:[#allocation19 + $0x3c8] sm:$0xf]  ;;  %v5141_v15 = vor.u32 %v6585_v51, %v5140_v55 }
 0x269   :  { %v6716_v7 = vld [vmem:[#allocation19 + $0x604] sm:$0xf]  ;;  %v5425_v18 = vor.u32 %v6652_v5, %v5422_v8  ;;  %2847 = vmatpush.bf16.msra.mxu0 %v5169_v0  ;;  %v6777_v9 = vld [vmem:[#allocation19 + $0x7e4] sm:$0xf0] }
 0x26a   :  { %v5678_v10 = vld [vmem:[#allocation19 + $0x620] sm:$0xf0]  ;;  %v1193_v61 = vperm.slane %v1187_v48, 0  ;;  %v1194_v50 = vperm.slane %v1187_v48, 1  ;;  %v1195_v52 = vperm.slane %v1187_v48, 2  ;;  %v1196_v53 = vperm.slane %v1187_v48, 3 }
 0x26b   :  { %v5681_v44 = vor.u32 %v6716_v7, %v5678_v10  ;;  %2860 = vmatpush.bf16.msra.mxu1 %v5425_v18  ;;  %v5397_v7 = vor.u32 %v6649_v2, %v5396_v62  ;;  %v6577_v0 = vld [vmem:[#allocation19 + $0x1a4] sm:$0xf0] }
 0x26c   :  { %v1201_v56 = vadd.f32 %v1193_v61, %v1188_v49  ;;  %v1202_v58 = vadd.f32 %v1194_v50, %v1189_v24  ;;  %v1203_v59 = vadd.f32 %v1195_v52, %v1190_v1  ;;  %v1204_v60 = vadd.f32 %v1196_v53, %v1191_v57  ;;  %v6569_v33 = vld [vmem:[#allocation19 + $0x164] sm:$0xf0] }
 0x26d   :  { %2873 = vmatpush.bf16.msra.mxu2 %v5681_v44  ;;  %v5909_v44 = vor.u32 %v6777_v9, %v5908_v4  ;;  %v5109_v22 = vor.u32 %v6577_v0, %v5108_v17  ;;  %v5332_v29 = vld [vmem:[#allocation19 + $0x348] sm:$0xf]  ;;  %v5077_v38 = vor.u32 %v6569_v33, %v5076_v31 }
 0x26e   :  { %vm1207_vm11 = vcmp.ge.f32.partialorder %v1203_v59, 0.0  ;;  %vm1208_vm12 = vcmp.ge.f32.partialorder %v1204_v60, 0.0  ;;  %v1209_v46 = vmul.f32 0.2, %v1201_v56  ;;  %v1210_v54 = vmul.f32 0.2, %v1202_v58 }
 0x26f   :  { %v1211_v5 = vmul.f32 0.2, %v1203_v59  ;;  %v1212_v8 = vmul.f32 0.2, %v1204_v60  ;;  %vm1205_vm13 = vcmp.ge.f32.partialorder %v1201_v56, 0.0  ;;  %vm1206_vm14 = vcmp.ge.f32.partialorder %v1202_v58, 0.0 }
 0x270   :  { %v1213_v6 = vsel %vm1205_vm13, %v1201_v56, %v1209_v46  ;;  %v1214_v47 = vsel %vm1206_vm14, %v1202_v58, %v1210_v54  ;;  %v6633_v34 = vld [vmem:[#allocation19 + $0x364] sm:$0xf0] }
 0x271   :  { %v1216_v10 = vsel %vm1208_vm12, %v1204_v60, %v1212_v8  ;;  %v7731_v11 = vpack.c.bf16 %v1213_v6, %v1213_v6  ;;  %v7733_v12 = vpack.c.bf16 %v1214_v47, %v1214_v47  ;;  %v1215_v13 = vsel %vm1207_vm11, %v1203_v59, %v1211_v5  ;;  %v5588_v35 = vld [vmem:[#allocation19 + $0x548] sm:$0xf] }
 0x272   :  { %v7735_v18 = vpack.c.bf16 %v1216_v10, %v1216_v10  ;;  %v7737_v19 = vpack.c.bf16 %v1215_v13, %v1215_v13  ;;  %v6697_v36 = vld [vmem:[#allocation19 + $0x564] sm:$0xf0]  ;;  %v5333_v40 = vor.u32 %v6633_v34, %v5332_v29 }
 0x273   :  { %2783 = vmatmul.bf16.vlgmr.msra.gmra.mxu3 %v7731_v11  ;;  %2796 = vmatmul.bf16.vlgmr.msrb.gmra.mxu0 %v7733_v12  ;;  %v5844_v32 = vld [vmem:[#allocation19 + $0x748] sm:$0xf]  ;;  %v5589_v43 = vor.u32 %v6697_v36, %v5588_v35 }
 0x274   :  { %2809 = vmatmul.bf16.vlgmr.msrb.gmra.mxu1 %v7737_v19  ;;  %2822 = vmatmul.bf16.vlgmr.msrb.gmra.mxu2 %v7735_v18  ;;  %v6761_v37 = vld [vmem:[#allocation19 + $0x764] sm:$0xf0] }
 0x275   :  { %2879 = vmatpush.bf16.msra.mxu3 %v5141_v15  ;;  %2892 = vmatpush.bf16.msrb.mxu0 %v5397_v7  ;;  %v5044_v41 = vld [vmem:[#allocation19 + $0x108] sm:$0xf]  ;;  %v5845_v45 = vor.u32 %v6761_v37, %v5844_v32 }
 0x276   :  { %2905 = vmatpush.bf16.msrb.mxu1 %v5653_v20  ;;  %2918 = vmatpush.bf16.msrb.mxu2 %v5909_v44  ;;  %v6561_v42 = vld [vmem:[#allocation19 + $0x124] sm:$0xf0] }
 0x277   :  { %v5300_v48 = vld [vmem:[#allocation19 + $0x308] sm:$0xf]  ;;  %v5045_v50 = vor.u32 %v6561_v42, %v5044_v41  ;;  %v5142_v41 = vld [vmem:[#allocation19 + $0x1e8] sm:$0xf0] }
 0x278   :  { %v6625_v49 = vld [vmem:[#allocation19 + $0x324] sm:$0xf0]  ;;  %v6645_v42 = vld [vmem:[#allocation19 + $0x3cc] sm:$0xf] }
 0x279   :  { %2880 = vmatpush.bf16.msra.mxu3 %v5109_v22  ;;  %2893 = vmatpush.bf16.msrb.mxu0 %v5365_v30  ;;  %v5556_v24 = vld [vmem:[#allocation19 + $0x508] sm:$0xf]  ;;  %v5301_v52 = vor.u32 %v6625_v49, %v5300_v48 }
 0x27a   :  { %2906 = vmatpush.bf16.msrb.mxu1 %v5621_v26  ;;  %2919 = vmatpush.bf16.msrb.mxu2 %v5877_v63  ;;  %v6689_v1 = vld [vmem:[#allocation19 + $0x524] sm:$0xf0] }
 0x27b   :  { %v5812_v57 = vld [vmem:[#allocation19 + $0x708] sm:$0xf]  ;;  %v5557_v56 = vor.u32 %v6689_v1, %v5556_v24  ;;  %v5654_v24 = vld [vmem:[#allocation19 + $0x5e8] sm:$0xf0] }
 0x27c   :  { %v6753_v61 = vld [vmem:[#allocation19 + $0x724] sm:$0xf0]  ;;  %v6773_v1 = vld [vmem:[#allocation19 + $0x7cc] sm:$0xf] }
 0x27d   :  { %2881 = vmatpush.bf16.msra.mxu3 %v5077_v38  ;;  %2894 = vmatpush.bf16.msrb.mxu0 %v5333_v40  ;;  %v5012_v53 = vld [vmem:[#allocation19 + $0xc8] sm:$0xf]  ;;  %v5813_v58 = vor.u32 %v6753_v61, %v5812_v57  ;;  %v6581_v40 = vld [vmem:[#allocation19 + $0x1cc] sm:$0xf] }
 0x27e   :  { %v6553_v55 = vld [vmem:[#allocation19 + $0xe4] sm:$0xf0]  ;;  %2907 = vmatpush.bf16.msrb.mxu1 %v5589_v43  ;;  %2920 = vmatpush.bf16.msrb.mxu2 %v5845_v45  ;;  %v5398_v43 = vld [vmem:[#allocation19 + $0x3e8] sm:$0xf0] }
 0x27f   :  { %v5268_v59 = vld [vmem:[#allocation19 + $0x2c8] sm:$0xf]  ;;  %v5013_v14 = vor.u32 %v6553_v55, %v5012_v53  ;;  %v6709_v45 = vld [vmem:[#allocation19 + $0x5cc] sm:$0xf]  ;;  %v5401_v53 = vor.u32 %v6645_v42, %v5398_v43 }
 0x280   :  { %v6617_v60 = vld [vmem:[#allocation19 + $0x2e4] sm:$0xf0]  ;;  %v5910_v57 = vld [vmem:[#allocation19 + $0x7e8] sm:$0xf0] }
 0x281   :  { %v5524_v51 = vld [vmem:[#allocation19 + $0x4c8] sm:$0xf]  ;;  %2882 = vmatpush.bf16.msra.mxu3 %v5045_v50  ;;  %2895 = vmatpush.bf16.msrb.mxu0 %v5301_v52  ;;  %v5269_v4 = vor.u32 %v6617_v60, %v5268_v59  ;;  %v5145_v52 = vor.u32 %v6581_v40, %v5142_v41  ;;  %v6573_v55 = vld [vmem:[#allocation19 + $0x18c] sm:$0xf]  ;;  %v5913_v59 = vor.u32 %v6773_v1, %v5910_v57 }
 0x282   :  { %v6681_v62 = vld [vmem:[#allocation19 + $0x4e4] sm:$0xf0]  ;;  %2908 = vmatpush.bf16.msrb.mxu1 %v5557_v56  ;;  %2921 = vmatpush.bf16.msrb.mxu2 %v5813_v58  ;;  %v5110_v56 = vld [vmem:[#allocation19 + $0x1a8] sm:$0xf0]  ;;  %v5657_v58 = vor.u32 %v6709_v45, %v5654_v24 }
 0x283   :  { %v5780_v2 = vld [vmem:[#allocation19 + $0x6c8] sm:$0xf]  ;;  %v5525_v54 = vor.u32 %v6681_v62, %v5524_v51  ;;  %2835 = vmatmul.bf16.vlgmr.msrb.gmra.mxu3 %v7731_v11  ;;  %2848 = vmatmul.bf16.vlgmr.msra.gmra.mxu0 %v7733_v12  ;;  %v6637_v60 = vld [vmem:[#allocation19 + $0x38c] sm:$0xf] }
 0x284   :  { %v6745_v3 = vld [vmem:[#allocation19 + $0x6e4] sm:$0xf0]  ;;  %2861 = vmatmul.bf16.vlgmr.msra.gmra.mxu1 %v7737_v19  ;;  %2874 = vmatmul.bf16.vlgmr.msra.gmra.mxu2 %v7735_v18  ;;  %v5366_v51 = vld [vmem:[#allocation19 + $0x3a8] sm:$0xf0] }
 0x285   :  { %v4980_v9 = vld [vmem:[#allocation19 + $0x88] sm:$0xf]  ;;  %v5781_v5 = vor.u32 %v6745_v3, %v5780_v2  ;;  %2883 = vmatpush.bf16.msra.mxu3 %v5013_v14  ;;  %2896 = vmatpush.bf16.msrb.mxu0 %v5269_v4  ;;  %v6701_v62 = vld [vmem:[#allocation19 + $0x58c] sm:$0xf]  ;;  %v5113_v4 = vor.u32 %v6573_v55, %v5110_v56 }
 0x286   :  { %v6545_v46 = vld [vmem:[#allocation19 + $0xa4] sm:$0xf0]  ;;  %2909 = vmatpush.bf16.msrb.mxu1 %v5525_v54  ;;  %v5622_v2 = vld [vmem:[#allocation19 + $0x5a8] sm:$0xf0] }
 0x287   :  { %v5236_v8 = vld [vmem:[#allocation19 + $0x288] sm:$0xf]  ;;  %v4981_v13 = vor.u32 %v6545_v46, %v4980_v9  ;;  %2922 = vmatpush.bf16.msrb.mxu2 %v5781_v5  ;;  %v6765_v3 = vld [vmem:[#allocation19 + $0x78c] sm:$0xf]  ;;  %v5369_v9 = vor.u32 %v6637_v60, %v5366_v51  ;;  %v5625_v5 = vor.u32 %v6701_v62, %v5622_v2 }
 0x288   :  { %v6609_v6 = vld [vmem:[#allocation19 + $0x2a4] sm:$0xf0]  ;;  %v5878_v14 = vld [vmem:[#allocation19 + $0x7a8] sm:$0xf0] }
 0x289   :  { %v5492_v47 = vld [vmem:[#allocation19 + $0x488] sm:$0xf]  ;;  %v5237_v17 = vor.u32 %v6609_v6, %v5236_v8  ;;  %2884 = vmatpush.bf16.msra.mxu3 %v4981_v13  ;;  %v6565_v46 = vld [vmem:[#allocation19 + $0x14c] sm:$0xf]  ;;  %v5881_v8 = vor.u32 %v6765_v3, %v5878_v14 }
 0x28a   :  { %v6673_v15 = vld [vmem:[#allocation19 + $0x4a4] sm:$0xf0]  ;;  %v5078_v54 = vld [vmem:[#allocation19 + $0x168] sm:$0xf0] }
 0x28b   :  { %v5748_v7 = vld [vmem:[#allocation19 + $0x688] sm:$0xf]  ;;  %v5493_v44 = vor.u32 %v6673_v15, %v5492_v47  ;;  %2897 = vmatpush.bf16.msrb.mxu0 %v5237_v17  ;;  %v6629_v6 = vld [vmem:[#allocation19 + $0x34c] sm:$0xf]  ;;  %v5081_v17 = vor.u32 %v6565_v46, %v5078_v54 }
 0x28c   :  { %v6737_v10 = vld [vmem:[#allocation19 + $0x6a4] sm:$0xf0]  ;;  %v5334_v47 = vld [vmem:[#allocation19 + $0x368] sm:$0xf0] }
 0x28d   :  { %v4948_v0 = vld [vmem:[#allocation19 + $0x48] sm:$0xf]  ;;  %v5749_v39 = vor.u32 %v6737_v10, %v5748_v7  ;;  %2910 = vmatpush.bf16.msrb.mxu1 %v5493_v44  ;;  %v6693_v15 = vld [vmem:[#allocation19 + $0x54c] sm:$0xf] }
 0x28e   :  { %v6537_v20 = vld [vmem:[#allocation19 + $0x64] sm:$0xf0]  ;;  %v5590_v7 = vld [vmem:[#allocation19 + $0x568] sm:$0xf0] }
 0x28f   :  { %v6601_v23 = vld [vmem:[#allocation19 + $0x264] sm:$0xf0]  ;;  %v4949_v31 = vor.u32 %v6537_v20, %v4948_v0  ;;  %2923 = vmatpush.bf16.msrb.mxu2 %v5749_v39  ;;  %v6757_v10 = vld [vmem:[#allocation19 + $0x74c] sm:$0xf]  ;;  %v5337_v0 = vor.u32 %v6629_v6, %v5334_v47  ;;  %v5593_v39 = vor.u32 %v6693_v15, %v5590_v7 }
 0x290   :  { %v5460_v27 = vld [vmem:[#allocation19 + $0x448] sm:$0xf]  ;;  %v5205_v33 = vor.u32 %v6601_v23, %v5204_v21  ;;  %v5846_v13 = vld [vmem:[#allocation19 + $0x768] sm:$0xf0] }
 0x291   :  { %v6665_v25 = vld [vmem:[#allocation19 + $0x464] sm:$0xf0]  ;;  %2885 = vmatpush.bf16.msra.mxu3 %v4949_v31  ;;  %v6557_v20 = vld [vmem:[#allocation19 + $0x10c] sm:$0xf]  ;;  %v5849_v21 = vor.u32 %v6757_v10, %v5846_v13 }
 0x292   :  { %v5716_v28 = vld [vmem:[#allocation19 + $0x648] sm:$0xf]  ;;  %v5461_v34 = vor.u32 %v6665_v25, %v5460_v27  ;;  %2898 = vmatpush.bf16.msrb.mxu0 %v5205_v33  ;;  %v5046_v44 = vld [vmem:[#allocation19 + $0x128] sm:$0xf0] }
 0x293   :  { %v6729_v22 = vld [vmem:[#allocation19 + $0x664] sm:$0xf0]  ;;  %v6621_v23 = vld [vmem:[#allocation19 + $0x30c] sm:$0xf]  ;;  %v5049_v31 = vor.u32 %v6557_v20, %v5046_v44  ;;  %v6586_v20 = vld [vmem:[#allocation19 + $0x1ec] sm:$0xf0] }
 0x294   :  { %v4916_v30 = vld [vmem:[#allocation19 + $0x8] sm:$0xf]  ;;  %v5717_v35 = vor.u32 %v6729_v22, %v5716_v28  ;;  %2911 = vmatpush.bf16.msrb.mxu1 %v5461_v34  ;;  %v5302_v27 = vld [vmem:[#allocation19 + $0x328] sm:$0xf0]  ;;  %v5404_v44 = vld [vmem:[#allocation19 + $0x3d0] sm:$0xf] }
 0x295   :  { %v6529_v26 = vld [vmem:[#allocation19 + $0x24] sm:$0xf0]  ;;  %v6685_v25 = vld [vmem:[#allocation19 + $0x50c] sm:$0xf]  ;;  %v5305_v33 = vor.u32 %v6621_v23, %v5302_v27 }
 0x296   :  { %v5172_v63 = vld [vmem:[#allocation19 + $0x208] sm:$0xf]  ;;  %v4917_v48 = vor.u32 %v6529_v26, %v4916_v30  ;;  %2924 = vmatpush.bf16.msrb.mxu2 %v5717_v35  ;;  %v5558_v28 = vld [vmem:[#allocation19 + $0x528] sm:$0xf0] }
 0x297   :  { %v6593_v29 = vld [vmem:[#allocation19 + $0x224] sm:$0xf0]  ;;  %v6749_v22 = vld [vmem:[#allocation19 + $0x70c] sm:$0xf] }
 0x298   :  { %v5428_v36 = vld [vmem:[#allocation19 + $0x408] sm:$0xf]  ;;  %v5173_v49 = vor.u32 %v6593_v29, %v5172_v63  ;;  %2886 = vmatpush.bf16.msra.mxu3 %v4917_v48  ;;  %v5814_v30 = vld [vmem:[#allocation19 + $0x728] sm:$0xf0]  ;;  %v5561_v29 = vor.u32 %v6685_v25, %v5558_v28  ;;  %v6714_v25 = vld [vmem:[#allocation19 + $0x5ec] sm:$0xf0] }
 0x299   :  { %v6657_v32 = vld [vmem:[#allocation19 + $0x424] sm:$0xf0]  ;;  %v6549_v26 = vld [vmem:[#allocation19 + $0xcc] sm:$0xf]  ;;  %v5817_v34 = vor.u32 %v6749_v22, %v5814_v30  ;;  %v5916_v28 = vld [vmem:[#allocation19 + $0x7d0] sm:$0xf] }
 0x29a   :  { %v5684_v37 = vld [vmem:[#allocation19 + $0x608] sm:$0xf]  ;;  %v5429_v61 = vor.u32 %v6657_v32, %v5428_v36  ;;  %2899 = vmatpush.bf16.msrb.mxu0 %v5173_v49  ;;  %v5014_v63 = vld [vmem:[#allocation19 + $0xe8] sm:$0xf0]  ;;  %v6778_v22 = vld [vmem:[#allocation19 + $0x7ec] sm:$0xf0] }
 0x29b   :  { %v6721_v38 = vld [vmem:[#allocation19 + $0x624] sm:$0xf0]  ;;  %2887 = vmatmul.bf16.vlgmr.msra.gmra.mxu3 %v7731_v11  ;;  %v6613_v35 = vld [vmem:[#allocation19 + $0x2cc] sm:$0xf]  ;;  %v5017_v41 = vor.u32 %v6549_v26, %v5014_v63  ;;  %v5116_v63 = vld [vmem:[#allocation19 + $0x190] sm:$0xf] }
 0x29c   :  { %v5685_v50 = vor.u32 %v6721_v38, %v5684_v37  ;;  %2912 = vmatpush.bf16.msrb.mxu1 %v5429_v61  ;;  %2931 = vmatpush.bf16.msrb.mxu3 %v5145_v52  ;;  %v5270_v36 = vld [vmem:[#allocation19 + $0x2e8] sm:$0xf0] }
 0x29d   :  { %2900 = vmatmul.bf16.vlgmr.msrb.gmra.mxu0 %v7733_v12  ;;  %v6677_v32 = vld [vmem:[#allocation19 + $0x4cc] sm:$0xf]  ;;  %v5273_v42 = vor.u32 %v6613_v35, %v5270_v36  ;;  %v5917_v35 = vor.u32 %v6778_v22, %v5916_v28  ;;  %v5372_v36 = vld [vmem:[#allocation19 + $0x390] sm:$0xf] }
 0x29e   :  { %2925 = vmatpush.bf16.msrb.mxu2 %v5685_v50  ;;  %2944 = vmatpush.bf16.msra.mxu0 %v5401_v53  ;;  %v5526_v37 = vld [vmem:[#allocation19 + $0x4e8] sm:$0xf0]  ;;  %v6610_v28 = vld [vmem:[#allocation19 + $0x2ac] sm:$0xf0] }
 0x29f   :  { %2913 = vmatmul.bf16.vlgmr.msrb.gmra.mxu1 %v7737_v19  ;;  %v6741_v38 = vld [vmem:[#allocation19 + $0x6cc] sm:$0xf]  ;;  %v5529_v48 = vor.u32 %v6677_v32, %v5526_v37  ;;  %v6642_v32 = vld [vmem:[#allocation19 + $0x3ac] sm:$0xf0] }
 0x2a0   :  { %2957 = vmatpush.bf16.msra.mxu1 %v5657_v58  ;;  %2932 = vmatpush.bf16.msrb.mxu3 %v5113_v4  ;;  %v5782_v40 = vld [vmem:[#allocation19 + $0x6e8] sm:$0xf0]  ;;  %v5628_v37 = vld [vmem:[#allocation19 + $0x590] sm:$0xf] }
 0x2a1   :  { %2926 = vmatmul.bf16.vlgmr.msrb.gmra.mxu2 %v7735_v18  ;;  %v6541_v43 = vld [vmem:[#allocation19 + $0x8c] sm:$0xf]  ;;  %v5785_v49 = vor.u32 %v6741_v38, %v5782_v40  ;;  %v6706_v38 = vld [vmem:[#allocation19 + $0x5ac] sm:$0xf0] }
 0x2a2   :  { %2970 = vmatpush.bf16.msra.mxu2 %v5913_v59  ;;  %2945 = vmatpush.bf16.msra.mxu0 %v5369_v9  ;;  %v4982_v45 = vld [vmem:[#allocation19 + $0xa8] sm:$0xf0]  ;;  %v5884_v40 = vld [vmem:[#allocation19 + $0x790] sm:$0xf] }
 0x2a3   :  { %v6605_v24 = vld [vmem:[#allocation19 + $0x28c] sm:$0xf]  ;;  %v4985_v53 = vor.u32 %v6541_v43, %v4982_v45  ;;  %v5373_v43 = vor.u32 %v6642_v32, %v5372_v36  ;;  %v5084_v45 = vld [vmem:[#allocation19 + $0x150] sm:$0xf] }
 0x2a4   :  { %2958 = vmatpush.bf16.msra.mxu1 %v5625_v5  ;;  %2933 = vmatpush.bf16.msrb.mxu3 %v5081_v17  ;;  %v5238_v1 = vld [vmem:[#allocation19 + $0x2a8] sm:$0xf0]  ;;  %v5500_v22 = vld [vmem:[#allocation19 + $0x490] sm:$0xf] }
 0x2a5   :  { %v6669_v57 = vld [vmem:[#allocation19 + $0x48c] sm:$0xf]  ;;  %v5241_v55 = vor.u32 %v6605_v24, %v5238_v1  ;;  %v5340_v1 = vld [vmem:[#allocation19 + $0x350] sm:$0xf] }
 0x2a6   :  { %2971 = vmatpush.bf16.msra.mxu2 %v5881_v8  ;;  %2946 = vmatpush.bf16.msra.mxu0 %v5337_v0  ;;  %v5494_v61 = vld [vmem:[#allocation19 + $0x4a8] sm:$0xf0]  ;;  %v5148_v0 = vld [vmem:[#allocation19 + $0x1d0] sm:$0xf] }
 0x2a7   :  { %v6733_v50 = vld [vmem:[#allocation19 + $0x68c] sm:$0xf]  ;;  %v5497_v59 = vor.u32 %v6669_v57, %v5494_v61  ;;  %v6634_v57 = vld [vmem:[#allocation19 + $0x36c] sm:$0xf0] }
 0x2a8   :  { %2959 = vmatpush.bf16.msra.mxu1 %v5593_v39  ;;  %2934 = vmatpush.bf16.msrb.mxu3 %v5049_v31  ;;  %v5750_v52 = vld [vmem:[#allocation19 + $0x6a8] sm:$0xf0]  ;;  %v6650_v39 = vld [vmem:[#allocation19 + $0x3ec] sm:$0xf0] }
 0x2a9   :  { %v6533_v56 = vld [vmem:[#allocation19 + $0x4c] sm:$0xf]  ;;  %v5753_v60 = vor.u32 %v6733_v50, %v5750_v52  ;;  %v5405_v26 = vor.u32 %v6650_v39, %v5404_v44  ;;  %v5596_v61 = vld [vmem:[#allocation19 + $0x550] sm:$0xf] }
 0x2aa   :  { %2972 = vmatpush.bf16.msra.mxu2 %v5849_v21  ;;  %2947 = vmatpush.bf16.msra.mxu0 %v5305_v33  ;;  %v4950_v58 = vld [vmem:[#allocation19 + $0x68] sm:$0xf0]  ;;  %v5660_v21 = vld [vmem:[#allocation19 + $0x5d0] sm:$0xf]  ;;  %v5149_v33 = vor.u32 %v6586_v20, %v5148_v0 }
 0x2ab   :  { %v6597_v51 = vld [vmem:[#allocation19 + $0x24c] sm:$0xf]  ;;  %v4953_v46 = vor.u32 %v6533_v56, %v4950_v58  ;;  %v6698_v50 = vld [vmem:[#allocation19 + $0x56c] sm:$0xf0]  ;;  %v5341_v56 = vor.u32 %v6634_v57, %v5340_v1 }
 0x2ac   :  { %2960 = vmatpush.bf16.msra.mxu1 %v5561_v29  ;;  %2935 = vmatpush.bf16.msrb.mxu3 %v5017_v41  ;;  %v5206_v62 = vld [vmem:[#allocation19 + $0x268] sm:$0xf0]  ;;  %v6578_v29 = vld [vmem:[#allocation19 + $0x1ac] sm:$0xf0] }
 0x2ad   :  { %v6661_v2 = vld [vmem:[#allocation19 + $0x44c] sm:$0xf]  ;;  %v5209_v54 = vor.u32 %v6597_v51, %v5206_v62  ;;  %v6770_v41 = vld [vmem:[#allocation19 + $0x7ac] sm:$0xf0] }
 0x2ae   :  { %2973 = vmatpush.bf16.msra.mxu2 %v5817_v34  ;;  %2948 = vmatpush.bf16.msra.mxu0 %v5273_v42  ;;  %v5462_v3 = vld [vmem:[#allocation19 + $0x468] sm:$0xf0]  ;;  %v5661_v34 = vor.u32 %v6714_v25, %v5660_v21  ;;  %v5117_v42 = vor.u32 %v6578_v29, %v5116_v63  ;;  %v5885_v24 = vor.u32 %v6770_v41, %v5884_v40  ;;  %v5852_v52 = vld [vmem:[#allocation19 + $0x750] sm:$0xf] }
 0x2af   :  { %v6725_v14 = vld [vmem:[#allocation19 + $0x64c] sm:$0xf]  ;;  %v5465_v47 = vor.u32 %v6661_v2, %v5462_v3  ;;  %v5052_v58 = vld [vmem:[#allocation19 + $0x110] sm:$0xf] }
 0x2b0   :  { %2961 = vmatpush.bf16.msra.mxu1 %v5529_v48  ;;  %v5718_v4 = vld [vmem:[#allocation19 + $0x668] sm:$0xf0]  ;;  %2936 = vmatpush.bf16.msrb.mxu3 %v4985_v53  ;;  %v6570_v48 = vld [vmem:[#allocation19 + $0x16c] sm:$0xf0] }
 0x2b1   :  { %v6525_v9 = vld [vmem:[#allocation19 + $0xc] sm:$0xf]  ;;  %v5721_v15 = vor.u32 %v6725_v14, %v5718_v4  ;;  %v6762_v53 = vld [vmem:[#allocation19 + $0x76c] sm:$0xf0] }
 0x2b2   :  { %2974 = vmatpush.bf16.msra.mxu2 %v5785_v49  ;;  %2949 = vmatpush.bf16.msra.mxu0 %v5241_v55  ;;  %v4918_v5 = vld [vmem:[#allocation19 + $0x28] sm:$0xf0]  ;;  %v5629_v49 = vor.u32 %v6706_v38, %v5628_v37  ;;  %v5085_v55 = vor.u32 %v6570_v48, %v5084_v45  ;;  %v5853_v51 = vor.u32 %v6762_v53, %v5852_v52  ;;  %v5308_v62 = vld [vmem:[#allocation19 + $0x310] sm:$0xf] }
 0x2b3   :  { %v6589_v8 = vld [vmem:[#allocation19 + $0x20c] sm:$0xf]  ;;  %v4921_v23 = vor.u32 %v6525_v9, %v4918_v5  ;;  %v6626_v2 = vld [vmem:[#allocation19 + $0x32c] sm:$0xf0] }
 0x2b4   :  { %v5174_v6 = vld [vmem:[#allocation19 + $0x228] sm:$0xf0]  ;;  %2962 = vmatpush.bf16.msra.mxu1 %v5497_v59  ;;  %2937 = vmatpush.bf16.msrb.mxu3 %v4953_v46  ;;  %v6562_v59 = vld [vmem:[#allocation19 + $0x12c] sm:$0xf0] }
 0x2b5   :  { %v6653_v7 = vld [vmem:[#allocation19 + $0x40c] sm:$0xf]  ;;  %v5177_v27 = vor.u32 %v6589_v8, %v5174_v6  ;;  %v5564_v3 = vld [vmem:[#allocation19 + $0x510] sm:$0xf]  ;;  %v5053_v46 = vor.u32 %v6562_v59, %v5052_v58  ;;  %v5150_v58 = vld [vmem:[#allocation19 + $0x1f0] sm:$0xf0] }
 0x2b6   :  { %2975 = vmatpush.bf16.msra.mxu2 %v5753_v60  ;;  %v5430_v10 = vld [vmem:[#allocation19 + $0x428] sm:$0xf0]  ;;  %2950 = vmatpush.bf16.msra.mxu0 %v5209_v54  ;;  %v5597_v60 = vor.u32 %v6698_v50, %v5596_v61  ;;  %v6690_v14 = vld [vmem:[#allocation19 + $0x52c] sm:$0xf0]  ;;  %v5309_v54 = vor.u32 %v6626_v2, %v5308_v62  ;;  %v6646_v59 = vld [vmem:[#allocation19 + $0x3d4] sm:$0xf] }
 0x2b7   :  { %v6717_v13 = vld [vmem:[#allocation19 + $0x60c] sm:$0xf]  ;;  %v5433_v30 = vor.u32 %v6653_v7, %v5430_v10  ;;  %v5820_v4 = vld [vmem:[#allocation19 + $0x710] sm:$0xf]  ;;  %v5565_v6 = vor.u32 %v6690_v14, %v5564_v3  ;;  %v5662_v3 = vld [vmem:[#allocation19 + $0x5f0] sm:$0xf0] }
 0x2b8   :  { %v5686_v17 = vld [vmem:[#allocation19 + $0x628] sm:$0xf0]  ;;  %2963 = vmatpush.bf16.msra.mxu1 %v5465_v47  ;;  %2938 = vmatpush.bf16.msrb.mxu3 %v4921_v23  ;;  %v6754_v9 = vld [vmem:[#allocation19 + $0x72c] sm:$0xf0]  ;;  %v6774_v14 = vld [vmem:[#allocation19 + $0x7d4] sm:$0xf] }
 0x2b9   :  { %v5689_v31 = vor.u32 %v6717_v13, %v5686_v17  ;;  %v5020_v5 = vld [vmem:[#allocation19 + $0xd0] sm:$0xf]  ;;  %v5821_v47 = vor.u32 %v6754_v9, %v5820_v4  ;;  %v5918_v4 = vld [vmem:[#allocation19 + $0x7f0] sm:$0xf0] }
 0x2ba   :  { %2976 = vmatpush.bf16.msra.mxu2 %v5721_v15  ;;  %2951 = vmatpush.bf16.msra.mxu0 %v5177_v27  ;;  %v6554_v8 = vld [vmem:[#allocation19 + $0xec] sm:$0xf0] }
 0x2bb   :  { %2939 = vmatmul.bf16.vlgmr.msrb.gmra.mxu3 %v7731_v11  ;;  %v5276_v15 = vld [vmem:[#allocation19 + $0x2d0] sm:$0xf]  ;;  %v5021_v20 = vor.u32 %v6554_v8, %v5020_v5  ;;  %v6574_v8 = vld [vmem:[#allocation19 + $0x194] sm:$0xf] }
 0x2bc   :  { %2964 = vmatpush.bf16.msra.mxu1 %v5433_v30  ;;  %2983 = vmatpush.bf16.msra.mxu3 %v5149_v33  ;;  %v6618_v7 = vld [vmem:[#allocation19 + $0x2ec] sm:$0xf0] }
 0x2bd   :  { %2952 = vmatmul.bf16.vlgmr.msra.gmra.mxu0 %v7733_v12  ;;  %v5532_v10 = vld [vmem:[#allocation19 + $0x4d0] sm:$0xf]  ;;  %v5277_v44 = vor.u32 %v6618_v7, %v5276_v15  ;;  %v5921_v15 = vor.u32 %v6774_v14, %v5918_v4  ;;  %v6638_v7 = vld [vmem:[#allocation19 + $0x394] sm:$0xf] }
 0x2be   :  { %2977 = vmatpush.bf16.msra.mxu2 %v5689_v31  ;;  %2996 = vmatpush.bf16.msrb.mxu0 %v5405_v26  ;;  %v6682_v13 = vld [vmem:[#allocation19 + $0x4ec] sm:$0xf0]  ;;  %v5246_v14 = vld [vmem:[#allocation19 + $0x2b0] sm:$0xf0] }
 0x2bf   :  { %2965 = vmatmul.bf16.vlgmr.msra.gmra.mxu1 %v7737_v19  ;;  %v5788_v17 = vld [vmem:[#allocation19 + $0x6d0] sm:$0xf]  ;;  %v5533_v23 = vor.u32 %v6682_v13, %v5532_v10  ;;  %v5374_v10 = vld [vmem:[#allocation19 + $0x3b0] sm:$0xf0] }
 0x2c0   :  { %3009 = vmatpush.bf16.msrb.mxu1 %v5661_v34  ;;  %2984 = vmatpush.bf16.msra.mxu3 %v5117_v42  ;;  %v6746_v0 = vld [vmem:[#allocation19 + $0x6ec] sm:$0xf0]  ;;  %v6702_v13 = vld [vmem:[#allocation19 + $0x594] sm:$0xf] }
 0x2c1   :  { %2978 = vmatmul.bf16.vlgmr.msra.gmra.mxu2 %v7735_v18  ;;  %v4988_v39 = vld [vmem:[#allocation19 + $0x90] sm:$0xf]  ;;  %v5789_v27 = vor.u32 %v6746_v0, %v5788_v17  ;;  %v5630_v17 = vld [vmem:[#allocation19 + $0x5b0] sm:$0xf0] }
 0x2c2   :  { %3022 = vmatpush.bf16.msrb.mxu2 %v5917_v35  ;;  %2997 = vmatpush.bf16.msrb.mxu0 %v5373_v43  ;;  %v6546_v21 = vld [vmem:[#allocation19 + $0xac] sm:$0xf0]  ;;  %v6766_v0 = vld [vmem:[#allocation19 + $0x794] sm:$0xf] }
 0x2c3   :  { %v5244_v25 = vld [vmem:[#allocation19 + $0x290] sm:$0xf]  ;;  %v4989_v26 = vor.u32 %v6546_v21, %v4988_v39  ;;  %v5377_v39 = vor.u32 %v6638_v7, %v5374_v10  ;;  %v6566_v21 = vld [vmem:[#allocation19 + $0x154] sm:$0xf] }
 0x2c4   :  { %3010 = vmatpush.bf16.msrb.mxu1 %v5629_v49  ;;  %2985 = vmatpush.bf16.msra.mxu3 %v5085_v55  ;;  %v6674_v30 = vld [vmem:[#allocation19 + $0x4ac] sm:$0xf0]  ;;  %v5245_v63 = vor.u32 %v6610_v28, %v5244_v25  ;;  %v6630_v28 = vld [vmem:[#allocation19 + $0x354] sm:$0xf] }
 0x2c5   :  { %v5756_v31 = vld [vmem:[#allocation19 + $0x690] sm:$0xf]  ;;  %v5501_v35 = vor.u32 %v6674_v30, %v5500_v22  ;;  %v5342_v22 = vld [vmem:[#allocation19 + $0x370] sm:$0xf0] }
 0x2c6   :  { %3023 = vmatpush.bf16.msrb.mxu2 %v5885_v24  ;;  %2998 = vmatpush.bf16.msrb.mxu0 %v5341_v56  ;;  %v6738_v33 = vld [vmem:[#allocation19 + $0x6ac] sm:$0xf0]  ;;  %v6582_v56 = vld [vmem:[#allocation19 + $0x1d4] sm:$0xf] }
 0x2c7   :  { %v4956_v29 = vld [vmem:[#allocation19 + $0x50] sm:$0xf]  ;;  %v5757_v36 = vor.u32 %v6738_v33, %v5756_v31  ;;  %v6694_v30 = vld [vmem:[#allocation19 + $0x554] sm:$0xf] }
 0x2c8   :  { %3011 = vmatpush.bf16.msrb.mxu1 %v5597_v60  ;;  %2986 = vmatpush.bf16.msra.mxu3 %v5053_v46  ;;  %v6538_v34 = vld [vmem:[#allocation19 + $0x6c] sm:$0xf0]  ;;  %v5406_v60 = vld [vmem:[#allocation19 + $0x3f0] sm:$0xf0] }
 0x2c9   :  { %v5212_v32 = vld [vmem:[#allocation19 + $0x250] sm:$0xf]  ;;  %v4957_v45 = vor.u32 %v6538_v34, %v4956_v29  ;;  %v5409_v5 = vor.u32 %v6646_v59, %v5406_v60  ;;  %v5598_v31 = vld [vmem:[#allocation19 + $0x570] sm:$0xf0]  ;;  %v5345_v29 = vor.u32 %v6630_v28, %v5342_v22 }
 0x2ca   :  { %3024 = vmatpush.bf16.msrb.mxu2 %v5853_v51  ;;  %2999 = vmatpush.bf16.msrb.mxu0 %v5309_v54  ;;  %v6602_v37 = vld [vmem:[#allocation19 + $0x26c] sm:$0xf0]  ;;  %v6710_v51 = vld [vmem:[#allocation19 + $0x5d4] sm:$0xf]  ;;  %v5153_v54 = vor.u32 %v6582_v56, %v5150_v58 }
 0x2cb   :  { %v5468_v38 = vld [vmem:[#allocation19 + $0x450] sm:$0xf]  ;;  %v5213_v48 = vor.u32 %v6602_v37, %v5212_v32  ;;  %v6758_v33 = vld [vmem:[#allocation19 + $0x754] sm:$0xf] }
 0x2cc   :  { %3012 = vmatpush.bf16.msrb.mxu1 %v5565_v6  ;;  %2987 = vmatpush.bf16.msra.mxu3 %v5021_v20  ;;  %v6666_v40 = vld [vmem:[#allocation19 + $0x46c] sm:$0xf0]  ;;  %v5118_v6 = vld [vmem:[#allocation19 + $0x1b0] sm:$0xf0] }
 0x2cd   :  { %v5724_v41 = vld [vmem:[#allocation19 + $0x650] sm:$0xf]  ;;  %v5469_v57 = vor.u32 %v6666_v40, %v5468_v38  ;;  %v5886_v20 = vld [vmem:[#allocation19 + $0x7b0] sm:$0xf0] }
 0x2ce   :  { %3025 = vmatpush.bf16.msrb.mxu2 %v5821_v47  ;;  %3000 = vmatpush.bf16.msrb.mxu0 %v5277_v44  ;;  %v6730_v42 = vld [vmem:[#allocation19 + $0x66c] sm:$0xf0]  ;;  %v5665_v47 = vor.u32 %v6710_v51, %v5662_v3  ;;  %v5121_v44 = vor.u32 %v6574_v8, %v5118_v6  ;;  %v5889_v25 = vor.u32 %v6766_v0, %v5886_v20  ;;  %v6558_v34 = vld [vmem:[#allocation19 + $0x114] sm:$0xf] }
 0x2cf   :  { %v4924_v43 = vld [vmem:[#allocation19 + $0x10] sm:$0xf]  ;;  %v5725_v61 = vor.u32 %v6730_v42, %v5724_v41  ;;  %v6622_v37 = vld [vmem:[#allocation19 + $0x314] sm:$0xf] }
 0x2d0   :  { %3013 = vmatpush.bf16.msrb.mxu1 %v5533_v23  ;;  %2988 = vmatpush.bf16.msra.mxu3 %v4989_v26  ;;  %v6530_v49 = vld [vmem:[#allocation19 + $0x2c] sm:$0xf0]  ;;  %v5086_v23 = vld [vmem:[#allocation19 + $0x170] sm:$0xf0] }
 0x2d1   :  { %v5180_v24 = vld [vmem:[#allocation19 + $0x210] sm:$0xf]  ;;  %v4925_v62 = vor.u32 %v6530_v49, %v4924_v43  ;;  %v5854_v26 = vld [vmem:[#allocation19 + $0x770] sm:$0xf0] }
 0x2d2   :  { %3026 = vmatpush.bf16.msrb.mxu2 %v5789_v27  ;;  %3001 = vmatpush.bf16.msrb.mxu0 %v5245_v63  ;;  %v6594_v1 = vld [vmem:[#allocation19 + $0x22c] sm:$0xf0]  ;;  %v5633_v27 = vor.u32 %v6702_v13, %v5630_v17  ;;  %v5089_v63 = vor.u32 %v6566_v21, %v5086_v23  ;;  %v5857_v32 = vor.u32 %v6758_v33, %v5854_v26  ;;  %v5310_v38 = vld [vmem:[#allocation19 + $0x330] sm:$0xf0] }
 0x2d3   :  { %v5436_v50 = vld [vmem:[#allocation19 + $0x410] sm:$0xf]  ;;  %v5181_v2 = vor.u32 %v6594_v1, %v5180_v24  ;;  %v6686_v40 = vld [vmem:[#allocation19 + $0x514] sm:$0xf] }
 0x2d4   :  { %3014 = vmatpush.bf16.msrb.mxu1 %v5501_v35  ;;  %v6658_v52 = vld [vmem:[#allocation19 + $0x42c] sm:$0xf0]  ;;  %2989 = vmatpush.bf16.msra.mxu3 %v4957_v45  ;;  %v5054_v35 = vld [vmem:[#allocation19 + $0x130] sm:$0xf0] }
 0x2d5   :  { %v5692_v53 = vld [vmem:[#allocation19 + $0x610] sm:$0xf]  ;;  %v5437_v9 = vor.u32 %v6658_v52, %v5436_v50  ;;  %v5566_v41 = vld [vmem:[#allocation19 + $0x530] sm:$0xf0]  ;;  %v5057_v45 = vor.u32 %v6558_v34, %v5054_v35  ;;  %v6587_v34 = vld [vmem:[#allocation19 + $0x1f4] sm:$0xf0] }
 0x2d6   :  { %3027 = vmatpush.bf16.msrb.mxu2 %v5757_v36  ;;  %v6722_v55 = vld [vmem:[#allocation19 + $0x62c] sm:$0xf0]  ;;  %3002 = vmatpush.bf16.msrb.mxu0 %v5213_v48  ;;  %v5601_v36 = vor.u32 %v6694_v30, %v5598_v31  ;;  %v6750_v42 = vld [vmem:[#allocation19 + $0x714] sm:$0xf]  ;;  %v5313_v48 = vor.u32 %v6622_v37, %v5310_v38  ;;  %v5569_v1 = vor.u32 %v6686_v40, %v5566_v41  ;;  %v5412_v35 = vld [vmem:[#allocation19 + $0x3d8] sm:$0xf] }
 0x2d7   :  { %v5693_v46 = vor.u32 %v6722_v55, %v5692_v53  ;;  %v5822_v43 = vld [vmem:[#allocation19 + $0x730] sm:$0xf0]  ;;  %v6715_v40 = vld [vmem:[#allocation19 + $0x5f4] sm:$0xf0] }
 0x2d8   :  { %3015 = vmatpush.bf16.msrb.mxu1 %v5469_v57  ;;  %2990 = vmatpush.bf16.msra.mxu3 %v4925_v62  ;;  %v6550_v49 = vld [vmem:[#allocation19 + $0xd4] sm:$0xf]  ;;  %v5825_v57 = vor.u32 %v6750_v42, %v5822_v43  ;;  %v5924_v41 = vld [vmem:[#allocation19 + $0x7d8] sm:$0xf] }
 0x2d9   :  { %v5022_v24 = vld [vmem:[#allocation19 + $0xf0] sm:$0xf0]  ;;  %v6779_v42 = vld [vmem:[#allocation19 + $0x7f4] sm:$0xf0] }
 0x2da   :  { %3028 = vmatpush.bf16.msrb.mxu2 %v5725_v61  ;;  %3003 = vmatpush.bf16.msrb.mxu0 %v5181_v2  ;;  %v6614_v61 = vld [vmem:[#allocation19 + $0x2d4] sm:$0xf]  ;;  %v5025_v58 = vor.u32 %v6550_v49, %v5022_v24  ;;  %v5124_v24 = vld [vmem:[#allocation19 + $0x198] sm:$0xf] }
 0x2db   :  { %2991 = vmatmul.bf16.vlgmr.msra.gmra.mxu3 %v7731_v11  ;;  %v5278_v50 = vld [vmem:[#allocation19 + $0x2f0] sm:$0xf0] }
 0x2dc   :  { %3016 = vmatpush.bf16.msrb.mxu1 %v5437_v9  ;;  %3035 = vmatpush.bf16.msrb.mxu3 %v5153_v54  ;;  %v6678_v52 = vld [vmem:[#allocation19 + $0x4d4] sm:$0xf]  ;;  %v5281_v59 = vor.u32 %v6614_v61, %v5278_v50  ;;  %v5925_v61 = vor.u32 %v6779_v42, %v5924_v41  ;;  %v5380_v50 = vld [vmem:[#allocation19 + $0x398] sm:$0xf] }
 0x2dd   :  { %3004 = vmatmul.bf16.vlgmr.msrb.gmra.mxu0 %v7733_v12  ;;  %v5534_v53 = vld [vmem:[#allocation19 + $0x4f0] sm:$0xf0] }
 0x2de   :  { %3029 = vmatpush.bf16.msrb.mxu2 %v5693_v46  ;;  %3048 = vmatpush.bf16.msra.mxu0 %v5409_v5  ;;  %v6742_v55 = vld [vmem:[#allocation19 + $0x6d4] sm:$0xf]  ;;  %v5537_v62 = vor.u32 %v6678_v52, %v5534_v53  ;;  %v6643_v52 = vld [vmem:[#allocation19 + $0x3b4] sm:$0xf0] }
 0x2df   :  { %3017 = vmatmul.bf16.vlgmr.msrb.gmra.mxu1 %v7737_v19  ;;  %v5790_v56 = vld [vmem:[#allocation19 + $0x6f0] sm:$0xf0]  ;;  %v5636_v53 = vld [vmem:[#allocation19 + $0x598] sm:$0xf] }
 0x2e0   :  { %3061 = vmatpush.bf16.msra.mxu1 %v5665_v47  ;;  %3036 = vmatpush.bf16.msrb.mxu3 %v5121_v44  ;;  %v6542_v60 = vld [vmem:[#allocation19 + $0x94] sm:$0xf]  ;;  %v5793_v2 = vor.u32 %v6742_v55, %v5790_v56  ;;  %v6707_v55 = vld [vmem:[#allocation19 + $0x5b4] sm:$0xf0] }
 0x2e1   :  { %3030 = vmatmul.bf16.vlgmr.msrb.gmra.mxu2 %v7735_v18  ;;  %v4990_v51 = vld [vmem:[#allocation19 + $0xb0] sm:$0xf0]  ;;  %v5892_v56 = vld [vmem:[#allocation19 + $0x798] sm:$0xf] }
 0x2e2   :  { %3074 = vmatpush.bf16.msra.mxu2 %v5921_v15  ;;  %3049 = vmatpush.bf16.msra.mxu0 %v5377_v39  ;;  %v6606_v3 = vld [vmem:[#allocation19 + $0x294] sm:$0xf]  ;;  %v4993_v5 = vor.u32 %v6542_v60, %v4990_v51  ;;  %v5381_v60 = vor.u32 %v6643_v52, %v5380_v50  ;;  %v5092_v51 = vld [vmem:[#allocation19 + $0x158] sm:$0xf] }
 0x2e3   :  { %v6670_v4 = vld [vmem:[#allocation19 + $0x494] sm:$0xf]  ;;  %v5249_v8 = vor.u32 %v6606_v3, %v5246_v14  ;;  %v5348_v14 = vld [vmem:[#allocation19 + $0x358] sm:$0xf] }
 0x2e4   :  { %3062 = vmatpush.bf16.msra.mxu1 %v5633_v27  ;;  %3037 = vmatpush.bf16.msrb.mxu3 %v5089_v63  ;;  %v5502_v9 = vld [vmem:[#allocation19 + $0x4b0] sm:$0xf0]  ;;  %v6611_v50 = vld [vmem:[#allocation19 + $0x2b4] sm:$0xf0] }
 0x2e5   :  { %v6734_v46 = vld [vmem:[#allocation19 + $0x694] sm:$0xf]  ;;  %v5505_v15 = vor.u32 %v6670_v4, %v5502_v9  ;;  %v6635_v4 = vld [vmem:[#allocation19 + $0x374] sm:$0xf0] }
 0x2e6   :  { %3075 = vmatpush.bf16.msra.mxu2 %v5889_v25  ;;  %3050 = vmatpush.bf16.msra.mxu0 %v5345_v29  ;;  %v5758_v54 = vld [vmem:[#allocation19 + $0x6b0] sm:$0xf0]  ;;  %v5156_v29 = vld [vmem:[#allocation19 + $0x1d8] sm:$0xf] }
 0x2e7   :  { %v6534_v6 = vld [vmem:[#allocation19 + $0x54] sm:$0xf]  ;;  %v5761_v7 = vor.u32 %v6734_v46, %v5758_v54  ;;  %v5604_v9 = vld [vmem:[#allocation19 + $0x558] sm:$0xf] }
 0x2e8   :  { %3063 = vmatpush.bf16.msra.mxu1 %v5601_v36  ;;  %3038 = vmatpush.bf16.msrb.mxu3 %v5057_v45  ;;  %v4958_v47 = vld [vmem:[#allocation19 + $0x70] sm:$0xf0]  ;;  %v6651_v36 = vld [vmem:[#allocation19 + $0x3f4] sm:$0xf0] }
 0x2e9   :  { %v6598_v10 = vld [vmem:[#allocation19 + $0x254] sm:$0xf]  ;;  %v4961_v21 = vor.u32 %v6534_v6, %v4958_v47  ;;  %v5413_v49 = vor.u32 %v6651_v36, %v5412_v35  ;;  %v6699_v46 = vld [vmem:[#allocation19 + $0x574] sm:$0xf0] }
 0x2ea   :  { %3076 = vmatpush.bf16.msra.mxu2 %v5857_v32  ;;  %3051 = vmatpush.bf16.msra.mxu0 %v5313_v48  ;;  %v5214_v13 = vld [vmem:[#allocation19 + $0x270] sm:$0xf0]  ;;  %v5668_v32 = vld [vmem:[#allocation19 + $0x5d8] sm:$0xf]  ;;  %v5157_v48 = vor.u32 %v6587_v34, %v5156_v29 }
 0x2eb   :  { %v6662_v17 = vld [vmem:[#allocation19 + $0x454] sm:$0xf]  ;;  %v5217_v23 = vor.u32 %v6598_v10, %v5214_v13  ;;  %v5860_v54 = vld [vmem:[#allocation19 + $0x758] sm:$0xf] }
 0x2ec   :  { %3064 = vmatpush.bf16.msra.mxu1 %v5569_v1  ;;  %3039 = vmatpush.bf16.msrb.mxu3 %v5025_v58  ;;  %v5470_v0 = vld [vmem:[#allocation19 + $0x470] sm:$0xf0]  ;;  %v6579_v1 = vld [vmem:[#allocation19 + $0x1b4] sm:$0xf0] }
 0x2ed   :  { %v6726_v20 = vld [vmem:[#allocation19 + $0x654] sm:$0xf]  ;;  %v5473_v22 = vor.u32 %v6662_v17, %v5470_v0  ;;  %v6771_v58 = vld [vmem:[#allocation19 + $0x7b4] sm:$0xf0]  ;;  %v5605_v0 = vor.u32 %v6699_v46, %v5604_v9 }
 0x2ee   :  { %3077 = vmatpush.bf16.msra.mxu2 %v5825_v57  ;;  %3052 = vmatpush.bf16.msra.mxu0 %v5281_v59  ;;  %v5726_v44 = vld [vmem:[#allocation19 + $0x670] sm:$0xf0]  ;;  %v5669_v57 = vor.u32 %v6715_v40, %v5668_v32  ;;  %v5125_v59 = vor.u32 %v6579_v1, %v5124_v24  ;;  %v5893_v3 = vor.u32 %v6771_v58, %v5892_v56  ;;  %v5060_v10 = vld [vmem:[#allocation19 + $0x118] sm:$0xf] }
 0x2ef   :  { %v6526_v39 = vld [vmem:[#allocation19 + $0x14] sm:$0xf]  ;;  %v5729_v30 = vor.u32 %v6726_v20, %v5726_v44  ;;  %v6563_v13 = vld [vmem:[#allocation19 + $0x134] sm:$0xf0] }
 0x2f0   :  { %3065 = vmatpush.bf16.msra.mxu1 %v5537_v62  ;;  %3040 = vmatpush.bf16.msrb.mxu3 %v4993_v5  ;;  %v4926_v27 = vld [vmem:[#allocation19 + $0x30] sm:$0xf0]  ;;  %v6571_v62 = vld [vmem:[#allocation19 + $0x174] sm:$0xf0] }
 0x2f1   :  { %v6590_v25 = vld [vmem:[#allocation19 + $0x214] sm:$0xf]  ;;  %v4929_v37 = vor.u32 %v6526_v39, %v4926_v27  ;;  %v6763_v5 = vld [vmem:[#allocation19 + $0x774] sm:$0xf0]  ;;  %v5093_v47 = vor.u32 %v6571_v62, %v5092_v51 }
 0x2f2   :  { %3078 = vmatpush.bf16.msra.mxu2 %v5793_v2  ;;  %3053 = vmatpush.bf16.msra.mxu0 %v5249_v8  ;;  %v5182_v28 = vld [vmem:[#allocation19 + $0x230] sm:$0xf0]  ;;  %v5637_v2 = vor.u32 %v6707_v55, %v5636_v53  ;;  %v2797_v8 = vpop.f32.mrf.mxu0  ;;  %v5316_v17 = vld [vmem:[#allocation19 + $0x318] sm:$0xf]  ;;  %v5861_v20 = vor.u32 %v6763_v5, %v5860_v54 }
 0x2f3   :  { %v6654_v31 = vld [vmem:[#allocation19 + $0x414] sm:$0xf]  ;;  %v5185_v38 = vor.u32 %v6590_v25, %v5182_v28  ;;  %v6627_v44 = vld [vmem:[#allocation19 + $0x334] sm:$0xf0]  ;;  %v5061_v28 = vor.u32 %v6563_v13, %v5060_v10 }
 0x2f4   :  { %3066 = vmatpush.bf16.msra.mxu1 %v5505_v15  ;;  %v5438_v33 = vld [vmem:[#allocation19 + $0x430] sm:$0xf0]  ;;  %3041 = vmatpush.bf16.msrb.mxu3 %v4961_v21  ;;  %v5349_v15 = vor.u32 %v6635_v4, %v5348_v14  ;;  %v5572_v39 = vld [vmem:[#allocation19 + $0x518] sm:$0xf] }
 0x2f5   :  { %v6718_v26 = vld [vmem:[#allocation19 + $0x614] sm:$0xf]  ;;  %v5441_v43 = vor.u32 %v6654_v31, %v5438_v33  ;;  %v6691_v21 = vld [vmem:[#allocation19 + $0x534] sm:$0xf0] }
 0x2f6   :  { %3079 = vmatpush.bf16.msra.mxu2 %v5761_v7  ;;  %v5694_v63 = vld [vmem:[#allocation19 + $0x630] sm:$0xf0]  ;;  %3054 = vmatpush.bf16.msra.mxu0 %v5217_v23  ;;  %v2810_v7 = vpop.f32.mrf.mxu1  ;;  %v5828_v23 = vld [vmem:[#allocation19 + $0x718] sm:$0xf]  ;;  %v5573_v33 = vor.u32 %v6691_v21, %v5572_v39 }
 0x2f7   :  { %v5697_v45 = vor.u32 %v6718_v26, %v5694_v63  ;;  %v7766_v6 = vld [vmem:[%s8078_s12] sm:$0xff]  ;;  %v2784_v63 = vpop.f32.mrf.mxu3  ;;  %v2823_v32 = vpop.f32.mrf.mxu2 }
 0x2f8   :  { %3067 = vmatpush.bf16.msra.mxu1 %v5473_v22  ;;  %3042 = vmatpush.bf16.msrb.mxu3 %v4929_v37  ;;  %v6755_v27 = vld [vmem:[#allocation19 + $0x734] sm:$0xf0]  ;;  %v1479_v25 = vperm.slane %v7766_v6, 0  ;;  %v5317_v22 = vor.u32 %v6627_v44, %v5316_v17 }
 0x2f9   :  { %v6555_v31 = vld [vmem:[#allocation19 + $0xf4] sm:$0xf0]  ;;  %v5829_v26 = vor.u32 %v6755_v27, %v5828_v23 }
 0x2fa   :  { %3080 = vmatpush.bf16.msra.mxu2 %v5729_v30  ;;  %3055 = vmatpush.bf16.msra.mxu0 %v5185_v38  ;;  %v5028_v30 = vld [vmem:[#allocation19 + $0xd8] sm:$0xf]  ;;  %v2785_v36 = vadd.f32 %v2784_v63, %v1479_v25  ;;  %v2799_v41 = vpop.f32.mrf.mxu0  ;;  %v6583_v63 = vld [vmem:[#allocation19 + $0x1dc] sm:$0xf] }
 0x2fb   :  { %3043 = vmatmul.bf16.vlgmr.msrb.gmra.mxu3 %v7731_v11  ;;  %v5284_v29 = vld [vmem:[#allocation19 + $0x2d8] sm:$0xf] }
 0x2fc   :  { %3068 = vmatpush.bf16.msra.mxu1 %v5441_v43  ;;  %3087 = vmatpush.bf16.msra.mxu3 %v5157_v48  ;;  %v6619_v34 = vld [vmem:[#allocation19 + $0x2f4] sm:$0xf0]  ;;  %v2798_v42 = vadd.f32 %v2797_v8, %v2785_v36  ;;  %v5029_v43 = vor.u32 %v6555_v31, %v5028_v30  ;;  %v6647_v36 = vld [vmem:[#allocation19 + $0x3dc] sm:$0xf] }
 0x2fd   :  { %3056 = vmatmul.bf16.vlgmr.msra.gmra.mxu0 %v7733_v12  ;;  %v5540_v35 = vld [vmem:[#allocation19 + $0x4d8] sm:$0xf] }
 0x2fe   :  { %3081 = vmatpush.bf16.msra.mxu2 %v5697_v45  ;;  %3100 = vmatpush.bf16.msrb.mxu0 %v5413_v49  ;;  %v6683_v37 = vld [vmem:[#allocation19 + $0x4f4] sm:$0xf0]  ;;  %v5285_v45 = vor.u32 %v6619_v34, %v5284_v29  ;;  %v2812_v48 = vpop.f32.mrf.mxu1  ;;  %v2811_v53 = vadd.f32 %v2810_v7, %v2798_v42 }
 0x2ff   :  { %3069 = vmatmul.bf16.vlgmr.msra.gmra.mxu1 %v7737_v19  ;;  %v5796_v38 = vld [vmem:[#allocation19 + $0x6d8] sm:$0xf]  ;;  %v5541_v1 = vor.u32 %v6683_v37, %v5540_v35  ;;  %v2786_v9 = vpop.f32.mrf.mxu3  ;;  %v5158_v35 = vld [vmem:[#allocation19 + $0x1f8] sm:$0xf0] }
 0x300   :  { %3113 = vmatpush.bf16.msrb.mxu1 %v5669_v57  ;;  %3088 = vmatpush.bf16.msra.mxu3 %v5125_v59  ;;  %v6747_v40 = vld [vmem:[#allocation19 + $0x6f4] sm:$0xf0]  ;;  %v7769_v59 = vadd.f32 %v2823_v32, %v2811_v53  ;;  %v1480_v32 = vperm.slane %v7766_v6, 1  ;;  %v5414_v37 = vld [vmem:[#allocation19 + $0x3f8] sm:$0xf0] }
 0x301   :  { %3082 = vmatmul.bf16.vlgmr.msra.gmra.mxu2 %v7735_v18  ;;  %v4996_v49 = vld [vmem:[#allocation19 + $0x98] sm:$0xf]  ;;  %v5797_v57 = vor.u32 %v6747_v40, %v5796_v38  ;;  %v6711_v38 = vld [vmem:[#allocation19 + $0x5dc] sm:$0xf] }
 0x302   :  { %3126 = vmatpush.bf16.msrb.mxu2 %v5925_v61  ;;  %3101 = vmatpush.bf16.msrb.mxu0 %v5381_v60  ;;  %v6547_v24 = vld [vmem:[#allocation19 + $0xb4] sm:$0xf0]  ;;  %v3191_v8 = vrot.slane %v7769_v59, 4  ;;  %v2849_v13 = vpop.f32.mrf.mxu0  ;;  %v5670_v40 = vld [vmem:[#allocation19 + $0x5f8] sm:$0xf0] }
 0x303   :  { %v5252_v61 = vld [vmem:[#allocation19 + $0x298] sm:$0xf]  ;;  %v4997_v60 = vor.u32 %v6547_v24, %v4996_v49  ;;  %v6775_v48 = vld [vmem:[#allocation19 + $0x7dc] sm:$0xf] }
 0x304   :  { %3114 = vmatpush.bf16.msrb.mxu1 %v5637_v2  ;;  %3089 = vmatpush.bf16.msra.mxu3 %v5093_v47  ;;  %v5508_v52 = vld [vmem:[#allocation19 + $0x498] sm:$0xf]  ;;  %v5253_v51 = vor.u32 %v6611_v50, %v5252_v61  ;;  %v3247_v47 = vmul.f32 %v7769_v59, %v7769_v59  ;;  %v3192_v39 = vadd.f32 %v3191_v8, %v7769_v59  ;;  %v5926_v49 = vld [vmem:[#allocation19 + $0x7f8] sm:$0xf0] }
 0x305   :  { %v6675_v55 = vld [vmem:[#allocation19 + $0x4b4] sm:$0xf0]  ;;  %v6575_v50 = vld [vmem:[#allocation19 + $0x19c] sm:$0xf] }
 0x306   :  { %3127 = vmatpush.bf16.msrb.mxu2 %v5893_v3  ;;  %3102 = vmatpush.bf16.msrb.mxu0 %v5349_v15  ;;  %v5764_v56 = vld [vmem:[#allocation19 + $0x698] sm:$0xf]  ;;  %v5509_v14 = vor.u32 %v6675_v55, %v5508_v52  ;;  %v2825_v15 = vpop.f32.mrf.mxu2  ;;  %v3255_v21 = vrot.slane %v3247_v47, 4  ;;  %v2862_v25 = vpop.f32.mrf.mxu1  ;;  %v3193_v29 = vrot.slane %v3192_v39, 2  ;;  %v5126_v52 = vld [vmem:[#allocation19 + $0x1b8] sm:$0xf0] }
 0x307   :  { %v6739_v58 = vld [vmem:[#allocation19 + $0x6b4] sm:$0xf0]  ;;  %v2836_v61 = vpop.f32.mrf.mxu3  ;;  %v5638_v9 = vld [vmem:[#allocation19 + $0x5b8] sm:$0xf0] }
 0x308   :  { %3115 = vmatpush.bf16.msrb.mxu1 %v5605_v0  ;;  %3090 = vmatpush.bf16.msra.mxu3 %v5061_v28  ;;  %v4964_v62 = vld [vmem:[#allocation19 + $0x58] sm:$0xf]  ;;  %v5765_v4 = vor.u32 %v6739_v58, %v5764_v56  ;;  %v3256_v34 = vadd.f32 %v3255_v21, %v3247_v47  ;;  %v3194_v41 = vadd.f32 %v3193_v29, %v3192_v39  ;;  %v6767_v47 = vld [vmem:[#allocation19 + $0x79c] sm:$0xf] }
 0x309   :  { %v6539_v2 = vld [vmem:[#allocation19 + $0x74] sm:$0xf0]  ;;  %v5417_v56 = vor.u32 %v6647_v36, %v5414_v37  ;;  %v2837_v58 = vadd.f32 %v2836_v61, %v1480_v32  ;;  %v5894_v15 = vld [vmem:[#allocation19 + $0x7b8] sm:$0xf0] }
 0x30a   :  { %3128 = vmatpush.bf16.msrb.mxu2 %v5861_v20  ;;  %3103 = vmatpush.bf16.msrb.mxu0 %v5317_v22  ;;  %v5220_v3 = vld [vmem:[#allocation19 + $0x258] sm:$0xf]  ;;  %v4965_v23 = vor.u32 %v6539_v2, %v4964_v62  ;;  %v3257_v42 = vrot.slane %v3256_v34, 2  ;;  %v3195_v53 = vrot.slane %v3194_v41, 1  ;;  %v5382_v62 = vld [vmem:[#allocation19 + $0x3b8] sm:$0xf0]  ;;  %v5673_v2 = vor.u32 %v6711_v38, %v5670_v40 }
 0x30b   :  { %v6603_v46 = vld [vmem:[#allocation19 + $0x274] sm:$0xf0]  ;;  %v5094_v39 = vld [vmem:[#allocation19 + $0x178] sm:$0xf0] }
 0x30c   :  { %3116 = vmatpush.bf16.msrb.mxu1 %v5573_v33  ;;  %3091 = vmatpush.bf16.msra.mxu3 %v5029_v43  ;;  %v5476_v54 = vld [vmem:[#allocation19 + $0x458] sm:$0xf]  ;;  %v5221_v27 = vor.u32 %v6603_v46, %v5220_v3  ;;  %v3258_v55 = vadd.f32 %v3257_v42, %v3256_v34  ;;  %v5929_v3 = vor.u32 %v6775_v48, %v5926_v49  ;;  %v6559_v34 = vld [vmem:[#allocation19 + $0x11c] sm:$0xf] }
 0x30d   :  { %v6667_v5 = vld [vmem:[#allocation19 + $0x474] sm:$0xf0]  ;;  %v3196_v46 = vadd.f32 %v3195_v53, %v3194_v41  ;;  %v5062_v40 = vld [vmem:[#allocation19 + $0x138] sm:$0xf0] }
 0x30e   :  { %3129 = vmatpush.bf16.msrb.mxu2 %v5829_v26  ;;  %3104 = vmatpush.bf16.msrb.mxu0 %v5285_v45  ;;  %v5732_v7 = vld [vmem:[#allocation19 + $0x658] sm:$0xf]  ;;  %v5477_v30 = vor.u32 %v6667_v5, %v5476_v54  ;;  %v3259_v54 = vrot.slane %v3258_v55, 1  ;;  %v2850_v5 = vadd.f32 %v2849_v13, %v2837_v58  ;;  %v2864_v8 = vpop.f32.mrf.mxu1  ;;  %v5897_v13 = vor.u32 %v6767_v47, %v5894_v15  ;;  %v6623_v41 = vld [vmem:[#allocation19 + $0x31c] sm:$0xf] }
 0x30f   :  { %v6731_v10 = vld [vmem:[#allocation19 + $0x674] sm:$0xf0]  ;;  %v2838_v29 = vpop.f32.mrf.mxu3  ;;  %v6687_v48 = vld [vmem:[#allocation19 + $0x51c] sm:$0xf]  ;;  %v1481_v15 = vperm.slane %v7766_v6, 2 }
 0x310   :  { %3117 = vmatpush.bf16.msrb.mxu1 %v5541_v1  ;;  %v4932_v17 = vld [vmem:[#allocation19 + $0x18] sm:$0xf]  ;;  %3092 = vmatpush.bf16.msra.mxu3 %v4997_v60  ;;  %v5733_v31 = vor.u32 %v6731_v10, %v5732_v7  ;;  %v2875_v60 = vpop.f32.mrf.mxu2  ;;  %v5129_v7 = vor.u32 %v6575_v50, %v5126_v52  ;;  %v5574_v49 = vld [vmem:[#allocation19 + $0x538] sm:$0xf0]  ;;  %v5065_v52 = vor.u32 %v6559_v34, %v5062_v40 }
 0x311   :  { %v6531_v0 = vld [vmem:[#allocation19 + $0x34] sm:$0xf0]  ;;  %v5830_v61 = vld [vmem:[#allocation19 + $0x738] sm:$0xf0] }
 0x312   :  { %3130 = vmatpush.bf16.msrb.mxu2 %v5797_v57  ;;  %v5188_v20 = vld [vmem:[#allocation19 + $0x218] sm:$0xf]  ;;  %3105 = vmatpush.bf16.msrb.mxu0 %v5253_v51  ;;  %v4933_v43 = vor.u32 %v6531_v0, %v4932_v17  ;;  %v5161_v57 = vor.u32 %v6583_v63, %v5158_v35  ;;  %v6639_v51 = vld [vmem:[#allocation19 + $0x39c] sm:$0xf]  ;;  %v7777_v17 = vmul.f32 %v3196_v46, %v7536_v16 }
 0x313   :  { %v6595_v44 = vld [vmem:[#allocation19 + $0x234] sm:$0xf0]  ;;  %v5385_v10 = vor.u32 %v6639_v51, %v5382_v62  ;;  %v3260_v0 = vadd.f32 %v3259_v54, %v3258_v55  ;;  %v6551_v53 = vld [vmem:[#allocation19 + $0xdc] sm:$0xf] }
 0x314   :  { %v5444_v28 = vld [vmem:[#allocation19 + $0x418] sm:$0xf]  ;;  %3118 = vmatpush.bf16.msrb.mxu1 %v5509_v14  ;;  %3093 = vmatpush.bf16.msra.mxu3 %v4965_v23  ;;  %v5189_v45 = vor.u32 %v6595_v44, %v5188_v20  ;;  %v2851_v14 = vpop.f32.mrf.mxu0  ;;  %v2863_v20 = vadd.f32 %v2862_v25, %v2850_v5  ;;  %v6567_v44 = vld [vmem:[#allocation19 + $0x15c] sm:$0xf] }
 0x315   :  { %v6659_v22 = vld [vmem:[#allocation19 + $0x434] sm:$0xf0]  ;;  %v6631_v23 = vld [vmem:[#allocation19 + $0x35c] sm:$0xf]  ;;  %v5097_v63 = vor.u32 %v6567_v44, %v5094_v39 }
 0x316   :  { %3131 = vmatpush.bf16.msrb.mxu2 %v5765_v4  ;;  %v5700_v33 = vld [vmem:[#allocation19 + $0x618] sm:$0xf]  ;;  %3106 = vmatpush.bf16.msrb.mxu0 %v5221_v27  ;;  %v5445_v24 = vor.u32 %v6659_v22, %v5444_v28  ;;  %v6703_v4 = vld [vmem:[#allocation19 + $0x59c] sm:$0xf]  ;;  %v3303_v22 = vmul.f32 %v3260_v0, %v7536_v16 }
 0x317   :  { %v6723_v26 = vld [vmem:[#allocation19 + $0x634] sm:$0xf0]  ;;  %v5641_v21 = vor.u32 %v6703_v4, %v5638_v9  ;;  %v5350_v27 = vld [vmem:[#allocation19 + $0x378] sm:$0xf0] }
 0x318   :  { %3119 = vmatpush.bf16.msrb.mxu1 %v5477_v30  ;;  %v5701_v1 = vor.u32 %v6723_v26, %v5700_v33  ;;  %3094 = vmatpush.bf16.msra.mxu3 %v4933_v43  ;;  %v6695_v28 = vld [vmem:[#allocation19 + $0x55c] sm:$0xf]  ;;  %v3311_v30 = vmul.f32 %v7777_v17, %v7777_v17  ;;  %v5353_v37 = vor.u32 %v6631_v23, %v5350_v27  ;;  %v2877_v38 = vpop.f32.mrf.mxu2 }
 0x319   :  { %v5606_v25 = vld [vmem:[#allocation19 + $0x578] sm:$0xf0] }
 0x31a   :  { %3132 = vmatpush.bf16.msrb.mxu2 %v5733_v31  ;;  %3107 = vmatpush.bf16.msrb.mxu0 %v5189_v45  ;;  %v7782_v31 = vadd.f32 %v2875_v60, %v2863_v20  ;;  %v6759_v33 = vld [vmem:[#allocation19 + $0x75c] sm:$0xf]  ;;  %v3319_v35 = vsub.f32 %v3303_v22, %v3311_v30  ;;  %v5609_v42 = vor.u32 %v6695_v28, %v5606_v25 }
 0x31b   :  { %3095 = vmatmul.bf16.vlgmr.msra.gmra.mxu3 %v7731_v11  ;;  %v5862_v26 = vld [vmem:[#allocation19 + $0x778] sm:$0xf0] }
 0x31c   :  { %3120 = vmatpush.bf16.msrb.mxu1 %v5445_v24  ;;  %3139 = vmatpush.bf16.msrb.mxu3 %v5161_v57  ;;  %v3197_v36 = vrot.slane %v7782_v31, 4  ;;  %v3248_v32 = vmul.f32 %v7782_v31, %v7782_v31  ;;  %v5865_v43 = vor.u32 %v6759_v33, %v5862_v26  ;;  %v5318_v45 = vld [vmem:[#allocation19 + $0x338] sm:$0xf0]  ;;  %v2901_v50 = vpop.f32.mrf.mxu0  ;;  %v3327_v55 = vmax.f32 %v3319_v35, 0.0  ;;  %v2914_v60 = vpop.f32.mrf.mxu1 }
 0x31d   :  { %3108 = vmatmul.bf16.vlgmr.msrb.gmra.mxu0 %v7733_v12  ;;  %v6751_v57 = vld [vmem:[#allocation19 + $0x71c] sm:$0xf]  ;;  %v5321_v51 = vor.u32 %v6623_v41, %v5318_v45 }
 0x31e   :  { %3133 = vmatpush.bf16.msrb.mxu2 %v5701_v1  ;;  %3152 = vmatpush.bf16.msra.mxu0 %v5417_v56  ;;  %v3198_v24 = vadd.f32 %v3197_v36, %v7782_v31  ;;  %v3261_v1 = vrot.slane %v3248_v32, 4  ;;  %v5030_v62 = vld [vmem:[#allocation19 + $0xf8] sm:$0xf0]  ;;  %v5833_v14 = vor.u32 %v6751_v57, %v5830_v61  ;;  %v7793_v44 = vadd.f32 0.8, %v3327_v55  ;;  %v2888_v22 = vpop.f32.mrf.mxu3 }
 0x31f   :  { %3121 = vmatmul.bf16.vlgmr.msrb.gmra.mxu1 %v7737_v19  ;;  %v5286_v4 = vld [vmem:[#allocation19 + $0x2f8] sm:$0xf0] }
 0x320   :  { %3165 = vmatpush.bf16.msra.mxu1 %v5673_v2  ;;  %3140 = vmatpush.bf16.msrb.mxu3 %v5129_v7  ;;  %v3199_v56 = vrot.slane %v3198_v24, 2  ;;  %v3262_v58 = vadd.f32 %v3261_v1, %v3248_v32  ;;  %v6615_v2 = vld [vmem:[#allocation19 + $0x2dc] sm:$0xf]  ;;  %v5033_v7 = vor.u32 %v6551_v53, %v5030_v62  ;;  %6947 = vrsqrt.f32 %v7793_v44 }
 0x321   :  { %3134 = vmatmul.bf16.vlgmr.msrb.gmra.mxu2 %v7735_v18  ;;  %v6679_v9 = vld [vmem:[#allocation19 + $0x4dc] sm:$0xf]  ;;  %vm3350_vm3 = vweird.f32 %v7793_v44 }
 0x322   :  { %3178 = vmatpush.bf16.msra.mxu2 %v5929_v3  ;;  %3153 = vmatpush.bf16.msra.mxu0 %v5385_v10  ;;  %v5577_v3 = vor.u32 %v6687_v48, %v5574_v49  ;;  %v5542_v46 = vld [vmem:[#allocation19 + $0x4f8] sm:$0xf0]  ;;  %v3200_v54 = vadd.f32 %v3199_v56, %v3198_v24  ;;  %v3263_v5 = vrot.slane %v3262_v58, 2 }
 0x323   :  { %v6743_v8 = vld [vmem:[#allocation19 + $0x6dc] sm:$0xf]  ;;  %v5545_v27 = vor.u32 %v6679_v9, %v5542_v46 }
 0x324   :  { %3166 = vmatpush.bf16.msra.mxu1 %v5641_v21  ;;  %3141 = vmatpush.bf16.msrb.mxu3 %v5097_v63  ;;  %v5798_v47 = vld [vmem:[#allocation19 + $0x6f8] sm:$0xf0]  ;;  %v3201_v39 = vrot.slane %v3200_v54, 1  ;;  %v3264_v21 = vadd.f32 %v3263_v5, %v3262_v58  ;;  %v2889_v63 = vadd.f32 %v2888_v22, %v1481_v15  ;;  %v2927_v29 = vpop.f32.mrf.mxu2  ;;  %v2903_v36 = vpop.f32.mrf.mxu0 }
 0x325   :  { %v6543_v10 = vld [vmem:[#allocation19 + $0x9c] sm:$0xf]  ;;  %v5801_v28 = vor.u32 %v6743_v8, %v5798_v47 }
 0x326   :  { %3179 = vmatpush.bf16.msra.mxu2 %v5897_v13  ;;  %3154 = vmatpush.bf16.msra.mxu0 %v5353_v37  ;;  %v4998_v0 = vld [vmem:[#allocation19 + $0xb8] sm:$0xf0]  ;;  %v5289_v13 = vor.u32 %v6615_v2, %v5286_v4  ;;  %v3202_v33 = vadd.f32 %v3201_v39, %v3200_v54  ;;  %v3265_v26 = vrot.slane %v3264_v21, 1  ;;  %v2902_v41 = vadd.f32 %v2901_v50, %v2889_v63  ;;  %v2890_v54 = vpop.f32.mrf.mxu3  ;;  %v7804_v47 = vpop.eup %6947 }
 0x327   :  { %v6607_v20 = vld [vmem:[#allocation19 + $0x29c] sm:$0xf]  ;;  %v5001_v32 = vor.u32 %v6543_v10, %v4998_v0  ;;  %v3345_v22 = vmul.f32 %v7804_v47, %v7793_v44  ;;  %vm3351_vm0 = vweird.f32 %v7804_v47 }
 0x328   :  { %3167 = vmatpush.bf16.msra.mxu1 %v5609_v42  ;;  %3142 = vmatpush.bf16.msrb.mxu3 %v5065_v52  ;;  %v5254_v23 = vld [vmem:[#allocation19 + $0x2b8] sm:$0xf0]  ;;  %v7797_v38 = vmul.f32 %v3202_v33, %v7536_v16  ;;  %v3266_v40 = vadd.f32 %v3265_v26, %v3264_v21  ;;  %v2916_v42 = vpop.f32.mrf.mxu1  ;;  %v2915_v53 = vadd.f32 %v2914_v60, %v2902_v41  ;;  %vm3352_vm4 = vmor %vm3350_vm3, %vm3351_vm0 }
 0x329   :  { %v6671_v30 = vld [vmem:[#allocation19 + $0x49c] sm:$0xf]  ;;  %v5257_v37 = vor.u32 %v6607_v20, %v5254_v23 }
 0x32a   :  { %3180 = vmatpush.bf16.msra.mxu2 %v5865_v43  ;;  %3155 = vmatpush.bf16.msra.mxu0 %v5321_v51  ;;  %v5510_v25 = vld [vmem:[#allocation19 + $0x4b8] sm:$0xf0]  ;;  %v3304_v61 = vmul.f32 %v3266_v40, %v7536_v16  ;;  %v3312_v52 = vmul.f32 %v7797_v38, %v7797_v38  ;;  %v7802_v62 = vadd.f32 %v2927_v29, %v2915_v53 }
 0x32b   :  { %v6735_v34 = vld [vmem:[#allocation19 + $0x69c] sm:$0xf]  ;;  %v5513_v48 = vor.u32 %v6671_v30, %v5510_v25 }
 0x32c   :  { %3168 = vmatpush.bf16.msra.mxu1 %v5577_v3  ;;  %v5766_v35 = vld [vmem:[#allocation19 + $0x6b8] sm:$0xf0]  ;;  %3143 = vmatpush.bf16.msrb.mxu3 %v5033_v7  ;;  %v3320_v51 = vsub.f32 %v3304_v61, %v3312_v52  ;;  %v3203_v7 = vrot.slane %v7802_v62, 4  ;;  %v3249_v10 = vmul.f32 %v7802_v62, %v7802_v62  ;;  %v2929_v0 = vpop.f32.mrf.mxu2 }
 0x32d   :  { %v6535_v43 = vld [vmem:[#allocation19 + $0x5c] sm:$0xf]  ;;  %v5769_v49 = vor.u32 %v6735_v34, %v5766_v35  ;;  %v3346_v34 = vmul.f32 %v7804_v47, %v3345_v22 }
 0x32e   :  { %3181 = vmatpush.bf16.msra.mxu2 %v5833_v14  ;;  %3156 = vmatpush.bf16.msra.mxu0 %v5289_v13  ;;  %v4966_v45 = vld [vmem:[#allocation19 + $0x78] sm:$0xf0]  ;;  %v3328_v15 = vmax.f32 %v3320_v51, 0.0  ;;  %v3204_v23 = vadd.f32 %v3203_v7, %v7802_v62 }
 0x32f   :  { %v6599_v24 = vld [vmem:[#allocation19 + $0x25c] sm:$0xf]  ;;  %v4969_v50 = vor.u32 %v6535_v43, %v4966_v45 }
 0x330   :  { %3169 = vmatpush.bf16.msra.mxu1 %v5545_v27  ;;  %v5222_v1 = vld [vmem:[#allocation19 + $0x278] sm:$0xf0]  ;;  %3144 = vmatpush.bf16.msrb.mxu3 %v5001_v32  ;;  %v3337_v13 = vadd.f32 0.8, %v3328_v15  ;;  %v3267_v27 = vrot.slane %v3249_v10, 4  ;;  %v3205_v33 = vrot.slane %v3204_v23, 2 }
 0x331   :  { %v6663_v57 = vld [vmem:[#allocation19 + $0x45c] sm:$0xf]  ;;  %v5225_v2 = vor.u32 %v6599_v24, %v5222_v1 }
 0x332   :  { %3182 = vmatpush.bf16.msra.mxu2 %v5801_v28  ;;  %v5478_v55 = vld [vmem:[#allocation19 + $0x478] sm:$0xf0]  ;;  %3157 = vmatpush.bf16.msra.mxu0 %v5257_v37  ;;  %6949 = vrsqrt.f32 %v3337_v13  ;;  %v3268_v26 = vadd.f32 %v3267_v27, %v3249_v10  ;;  %v3206_v63 = vadd.f32 %v3205_v33, %v3204_v23  ;;  %v3347_v37 = vmul.f32 0.5, %v3346_v34 }
 0x333   :  { %v6727_v56 = vld [vmem:[#allocation19 + $0x65c] sm:$0xf]  ;;  %v5481_v9 = vor.u32 %v6663_v57, %v5478_v55  ;;  %v1482_v57 = vperm.slane %v7766_v6, 3  ;;  %vm3360_vm1 = vweird.f32 %v3337_v13 }
 0x334   :  { %v5734_v58 = vld [vmem:[#allocation19 + $0x678] sm:$0xf0]  ;;  %3170 = vmatpush.bf16.msra.mxu1 %v5513_v48  ;;  %3145 = vmatpush.bf16.msrb.mxu3 %v4969_v50  ;;  %v3269_v29 = vrot.slane %v3268_v26, 2  ;;  %v3207_v36 = vrot.slane %v3206_v63, 1  ;;  %v3348_v45 = vsub.f32 1.5, %v3347_v37 }
 0x335   :  { %v6527_v3 = vld [vmem:[#allocation19 + $0x1c] sm:$0xf]  ;;  %v5737_v46 = vor.u32 %v6727_v56, %v5734_v58 }
 0x336   :  { %v4934_v14 = vld [vmem:[#allocation19 + $0x38] sm:$0xf0]  ;;  %3183 = vmatpush.bf16.msra.mxu2 %v5769_v49  ;;  %3158 = vmatpush.bf16.msra.mxu0 %v5225_v2  ;;  %v3270_v32 = vadd.f32 %v3269_v29, %v3268_v26  ;;  %v3208_v42 = vadd.f32 %v3207_v36, %v3206_v63 }
 0x337   :  { %v6591_v4 = vld [vmem:[#allocation19 + $0x21c] sm:$0xf]  ;;  %v4937_v21 = vor.u32 %v6527_v3, %v4934_v14 }
 0x338   :  { %v5190_v5 = vld [vmem:[#allocation19 + $0x238] sm:$0xf0]  ;;  %3171 = vmatpush.bf16.msra.mxu1 %v5481_v9  ;;  %v6950_v35 = vpop.eup %6949  ;;  %v3271_v43 = vrot.slane %v3270_v32, 1 }
 0x339   :  { %v6655_v60 = vld [vmem:[#allocation19 + $0x41c] sm:$0xf]  ;;  %v5193_v28 = vor.u32 %v6591_v4, %v5190_v5  ;;  %3146 = vmatpush.bf16.msrb.mxu3 %v4937_v21  ;;  %v3355_v40 = vmul.f32 %v6950_v35, %v3337_v13  ;;  %vm3361_vm15 = vweird.f32 %v6950_v35 }
 0x33a   :  { %v5446_v8 = vld [vmem:[#allocation19 + $0x438] sm:$0xf0]  ;;  %3184 = vmatpush.bf16.msra.mxu2 %v5737_v46  ;;  %v2953_v49 = vpop.f32.mrf.mxu0  ;;  %vm3362_vm2 = vmor %vm3360_vm1, %vm3361_vm15 }
 0x33b   :  { %v6719_v20 = vld [vmem:[#allocation19 + $0x61c] sm:$0xf]  ;;  %v5449_v30 = vor.u32 %v6655_v60, %v5446_v8  ;;  %3159 = vmatpush.bf16.msra.mxu0 %v5193_v28  ;;  %v3356_v41 = vmul.f32 %v6950_v35, %v3355_v40 }
 0x33c   :  { %v5702_v39 = vld [vmem:[#allocation19 + $0x638] sm:$0xf0]  ;;  %3147 = vmatmul.bf16.vlgmr.msrb.gmra.mxu3 %v7731_v11  ;;  %v2966_v24 = vpop.f32.mrf.mxu1  ;;  %v7818_v11 = vmul.f32 %v3208_v42, %v7536_v16 }
 0x33d   :  { %v5705_v25 = vor.u32 %v6719_v20, %v5702_v39  ;;  %3172 = vmatpush.bf16.msra.mxu1 %v5449_v30  ;;  %v3357_v48 = vmul.f32 0.5, %v3356_v41 }
 0x33e   :  { %3160 = vmatmul.bf16.vlgmr.msra.gmra.mxu0 %v7733_v12  ;;  %v3272_v12 = vadd.f32 %v3271_v43, %v3270_v32  ;;  %v2940_v52 = vpop.f32.mrf.mxu3  ;;  %v3313_v56 = vmul.f32 %v7818_v11, %v7818_v11  ;;  %v1483_v32 = vperm.slane %v7766_v6, 4 }
 0x33f   :  { %3185 = vmatpush.bf16.msra.mxu2 %v5705_v25  ;;  %v3358_v1 = vsub.f32 1.5, %v3357_v48  ;;  %v2941_v58 = vadd.f32 %v2940_v52, %v1482_v57 }
 0x340   :  { %3173 = vmatmul.bf16.vlgmr.msra.gmra.mxu1 %v7737_v19  ;;  %v3349_v19 = vmul.f32 %v7804_v47, %v3348_v45  ;;  %v3305_v55 = vmul.f32 %v3272_v12, %v7536_v16 }
 0x341   :  { %v2954_v3 = vadd.f32 %v2953_v49, %v2941_v58 }
 0x342   :  { %3186 = vmatmul.bf16.vlgmr.msra.gmra.mxu2 %v7735_v18  ;;  %v3359_v18 = vmul.f32 %v6950_v35, %v3358_v1  ;;  %v3353_v51 = vsel %vm3352_vm4, %v7804_v47, %v3349_v19  ;;  %v2955_v2 = vpop.f32.mrf.mxu0  ;;  %v3321_v44 = vsub.f32 %v3305_v55, %v3313_v56 }
 0x343   :  { %v2967_v9 = vadd.f32 %v2966_v24, %v2954_v3 }
 0x344   :  { %v3363_v61 = vsel %vm3362_vm2, %v6950_v35, %v3359_v18  ;;  %v2979_v50 = vpop.f32.mrf.mxu2  ;;  %v2968_v14 = vpop.f32.mrf.mxu1  ;;  %v3329_v5 = vmax.f32 %v3321_v44, 0.0 }
 0x345   :  { %v3432_v53 = vrot.slane %v3363_v61, 7  ;;  %v7831_v46 = vadd.f32 %v2979_v50, %v2967_v9 }
 0x346   :  { %v2942_v54 = vpop.f32.mrf.mxu3  ;;  %v3338_v10 = vadd.f32 0.8, %v3329_v5 }
 0x347   :  { %v7829_v4 = vsel %vm498_vm8, %v3353_v51, %v3432_v53  ;;  %v3209_v60 = vrot.slane %v7831_v46, 4  ;;  %v3250_v8 = vmul.f32 %v7831_v46, %v7831_v46 }
 0x348   :  { %6951 = vrsqrt.f32 %v3338_v10  ;;  %vm3370_vm6 = vweird.f32 %v3338_v10 }
 0x349   :  { %v3210_v47 = vadd.f32 %v3209_v60, %v7831_v46  ;;  %v3273_v7 = vrot.slane %v3250_v8, 4  ;;  %v1484_v60 = vperm.slane %v7766_v6, 5 }
 0x34b   :  { %v3211_v0 = vrot.slane %v3210_v47, 2  ;;  %v3274_v20 = vadd.f32 %v3273_v7, %v3250_v8 }
 0x34c   :  { %v2981_v15 = vpop.f32.mrf.mxu2 }
 0x34d   :  { %v3212_v39 = vadd.f32 %v3211_v0, %v3210_v47  ;;  %v3275_v21 = vrot.slane %v3274_v20, 2 }
 0x34e   :  { %v6952_v25 = vpop.eup %6951 }
 0x34f   :  { %v3213_v13 = vrot.slane %v3212_v39, 1  ;;  %v3276_v23 = vadd.f32 %v3275_v21, %v3274_v20  ;;  %v3365_v35 = vmul.f32 %v6952_v25, %v3338_v10  ;;  %vm3371_vm5 = vweird.f32 %v6952_v25 }
 0x350   :  { %vm3372_vm11 = vmor %vm3370_vm6, %vm3371_vm5 }
 0x351   :  { %v3214_v27 = vadd.f32 %v3213_v13, %v3212_v39  ;;  %v3277_v28 = vrot.slane %v3276_v23, 1  ;;  %v3366_v40 = vmul.f32 %v6952_v25, %v3365_v35 }
 0x353   :  { %v7838_v22 = vmul.f32 %v3214_v27, %v7536_v16  ;;  %v3278_v30 = vadd.f32 %v3277_v28, %v3276_v23  ;;  %v3367_v24 = vmul.f32 0.5, %v3366_v40 }
 0x355   :  { %v3306_v33 = vmul.f32 %v3278_v30, %v7536_v16  ;;  %v3314_v26 = vmul.f32 %v7838_v22, %v7838_v22  ;;  %v3368_v19 = vsub.f32 1.5, %v3367_v24 }
 0x357   :  { %v3322_v29 = vsub.f32 %v3306_v33, %v3314_v26  ;;  %v3369_v55 = vmul.f32 %v6952_v25, %v3368_v19  ;;  %v1485_v33 = vperm.slane %v7766_v6, 6 }
 0x359   :  { %v3330_v36 = vmax.f32 %v3322_v29, 0.0  ;;  %v3373_v50 = vsel %vm3372_vm11, %v6952_v25, %v3369_v55 }
 0x35a   :  { %v3005_v63 = vpop.f32.mrf.mxu0  ;;  %v3433_v3 = vrot.slane %v3373_v50, 6 }
 0x35b   :  { %v3339_v37 = vadd.f32 0.8, %v3330_v36 }
 0x35c   :  { %v3018_v34 = vpop.f32.mrf.mxu1 }
 0x35d   :  { %6953 = vrsqrt.f32 %v3339_v37  ;;  %vm3380_vm12 = vweird.f32 %v3339_v37 }
 0x35e   :  { %v2992_v41 = vpop.f32.mrf.mxu3 }
 0x35f   :  { %v2993_v42 = vadd.f32 %v2992_v41, %v1483_v32 }
 0x361   :  { %v3006_v48 = vadd.f32 %v3005_v63, %v2993_v42 }
 0x362   :  { %v3007_v45 = vpop.f32.mrf.mxu0 }
 0x363   :  { %v3019_v1 = vadd.f32 %v3018_v34, %v3006_v48  ;;  %v6954_v12 = vpop.eup %6953 }
 0x364   :  { %v3031_v43 = vpop.f32.mrf.mxu2  ;;  %v3020_v49 = vpop.f32.mrf.mxu1  ;;  %v3375_v18 = vmul.f32 %v6954_v12, %v3339_v37  ;;  %vm3381_vm7 = vweird.f32 %v6954_v12 }
 0x365   :  { %v7844_v57 = vadd.f32 %v3031_v43, %v3019_v1  ;;  %vm3382_vm13 = vmor %vm3380_vm12, %vm3381_vm7 }
 0x366   :  { %v2994_v61 = vpop.f32.mrf.mxu3  ;;  %v3376_v53 = vmul.f32 %v6954_v12, %v3375_v18 }
 0x367   :  { %v3215_v23 = vrot.slane %v7844_v57, 4 }
 0x368   :  { %v3377_v56 = vmul.f32 0.5, %v3376_v53 }
 0x369   :  { %v3216_v26 = vadd.f32 %v3215_v23, %v7844_v57  ;;  %v6827_v23 = vld [vmem:[#allocation23 + $0x174] sm:$0xf0] }
 0x36a   :  { %v3378_v58 = vsub.f32 1.5, %v3377_v56 }
 0x36b   :  { %v3217_v37 = vrot.slane %v3216_v26, 2 }
 0x36c   :  { %v3033_v52 = vpop.f32.mrf.mxu2  ;;  %v3379_v51 = vmul.f32 %v6954_v12, %v3378_v58 }
 0x36d   :  { %v3218_v24 = vadd.f32 %v3217_v37, %v3216_v26  ;;  %v5980_v26 = vld [vmem:[#allocation23 + $0x60] sm:$0xf] }
 0x36e   :  { %v3383_v2 = vsel %vm3382_vm13, %v6954_v12, %v3379_v51  ;;  %v6108_v37 = vld [vmem:[#allocation23 + $0x160] sm:$0xf]  ;;  %vm3442_vm13 = vcmask 1044484  }
 0x36f   :  { %v3434_v14 = vrot.slane %v3383_v2, 5  ;;  %v3219_v55 = vrot.slane %v3218_v24, 1 }
 0x371   :  { %v3440_v44 = vsel %vm1156_vm9, %v3433_v3, %v3434_v14 }
 0x372   :  { %v7849_v9 = vsel %vm1158_vm10, %v7829_v4, %v3440_v44  ;;  %v3251_v4 = vmul.f32 %v7844_v57, %v7844_v57  ;;  %v3220_v44 = vadd.f32 %v3219_v55, %v3218_v24 }
 0x374   :  { %v3279_v63 = vrot.slane %v3251_v4, 4 }
 0x376   :  { %v3280_v40 = vadd.f32 %v3279_v63, %v3251_v4  ;;  %v6180_v4 = vld [vmem:[#allocation23 + $0x1f0] sm:$0xf]  ;;  %v6793_v63 = vld [vmem:[#allocation23 + $0x64] sm:$0xf0] }
 0x378   :  { %v3281_v1 = vrot.slane %v3280_v40, 2 }
 0x37a   :  { %v3057_v54 = vpop.f32.mrf.mxu0  ;;  %v3282_v56 = vadd.f32 %v3281_v1, %v3280_v40 }
 0x37c   :  { %v3070_v5 = vpop.f32.mrf.mxu1 }
 0x37e   :  { %v3044_v8 = vpop.f32.mrf.mxu3 }
 0x37f   :  { %v3045_v15 = vadd.f32 %v3044_v8, %v1484_v60  ;;  %v6795_v60 = vld [vmem:[#allocation23 + $0x74] sm:$0xf0] }
 0x381   :  { %v3058_v10 = vadd.f32 %v3057_v54, %v3045_v15  ;;  %v3283_v54 = vrot.slane %v3282_v56, 1 }
 0x382   :  { %v3059_v7 = vpop.f32.mrf.mxu0 }
 0x383   :  { %v3071_v20 = vadd.f32 %v3070_v5, %v3058_v10  ;;  %v5988_v5 = vld [vmem:[#allocation23 + $0x70] sm:$0xf] }
 0x384   :  { %v3083_v47 = vpop.f32.mrf.mxu2  ;;  %v3072_v0 = vpop.f32.mrf.mxu1  ;;  %v5989_v7 = vor.u32 %v6795_v60, %v5988_v5  ;;  %v6052_v10 = vld [vmem:[#allocation23 + $0xf0] sm:$0xf]  ;;  %v6839_v60 = vld [vmem:[#allocation23 + $0x1d4] sm:$0xf0] }
 0x385   :  { %v7852_v39 = vadd.f32 %v3083_v47, %v3071_v20  ;;  %v6811_v0 = vld [vmem:[#allocation23 + $0xf4] sm:$0xf0]  ;;  %v6164_v5 = vld [vmem:[#allocation23 + $0x1d0] sm:$0xf] }
 0x386   :  { %v3046_v21 = vpop.f32.mrf.mxu3  ;;  %4341 = vmatpush.bf16.msra.mxu3 %v5989_v7 }
 0x387   :  { %v3252_v28 = vmul.f32 %v7852_v39, %v7852_v39  ;;  %v3221_v25 = vrot.slane %v7852_v39, 4  ;;  %v6053_v21 = vor.u32 %v6811_v0, %v6052_v10  ;;  %v6165_v10 = vor.u32 %v6839_v60, %v6164_v5  ;;  %v5964_v0 = vld [vmem:[#allocation23 + $0x40] sm:$0xf] }
 0x388   :  { %v6012_v5 = vld [vmem:[#allocation23 + $0xa0] sm:$0xf] }
 0x389   :  { %v3285_v29 = vrot.slane %v3252_v28, 4  ;;  %v3222_v34 = vadd.f32 %v3221_v25, %v7852_v39  ;;  %v6843_v25 = vld [vmem:[#allocation23 + $0x1f4] sm:$0xf0]  ;;  %4354 = vmatpush.bf16.msrb.mxu0 %v6053_v21  ;;  %v6028_v21 = vld [vmem:[#allocation23 + $0xc0] sm:$0xf] }
 0x38b   :  { %v3286_v42 = vadd.f32 %v3285_v29, %v3252_v28  ;;  %v3223_v48 = vrot.slane %v3222_v34, 2  ;;  %v6044_v29 = vld [vmem:[#allocation23 + $0xe0] sm:$0xf] }
 0x38c   :  { %v3085_v13 = vpop.f32.mrf.mxu2 }
 0x38d   :  { %v3287_v6 = vrot.slane %v3286_v42, 2  ;;  %v3224_v19 = vadd.f32 %v3223_v48, %v3222_v34  ;;  %v6116_v13 = vld [vmem:[#allocation23 + $0x170] sm:$0xf]  ;;  %v7870_v34 = vmul.f32 %v3220_v44, %v7536_v16  ;;  %v6841_v48 = vld [vmem:[#allocation23 + $0x1e4] sm:$0xf0] }
 0x38f   :  { %v3288_v58 = vadd.f32 %v3287_v6, %v3286_v42  ;;  %v3225_v2 = vrot.slane %v3224_v19, 1 }
 0x391   :  { %v3289_v8 = vrot.slane %v3288_v58, 1  ;;  %v3226_v20 = vadd.f32 %v3225_v2, %v3224_v19  ;;  %v5972_v19 = vld [vmem:[#allocation23 + $0x50] sm:$0xf] }
 0x393   :  { %v7873_v40 = vmul.f32 %v3226_v20, %v7536_v16  ;;  %v6789_v20 = vld [vmem:[#allocation23 + $0x44] sm:$0xf0] }
 0x39a   :  { %v3109_v27 = vpop.f32.mrf.mxu0 }
 0x39c   :  { %v3122_v30 = vpop.f32.mrf.mxu1 }
 0x39e   :  { %v3096_v35 = vpop.f32.mrf.mxu3 }
 0x39f   :  { %v3097_v36 = vadd.f32 %v3096_v35, %v1485_v33  ;;  %v6181_v33 = vor.u32 %v6843_v25, %v6180_v4  ;;  %v3284_v35 = vadd.f32 %v3283_v54, %v3282_v56  ;;  %v6092_v4 = vld [vmem:[#allocation23 + $0x140] sm:$0xf] }
 0x3a1   :  { %v3110_v43 = vadd.f32 %v3109_v27, %v3097_v36  ;;  %v5981_v36 = vor.u32 %v6793_v63, %v5980_v26  ;;  %4380 = vmatpush.bf16.msrb.mxu2 %v6181_v33  ;;  %v6156_v33 = vld [vmem:[#allocation23 + $0x1c0] sm:$0xf]  ;;  %v6837_v26 = vld [vmem:[#allocation23 + $0x1c4] sm:$0xf0] }
 0x3a2   :  { %v3111_v41 = vpop.f32.mrf.mxu0 }
 0x3a3   :  { %v3123_v49 = vadd.f32 %v3122_v30, %v3110_v43  ;;  %v6117_v30 = vor.u32 %v6827_v23, %v6116_v13  ;;  %v3290_v41 = vadd.f32 %v3289_v8, %v3288_v58  ;;  %v6825_v43 = vld [vmem:[#allocation23 + $0x164] sm:$0xf0]  ;;  %4342 = vmatpush.bf16.msra.mxu3 %v5981_v36  ;;  %v6807_v58 = vld [vmem:[#allocation23 + $0xd4] sm:$0xf0]  ;;  %v5965_v13 = vor.u32 %v6789_v20, %v5964_v0  ;;  %v6140_v20 = vld [vmem:[#allocation23 + $0x1a0] sm:$0xf] }
 0x3a4   :  { %v3135_v32 = vpop.f32.mrf.mxu2  ;;  %v3124_v45 = vpop.f32.mrf.mxu1  ;;  %v6109_v1 = vor.u32 %v6825_v43, %v6108_v37  ;;  %v6805_v23 = vld [vmem:[#allocation23 + $0xc4] sm:$0xf0]  ;;  %v6787_v43 = vld [vmem:[#allocation23 + $0x34] sm:$0xf0] }
 0x3a5   :  { %v7863_v12 = vadd.f32 %v3135_v32, %v3123_v49  ;;  %4367 = vmatpush.bf16.msrb.mxu1 %v6117_v30  ;;  %v6809_v32 = vld [vmem:[#allocation23 + $0xe4] sm:$0xf0]  ;;  %v6172_v45 = vld [vmem:[#allocation23 + $0x1e0] sm:$0xf]  ;;  %v3308_v2 = vmul.f32 %v3290_v41, %v7536_v16  ;;  %v6029_v25 = vor.u32 %v6805_v23, %v6028_v21 }
 0x3a6   :  { %v3098_v18 = vpop.f32.mrf.mxu3  ;;  %v6045_v42 = vor.u32 %v6809_v32, %v6044_v29  ;;  %v6173_v6 = vor.u32 %v6841_v48, %v6172_v45  ;;  %v6157_v32 = vor.u32 %v6837_v26, %v6156_v33  ;;  %v6020_v45 = vld [vmem:[#allocation23 + $0xb0] sm:$0xf]  ;;  %v6833_v21 = vld [vmem:[#allocation23 + $0x1a4] sm:$0xf0]  ;;  %v6783_v33 = vld [vmem:[#allocation23 + $0x14] sm:$0xf0] }
 0x3a7   :  { %v3227_v61 = vrot.slane %v7863_v12, 4  ;;  %v3253_v52 = vmul.f32 %v7863_v12, %v7863_v12  ;;  %v6791_v18 = vld [vmem:[#allocation23 + $0x54] sm:$0xf0] }
 0x3a8   :  { %4355 = vmatpush.bf16.msrb.mxu0 %v6045_v42  ;;  %v5973_v56 = vor.u32 %v6791_v18, %v5972_v19  ;;  %4381 = vmatpush.bf16.msrb.mxu2 %v6173_v6  ;;  %v5956_v42 = vld [vmem:[#allocation23 + $0x30] sm:$0xf]  ;;  %v6819_v6 = vld [vmem:[#allocation23 + $0x134] sm:$0xf0] }
 0x3a9   :  { %v3228_v50 = vadd.f32 %v3227_v61, %v7863_v12  ;;  %v3291_v51 = vrot.slane %v3253_v52, 4  ;;  %v6036_v61 = vld [vmem:[#allocation23 + $0xd0] sm:$0xf]  ;;  %4368 = vmatpush.bf16.msrb.mxu1 %v6109_v1 }
 0x3aa   :  { %v6037_v44 = vor.u32 %v6807_v58, %v6036_v61  ;;  %4343 = vmatpush.bf16.msra.mxu3 %v5973_v56  ;;  %v6084_v1 = vld [vmem:[#allocation23 + $0x130] sm:$0xf]  ;;  %v6835_v56 = vld [vmem:[#allocation23 + $0x1b4] sm:$0xf0] }
 0x3ab   :  { %v3229_v3 = vrot.slane %v3228_v50, 2  ;;  %v3292_v14 = vadd.f32 %v3291_v51, %v3253_v52  ;;  %v3307_v52 = vmul.f32 %v3284_v35, %v7536_v16  ;;  %v6823_v51 = vld [vmem:[#allocation23 + $0x154] sm:$0xf0] }
 0x3ac   :  { %v3137_v53 = vpop.f32.mrf.mxu2  ;;  %4356 = vmatpush.bf16.msrb.mxu0 %v6037_v44  ;;  %4382 = vmatpush.bf16.msrb.mxu2 %v6165_v10  ;;  %v5948_v44 = vld [vmem:[#allocation23 + $0x20] sm:$0xf] }
 0x3ad   :  { %v3230_v15 = vadd.f32 %v3229_v3, %v3228_v50  ;;  %v3293_v47 = vrot.slane %v3292_v14, 2  ;;  %v3315_v53 = vmul.f32 %v7870_v34, %v7870_v34  ;;  %v6100_v50 = vld [vmem:[#allocation23 + $0x150] sm:$0xf]  ;;  %v3316_v3 = vmul.f32 %v7873_v40, %v7873_v40 }
 0x3ae   :  { %v6101_v54 = vor.u32 %v6823_v51, %v6100_v50  ;;  %4344 = vmatpush.bf16.msra.mxu3 %v5965_v13 }
 0x3af   :  { %v3231_v27 = vrot.slane %v3230_v15, 1  ;;  %v3294_v28 = vadd.f32 %v3293_v47, %v3292_v14  ;;  %v6967_v47 = vld [vmem:[%s8078_s12] sm:$0xff]  ;;  %v3324_v30 = vsub.f32 %v3308_v2, %v3316_v3 }
 0x3b0   :  { %v1486_v7 = vperm.slane %v6967_v47, 7  ;;  %4369 = vmatpush.bf16.msrb.mxu1 %v6101_v54  ;;  %4357 = vmatpush.bf16.msrb.mxu0 %v6029_v25  ;;  %v6785_v54 = vld [vmem:[#allocation23 + $0x24] sm:$0xf0] }
 0x3b1   :  { %v3232_v49 = vadd.f32 %v3231_v27, %v3230_v15  ;;  %v3295_v24 = vrot.slane %v3294_v28, 1  ;;  %v3323_v27 = vsub.f32 %v3307_v52, %v3315_v53  ;;  %4383 = vmatpush.bf16.msrb.mxu2 %v6157_v32  ;;  %v6085_v52 = vor.u32 %v6819_v6, %v6084_v1  ;;  %v6148_v53 = vld [vmem:[#allocation23 + $0x1b0] sm:$0xf]  ;;  %v6817_v47 = vld [vmem:[#allocation23 + $0x124] sm:$0xf0] }
 0x3b2   :  { %v3332_v50 = vmax.f32 %v3324_v30, 0.0  ;;  %v6149_v2 = vor.u32 %v6835_v56, %v6148_v53  ;;  %v5949_v60 = vor.u32 %v6785_v54, %v5948_v44  ;;  %v6797_v53 = vld [vmem:[#allocation23 + $0x84] sm:$0xf0]  ;;  %v6060_v56 = vld [vmem:[#allocation23 + $0x100] sm:$0xf] }
 0x3b3   :  { %v7882_v8 = vmul.f32 %v3232_v49, %v7536_v16  ;;  %v3296_v15 = vadd.f32 %v3295_v24, %v3294_v28  ;;  %v6821_v28 = vld [vmem:[#allocation23 + $0x144] sm:$0xf0]  ;;  %v5957_v49 = vor.u32 %v6787_v43, %v5956_v42  ;;  %v6803_v24 = vld [vmem:[#allocation23 + $0xb4] sm:$0xf0]  ;;  %v3331_v58 = vmax.f32 %v3323_v27, 0.0 }
 0x3b4   :  { %v6093_v36 = vor.u32 %v6821_v28, %v6092_v4  ;;  %v6021_v61 = vor.u32 %v6803_v24, %v6020_v45  ;;  %v6141_v4 = vor.u32 %v6833_v21, %v6140_v20  ;;  %v5940_v28 = vld [vmem:[#allocation23 + $0x10] sm:$0xf]  ;;  %v7897_v26 = vadd.f32 0.8, %v3332_v50  ;;  %v6815_v42 = vld [vmem:[#allocation23 + $0x114] sm:$0xf0] }
 0x3b5   :  { %v3309_v63 = vmul.f32 %v3296_v15, %v7536_v16  ;;  %v3317_v29 = vmul.f32 %v7882_v8, %v7882_v8  ;;  %4345 = vmatpush.bf16.msra.mxu3 %v5957_v49  ;;  %v6801_v15 = vld [vmem:[#allocation23 + $0xa4] sm:$0xf0]  ;;  %4384 = vmatpush.bf16.msrb.mxu2 %v6149_v2  ;;  %v7892_v13 = vadd.f32 0.8, %v3331_v58  ;;  %v6831_v49 = vld [vmem:[#allocation23 + $0x194] sm:$0xf0] }
 0x3b6   :  { %4370 = vmatpush.bf16.msrb.mxu1 %v6093_v36  ;;  %4358 = vmatpush.bf16.msrb.mxu0 %v6021_v61  ;;  %v6013_v10 = vor.u32 %v6801_v15, %v6012_v5  ;;  %v6813_v2 = vld [vmem:[#allocation23 + $0x104] sm:$0xf0]  ;;  %v6244_v5 = vld [vmem:[#allocation23 + $0x270] sm:$0xf]  ;;  %vm3400_vm2 = vweird.f32 %v7897_v26 }
 0x3b7   :  { %v3325_v51 = vsub.f32 %v3309_v63, %v3317_v29  ;;  %v5941_v63 = vor.u32 %v6783_v33, %v5940_v28  ;;  %v6004_v29 = vld [vmem:[#allocation23 + $0x90] sm:$0xf]  ;;  %6955 = vrsqrt.f32 %v7892_v13  ;;  %v6061_v44 = vor.u32 %v6813_v2, %v6060_v56  ;;  %v6829_v54 = vld [vmem:[#allocation23 + $0x184] sm:$0xf0]  ;;  %v6236_v28 = vld [vmem:[#allocation23 + $0x260] sm:$0xf] }
 0x3b8   :  { %6957 = vrsqrt.f32 %v7897_v26  ;;  %v6228_v56 = vld [vmem:[#allocation23 + $0x250] sm:$0xf]  ;;  %vm3390_vm15 = vweird.f32 %v7892_v13 }
 0x3b9   :  { %v3333_v23 = vmax.f32 %v3325_v51, 0.0  ;;  %4346 = vmatpush.bf16.msra.mxu3 %v5949_v60  ;;  %4385 = vmatpush.bf16.msrb.mxu2 %v6141_v4  ;;  %v6859_v60 = vld [vmem:[#allocation23 + $0x274] sm:$0xf0]  ;;  %v6436_v4 = vld [vmem:[#allocation23 + $0x3f0] sm:$0xf] }
 0x3ba   :  { %4371 = vmatpush.bf16.msrb.mxu1 %v6085_v52  ;;  %4359 = vmatpush.bf16.msrb.mxu0 %v6013_v10  ;;  %v5996_v52 = vld [vmem:[#allocation23 + $0x80] sm:$0xf]  ;;  %v6875_v10 = vld [vmem:[#allocation23 + $0x2f4] sm:$0xf0]  ;;  %v6245_v20 = vor.u32 %v6859_v60, %v6244_v5 }
 0x3bb   :  { %v3161_v55 = vpop.f32.mrf.mxu0  ;;  %v7900_v43 = vadd.f32 0.8, %v3333_v23  ;;  %v5997_v51 = vor.u32 %v6797_v53, %v5996_v52  ;;  %v6372_v23 = vld [vmem:[#allocation23 + $0x370] sm:$0xf]  ;;  %v6887_v5 = vld [vmem:[#allocation23 + $0x354] sm:$0xf0] }
 0x3bd   :  { %v3174_v14 = vpop.f32.mrf.mxu1  ;;  %4347 = vmatpush.bf16.msra.mxu3 %v5941_v63  ;;  %6959 = vrsqrt.f32 %v7900_v43  ;;  %v7905_v33 = vpop.eup %6955  ;;  %vm3410_vm5 = vweird.f32 %v7900_v43 }
 0x3be   :  { %vm3391_vm14 = vweird.f32 %v7905_v33 }
 0x3bf   :  { %v3148_v35 = vpop.f32.mrf.mxu3  ;;  %vm7937_vm0 = vmor %vm3390_vm15, %vm3391_vm14  ;;  %vm3444_vm14 = vcmask 1046534   ;;  %vm3446_vm15 = vcmask 1045508  }
 0x3c0   :  { %v3149_v37 = vadd.f32 %v3148_v35, %v1486_v7  ;;  %v6799_v35 = vld [vmem:[#allocation23 + $0x94] sm:$0xf0] }
 0x3c2   :  { %v3162_v19 = vadd.f32 %v3161_v55, %v3149_v37  ;;  %v6076_v55 = vld [vmem:[#allocation23 + $0x120] sm:$0xf]  ;;  %v6005_v37 = vor.u32 %v6799_v35, %v6004_v29  ;;  %v6857_v35 = vld [vmem:[#allocation23 + $0x264] sm:$0xf0] }
 0x3c3   :  { %v3163_v48 = vpop.f32.mrf.mxu0  ;;  %v6077_v0 = vor.u32 %v6817_v47, %v6076_v55  ;;  %v6308_v47 = vld [vmem:[#allocation23 + $0x2f0] sm:$0xf] }
 0x3c4   :  { %v3175_v3 = vadd.f32 %v3174_v14, %v3162_v19  ;;  %v6132_v48 = vld [vmem:[#allocation23 + $0x190] sm:$0xf]  ;;  %4360 = vmatpush.bf16.msrb.mxu0 %v6005_v37  ;;  %v5932_v19 = vld [vmem:[#allocation23] sm:$0xf]  ;;  %v6309_v21 = vor.u32 %v6875_v10, %v6308_v47  ;;  %v6903_v47 = vld [vmem:[#allocation23 + $0x3d4] sm:$0xf0] }
 0x3c5   :  { %v3187_v41 = vpop.f32.mrf.mxu2  ;;  %v3176_v18 = vpop.f32.mrf.mxu1  ;;  %4372 = vmatpush.bf16.msrb.mxu1 %v6077_v0  ;;  %v6133_v6 = vor.u32 %v6831_v49, %v6132_v48  ;;  %v6364_v48 = vld [vmem:[#allocation23 + $0x360] sm:$0xf]  ;;  %v6889_v49 = vld [vmem:[#allocation23 + $0x364] sm:$0xf0] }
 0x3c6   :  { %v7890_v7 = vadd.f32 %v3187_v41, %v3175_v3  ;;  %v6068_v41 = vld [vmem:[#allocation23 + $0x110] sm:$0xf]  ;;  %v6781_v18 = vld [vmem:[#allocation23 + $0x4] sm:$0xf0]  ;;  %v6124_v3 = vld [vmem:[#allocation23 + $0x180] sm:$0xf] }
 0x3c7   :  { %v3150_v14 = vpop.f32.mrf.mxu3  ;;  %v6069_v45 = vor.u32 %v6815_v42, %v6068_v41  ;;  %v5933_v61 = vor.u32 %v6781_v18, %v5932_v19  ;;  %4386 = vmatpush.bf16.msrb.mxu2 %v6133_v6  ;;  %v6125_v0 = vor.u32 %v6829_v54, %v6124_v3  ;;  %v6237_v42 = vor.u32 %v6857_v35, %v6236_v28  ;;  %v6428_v19 = vld [vmem:[#allocation23 + $0x3e0] sm:$0xf]  ;;  %v6905_v18 = vld [vmem:[#allocation23 + $0x3e4] sm:$0xf0]  ;;  %v6356_v54 = vld [vmem:[#allocation23 + $0x350] sm:$0xf] }
 0x3c8   :  { %v3233_v27 = vrot.slane %v7890_v7, 4  ;;  %v3254_v30 = vmul.f32 %v7890_v7, %v7890_v7  ;;  %4361 = vmatpush.bf16.msrb.mxu0 %v5997_v51  ;;  %v6891_v14 = vld [vmem:[#allocation23 + $0x374] sm:$0xf0]  ;;  %v6365_v6 = vor.u32 %v6889_v49, %v6364_v48  ;;  %v6429_v53 = vor.u32 %v6905_v18, %v6428_v19  ;;  %v6901_v35 = vld [vmem:[#allocation23 + $0x3c4] sm:$0xf0] }
 0x3c9   :  { %4373 = vmatpush.bf16.msrb.mxu1 %v6069_v45  ;;  %4348 = vmatpush.bf16.msra.mxu3 %v5933_v61  ;;  %v6373_v63 = vor.u32 %v6891_v14, %v6372_v23  ;;  %v6873_v45 = vld [vmem:[#allocation23 + $0x2e4] sm:$0xf0]  ;;  %v3385_v51 = vmul.f32 %v7905_v33, %v7892_v13  ;;  %v6357_v10 = vor.u32 %v6887_v5, %v6356_v54  ;;  %v6284_v23 = vld [vmem:[#allocation23 + $0x2c0] sm:$0xf]  ;;  %v6212_v49 = vld [vmem:[#allocation23 + $0x230] sm:$0xf] }
 0x3ca   :  { %v3234_v36 = vadd.f32 %v3233_v27, %v7890_v7  ;;  %v3297_v32 = vrot.slane %v3254_v30, 4  ;;  %v6867_v19 = vld [vmem:[#allocation23 + $0x2b4] sm:$0xf0]  ;;  %v6340_v18 = vld [vmem:[#allocation23 + $0x330] sm:$0xf] }
 0x3cb   :  { %4387 = vmatpush.bf16.msrb.mxu2 %v6125_v0  ;;  %v6204_v54 = vld [vmem:[#allocation23 + $0x220] sm:$0xf]  ;;  %v6849_v5 = vld [vmem:[#allocation23 + $0x224] sm:$0xf0]  ;;  %v6324_v13 = vld [vmem:[#allocation23 + $0x310] sm:$0xf] }
 0x3cc   :  { %v3235_v24 = vrot.slane %v3234_v36, 2  ;;  %v3298_v1 = vadd.f32 %v3297_v32, %v3254_v30  ;;  %v7907_v32 = vpop.eup %6957  ;;  %4406 = vmatpush.bf16.msra.mxu0 %v6309_v21  ;;  %v6853_v21 = vld [vmem:[#allocation23 + $0x244] sm:$0xf0] }
 0x3cd   :  { %v3189_v25 = vpop.f32.mrf.mxu2  ;;  %4374 = vmatpush.bf16.msrb.mxu1 %v6061_v44  ;;  %4393 = vmatpush.bf16.msrb.mxu3 %v6245_v20  ;;  %v3395_v2 = vmul.f32 %v7907_v32, %v7897_v26  ;;  %v6871_v44 = vld [vmem:[#allocation23 + $0x2d4] sm:$0xf0]  ;;  %v6220_v20 = vld [vmem:[#allocation23 + $0x240] sm:$0xf]  ;;  %vm3401_vm1 = vweird.f32 %v7907_v32 }
 0x3ce   :  { %v3236_v58 = vadd.f32 %v3235_v24, %v3234_v36  ;;  %v3299_v50 = vrot.slane %v3298_v1, 2  ;;  %v6907_v25 = vld [vmem:[#allocation23 + $0x3f4] sm:$0xf0]  ;;  %v6300_v36 = vld [vmem:[#allocation23 + $0x2e0] sm:$0xf]  ;;  %v7912_v24 = vpop.eup %6959  ;;  %v6221_v28 = vor.u32 %v6853_v21, %v6220_v20  ;;  %vm7950_vm4 = vmor %vm3400_vm2, %vm3401_vm1 }
 0x3cf   :  { %v6437_v29 = vor.u32 %v6907_v25, %v6436_v4  ;;  %v6869_v4 = vld [vmem:[#allocation23 + $0x2c4] sm:$0xf0]  ;;  %v3396_v25 = vmul.f32 %v7907_v32, %v3395_v2  ;;  %v6396_v20 = vld [vmem:[#allocation23 + $0x3a0] sm:$0xf]  ;;  %vm3411_vm3 = vweird.f32 %v7912_v24 }
 0x3d0   :  { %v3237_v15 = vrot.slane %v3236_v58, 1  ;;  %v3300_v55 = vadd.f32 %v3299_v50, %v3298_v1  ;;  %v6301_v1 = vor.u32 %v6873_v45, %v6300_v36  ;;  %v6292_v50 = vld [vmem:[#allocation23 + $0x2d0] sm:$0xf]  ;;  %v6897_v21 = vld [vmem:[#allocation23 + $0x3a4] sm:$0xf0]  ;;  %vm7960_vm6 = vmor %vm3410_vm5, %vm3411_vm3 }
 0x3d1   :  { %4419 = vmatpush.bf16.msra.mxu1 %v6373_v63  ;;  %4432 = vmatpush.bf16.msra.mxu2 %v6437_v29  ;;  %v6885_v63 = vld [vmem:[#allocation23 + $0x344] sm:$0xf0]  ;;  %v6412_v29 = vld [vmem:[#allocation23 + $0x3c0] sm:$0xf] }
 0x3d2   :  { %v3238_v27 = vadd.f32 %v3237_v15, %v3236_v58  ;;  %v3301_v30 = vrot.slane %v3300_v55, 1  ;;  %v6855_v58 = vld [vmem:[#allocation23 + $0x254] sm:$0xf0]  ;;  %4394 = vmatpush.bf16.msrb.mxu3 %v6237_v42  ;;  %4407 = vmatpush.bf16.msra.mxu0 %v6301_v1  ;;  %v6293_v15 = vor.u32 %v6871_v44, %v6292_v50  ;;  %v6285_v42 = vor.u32 %v6869_v4, %v6284_v23 }
 0x3d3   :  { %v6229_v3 = vor.u32 %v6855_v58, %v6228_v56  ;;  %v6413_v48 = vor.u32 %v6901_v35, %v6412_v29  ;;  %v6851_v1 = vld [vmem:[#allocation23 + $0x234] sm:$0xf0]  ;;  %v6404_v58 = vld [vmem:[#allocation23 + $0x3b0] sm:$0xf] }
 0x3d4   :  { %v7910_v37 = vmul.f32 %v3238_v27, %v7536_v16  ;;  %v3302_v41 = vadd.f32 %v3301_v30, %v3300_v55  ;;  %v6420_v55 = vld [vmem:[#allocation23 + $0x3d0] sm:$0xf]  ;;  %v6348_v27 = vld [vmem:[#allocation23 + $0x340] sm:$0xf]  ;;  %v3386_v30 = vmul.f32 %v7905_v33, %v3385_v51  ;;  %v6213_v56 = vor.u32 %v6851_v1, %v6212_v49  ;;  %v6899_v50 = vld [vmem:[#allocation23 + $0x3b4] sm:$0xf0] }
 0x3d5   :  { %4420 = vmatpush.bf16.msra.mxu1 %v6365_v6  ;;  %4433 = vmatpush.bf16.msra.mxu2 %v6429_v53  ;;  %v6421_v0 = vor.u32 %v6903_v47, %v6420_v55  ;;  %v6349_v45 = vor.u32 %v6885_v63, %v6348_v27  ;;  %v6276_v6 = vld [vmem:[#allocation23 + $0x2b0] sm:$0xf]  ;;  %v3397_v53 = vmul.f32 0.5, %v3396_v25  ;;  %v6405_v44 = vor.u32 %v6899_v50, %v6404_v58  ;;  %v6881_v55 = vld [vmem:[#allocation23 + $0x324] sm:$0xf0] }
 0x3d6   :  { %v3310_v61 = vmul.f32 %v3302_v41, %v7536_v16  ;;  %v3318_v52 = vmul.f32 %v7910_v37, %v7910_v37  ;;  %v3405_v16 = vmul.f32 %v7912_v24, %v7900_v43  ;;  %4395 = vmatpush.bf16.msrb.mxu3 %v6229_v3  ;;  %4408 = vmatpush.bf16.msra.mxu0 %v6293_v15  ;;  %v6332_v15 = vld [vmem:[#allocation23 + $0x320] sm:$0xf]  ;;  %v6847_v63 = vld [vmem:[#allocation23 + $0x214] sm:$0xf0]  ;;  %v6260_v29 = vld [vmem:[#allocation23 + $0x290] sm:$0xf] }
 0x3d7   :  { %v6277_v2 = vor.u32 %v6867_v19, %v6276_v6  ;;  %v6397_v25 = vor.u32 %v6897_v21, %v6396_v20  ;;  %v6879_v1 = vld [vmem:[#allocation23 + $0x314] sm:$0xf0]  ;;  %v6388_v6 = vld [vmem:[#allocation23 + $0x390] sm:$0xf] }
 0x3d8   :  { %v3326_v60 = vsub.f32 %v3310_v61, %v3318_v52  ;;  %v3406_v36 = vmul.f32 %v7912_v24, %v3405_v16  ;;  %v6883_v61 = vld [vmem:[#allocation23 + $0x334] sm:$0xf0]  ;;  %v3387_v52 = vmul.f32 0.5, %v3386_v30  ;;  %v6268_v16 = vld [vmem:[#allocation23 + $0x2a0] sm:$0xf]  ;;  %v6333_v30 = vor.u32 %v6881_v55, %v6332_v15 }
 0x3d9   :  { %4421 = vmatpush.bf16.msra.mxu1 %v6357_v10  ;;  %4434 = vmatpush.bf16.msra.mxu2 %v6421_v0  ;;  %v6341_v3 = vor.u32 %v6883_v61, %v6340_v18  ;;  %v3398_v10 = vsub.f32 1.5, %v3397_v53  ;;  %v6205_v0 = vor.u32 %v6849_v5, %v6204_v54  ;;  %v6895_v19 = vld [vmem:[#allocation23 + $0x394] sm:$0xf0]  ;;  %v6845_v53 = vld [vmem:[#allocation23 + $0x204] sm:$0xf0] }
 0x3da   :  { %v3334_v14 = vmax.f32 %v3326_v60, 0.0  ;;  %4396 = vmatpush.bf16.msrb.mxu3 %v6221_v28  ;;  %v3407_v51 = vmul.f32 0.5, %v3406_v36  ;;  %4409 = vmatpush.bf16.msra.mxu0 %v6285_v42  ;;  %v6865_v60 = vld [vmem:[#allocation23 + $0x2a4] sm:$0xf0]  ;;  %v3388_v47 = vsub.f32 1.5, %v3387_v52  ;;  %v6389_v26 = vor.u32 %v6895_v19, %v6388_v6 }
 0x3db   :  { %v6269_v4 = vor.u32 %v6865_v60, %v6268_v16  ;;  %v6196_v28 = vld [vmem:[#allocation23 + $0x210] sm:$0xf]  ;;  %v6863_v36 = vld [vmem:[#allocation23 + $0x294] sm:$0xf0]  ;;  %v6188_v52 = vld [vmem:[#allocation23 + $0x200] sm:$0xf] }
 0x3dc   :  { %v7926_v41 = vadd.f32 0.8, %v3334_v14  ;;  %v3408_v14 = vsub.f32 1.5, %v3407_v51  ;;  %v3389_v42 = vmul.f32 %v7905_v33, %v3388_v47  ;;  %v6197_v49 = vor.u32 %v6847_v63, %v6196_v28  ;;  %v6380_v54 = vld [vmem:[#allocation23 + $0x380] sm:$0xf] }
 0x3dd   :  { %4422 = vmatpush.bf16.msra.mxu1 %v6349_v45  ;;  %4435 = vmatpush.bf16.msra.mxu2 %v6413_v48  ;;  %v3399_v45 = vmul.f32 %v7907_v32, %v3398_v10  ;;  %v6261_v61 = vor.u32 %v6863_v36, %v6260_v29  ;;  %v6325_v51 = vor.u32 %v6879_v1, %v6324_v13  ;;  %v6893_v5 = vld [vmem:[#allocation23 + $0x384] sm:$0xf0] }
 0x3de   :  { %6961 = vrsqrt.f32 %v7926_v41  ;;  %4397 = vmatpush.bf16.msrb.mxu3 %v6213_v56  ;;  %4410 = vmatpush.bf16.msra.mxu0 %v6277_v2  ;;  %v3409_v18 = vmul.f32 %v7912_v24, %v3408_v14  ;;  %v6252_v56 = vld [vmem:[#allocation23 + $0x280] sm:$0xf]  ;;  %v6861_v2 = vld [vmem:[#allocation23 + $0x284] sm:$0xf0]  ;;  %v6189_v55 = vor.u32 %v6845_v53, %v6188_v52  ;;  %v3393_v43 = vsel %vm7937_vm0, %v7905_v33, %v3389_v42 }
 0x3df   :  { %v3403_v16 = vsel %vm7950_vm4, %v7907_v32, %v3399_v45  ;;  %v6253_v32 = vor.u32 %v6861_v2, %v6252_v56  ;;  %vm3420_vm11 = vweird.f32 %v7926_v41  ;;  %v6381_v20 = vor.u32 %v6893_v5, %v6380_v54 }
 0x3e0   :  { %v3413_v47 = vsel %vm7960_vm6, %v7912_v24, %v3409_v18  ;;  %v3436_v21 = vrot.slane %v3403_v16, 3  ;;  %v3435_v33 = vrot.slane %v3393_v43, 4  ;;  %vm3448_vm0 = vcmask 1043456  }
 0x3e1   :  { %4423 = vmatpush.bf16.msra.mxu1 %v6341_v3  ;;  %4436 = vmatpush.bf16.msra.mxu2 %v6405_v44  ;;  %v6316_v3 = vld [vmem:[#allocation23 + $0x300] sm:$0xf]  ;;  %v6877_v44 = vld [vmem:[#allocation23 + $0x304] sm:$0xf0] }
 0x3e2   :  { %4398 = vmatpush.bf16.msrb.mxu3 %v6205_v0  ;;  %4411 = vmatpush.bf16.msra.mxu0 %v6269_v4  ;;  %v6317_v0 = vor.u32 %v6877_v44, %v6316_v3  ;;  %v3437_v4 = vrot.slane %v3413_v47, 2 }
 0x3e4   :  { %v7930_v23 = vpop.eup %6961 }
 0x3e5   :  { %v3415_v27 = vmul.f32 %v7930_v23, %v7926_v41  ;;  %4424 = vmatpush.bf16.msra.mxu1 %v6333_v30  ;;  %4437 = vmatpush.bf16.msra.mxu2 %v6397_v25  ;;  %vm3421_vm7 = vweird.f32 %v7930_v23  ;;  %v3335_v41 = vld [vmem:[#allocation20] sm:$0xff] }
 0x3e6   :  { %4399 = vmatpush.bf16.msrb.mxu3 %v6197_v49  ;;  %4412 = vmatpush.bf16.msra.mxu0 %v6261_v61  ;;  %vm3422_vm12 = vmor %vm3420_vm11, %vm3421_vm7 }
 0x3e7   :  { %v3416_v48 = vmul.f32 %v7930_v23, %v3415_v27  ;;  %v3443_v27 = vsel %vm3442_vm13, %v3435_v33, %v3436_v21  ;;  %v6794_v33 = vld [vmem:[#allocation23 + $0x74] sm:$0xf] }
 0x3e9   :  { %v3417_v50 = vmul.f32 0.5, %v3416_v48  ;;  %4425 = vmatpush.bf16.msra.mxu1 %v6325_v51  ;;  %4438 = vmatpush.bf16.msra.mxu2 %v6389_v26 }
 0x3ea   :  { %4400 = vmatpush.bf16.msrb.mxu3 %v6189_v55  ;;  %4413 = vmatpush.bf16.msra.mxu0 %v6253_v32 }
 0x3eb   :  { %v3418_v15 = vsub.f32 1.5, %v3417_v50 }
 0x3ed   :  { %v3419_v10 = vmul.f32 %v7930_v23, %v3418_v15  ;;  %4426 = vmatpush.bf16.msra.mxu1 %v6317_v0  ;;  %4439 = vmatpush.bf16.msra.mxu2 %v6381_v20 }
 0x3ef   :  { %v3423_v14 = vsel %vm3422_vm12, %v7930_v23, %v3419_v10 }
 0x3f0   :  { %v3438_v24 = vrot.slane %v3423_v14, 1 }
 0x3f2   :  { %v3445_v30 = vsel %vm3444_vm14, %v3437_v4, %v3438_v24  ;;  %v5990_v4 = vld [vmem:[#allocation23 + $0x78] sm:$0xf0]  ;;  %v6810_v24 = vld [vmem:[#allocation23 + $0xf4] sm:$0xf] }
 0x3f3   :  { %v3447_v25 = vsel %vm3446_vm15, %v3443_v27, %v3445_v30 }
 0x3f4   :  { %v3449_v23 = vsel %vm3448_vm0, %v7849_v9, %v3447_v25 }
 0x3f5   :  { %v3451_v28 = vmul.f32 %v3449_v23, %v3335_v41  ;;  %v6826_v41 = vld [vmem:[#allocation23 + $0x174] sm:$0xf]  ;;  %v6118_v23 = vld [vmem:[#allocation23 + $0x178] sm:$0xf0] }
 0x3f7   :  { %v3454_v63 = vperm.slane %v3451_v28, 0  ;;  %v3455_v29 = vperm.slane %v3451_v28, 1  ;;  %v3456_v35 = vperm.slane %v3451_v28, 2  ;;  %v3457_v36 = vperm.slane %v3451_v28, 3 }
 0x3f8   :  { %v3458_v13 = vperm.slane %v3451_v28, 4  ;;  %v3459_v42 = vperm.slane %v3451_v28, 5  ;;  %v3460_v45 = vperm.slane %v3451_v28, 6  ;;  %v3461_v48 = vperm.slane %v3451_v28, 7 }
 0x3f9   :  { %v3470_v49 = vmul.f32 %v3454_v63, %v7777_v17  ;;  %v3471_v1 = vmul.f32 %v3455_v29, %v7797_v38  ;;  %v3472_v6 = vmul.f32 %v3456_v35, %v7818_v11  ;;  %v3473_v19 = vmul.f32 %v3457_v36, %v7838_v22 }
 0x3fa   :  { %v3474_v18 = vmul.f32 %v3458_v13, %v7870_v34  ;;  %v3475_v9 = vmul.f32 %v3459_v42, %v7873_v40  ;;  %v3476_v61 = vmul.f32 %v3460_v45, %v7882_v8  ;;  %v3477_v52 = vmul.f32 %v3461_v48, %v7910_v37  ;;  %v3452_v8 = vld [vmem:[#allocation22] sm:$0xff] }
 0x3fb   :  { %v3486_v53 = vrot.slane %v3471_v1, 7  ;;  %v3487_v56 = vrot.slane %v3472_v6, 6  ;;  %v3488_v58 = vrot.slane %v3473_v19, 5  ;;  %v3509_v50 = vmul.f32 %v3461_v48, %v7890_v7 }
 0x3fc   :  { %v3489_v17 = vrot.slane %v3474_v18, 4  ;;  %v3490_v51 = vrot.slane %v3475_v9, 3  ;;  %v3491_v38 = vrot.slane %v3476_v61, 2  ;;  %v3492_v26 = vrot.slane %v3477_v52, 1  ;;  %v6792_v61 = vld [vmem:[#allocation23 + $0x64] sm:$0xf] }
 0x3fd   :  { %v3493_v11 = vsel %vm498_vm8, %v3470_v49, %v3486_v53  ;;  %v3494_v22 = vsel %vm1156_vm9, %v3487_v56, %v3488_v58  ;;  %v3502_v34 = vmul.f32 %v3454_v63, %v7769_v59  ;;  %v3503_v40 = vmul.f32 %v3455_v29, %v7782_v31  ;;  %v5982_v52 = vld [vmem:[#allocation23 + $0x68] sm:$0xf0]  ;;  %v6808_v53 = vld [vmem:[#allocation23 + $0xe4] sm:$0xf] }
 0x3fe   :  { %v3495_v37 = vsel %vm1158_vm10, %v3493_v11, %v3494_v22  ;;  %v3496_v2 = vsel %vm3442_vm13, %v3489_v17, %v3490_v51  ;;  %v3497_v3 = vsel %vm3444_vm14, %v3491_v38, %v3492_v26  ;;  %v3504_v7 = vmul.f32 %v3456_v35, %v7802_v62  ;;  %v6824_v17 = vld [vmem:[#allocation23 + $0x164] sm:$0xf]  ;;  %v6110_v51 = vld [vmem:[#allocation23 + $0x168] sm:$0xf0]  ;;  %v6790_v22 = vld [vmem:[#allocation23 + $0x54] sm:$0xf] }
 0x3ff   :  { %v3498_v44 = vsel %vm3446_vm15, %v3496_v2, %v3497_v3  ;;  %v3505_v54 = vmul.f32 %v3457_v36, %v7831_v46  ;;  %v3506_v59 = vmul.f32 %v3458_v13, %v7844_v57  ;;  %v3507_v31 = vmul.f32 %v3459_v42, %v7852_v39  ;;  %v6054_v39 = vld [vmem:[#allocation23 + $0xf8] sm:$0xf0]  ;;  %v6842_v13 = vld [vmem:[#allocation23 + $0x1f4] sm:$0xf]  ;;  %v6840_v38 = vld [vmem:[#allocation23 + $0x1e4] sm:$0xf] }
 0x400   :  { %v3499_v5 = vsel %vm3448_vm0, %v3495_v37, %v3498_v44  ;;  %v3508_v60 = vmul.f32 %v3460_v45, %v7863_v12  ;;  %v5993_v36 = vor.u32 %v6794_v33, %v5990_v4  ;;  %v6182_v42 = vld [vmem:[#allocation23 + $0x1f8] sm:$0xf0]  ;;  %v6057_v1 = vor.u32 %v6810_v24, %v6054_v39  ;;  %v6174_v26 = vld [vmem:[#allocation23 + $0x1e8] sm:$0xf0]  ;;  %v6806_v37 = vld [vmem:[#allocation23 + $0xd4] sm:$0xf] }
 0x401   :  { %v3501_v16 = vsub.f32 %v3452_v8, %v3499_v5  ;;  %v6121_v9 = vor.u32 %v6826_v41, %v6118_v23  ;;  %v6185_v58 = vor.u32 %v6842_v13, %v6182_v42  ;;  %v5985_v11 = vor.u32 %v6792_v61, %v5982_v52  ;;  %v5974_v8 = vld [vmem:[#allocation23 + $0x58] sm:$0xf0]  ;;  %v6158_v33 = vld [vmem:[#allocation23 + $0x1c8] sm:$0xf0]  ;;  %v6802_v23 = vld [vmem:[#allocation23 + $0xb4] sm:$0xf] }
 0x402   :  { %v6038_v2 = vld [vmem:[#allocation23 + $0xd8] sm:$0xf0]  ;;  %v6177_v3 = vor.u32 %v6840_v38, %v6174_v26  ;;  %v6784_v61 = vld [vmem:[#allocation23 + $0x24] sm:$0xf]  ;;  %v5950_v52 = vld [vmem:[#allocation23 + $0x28] sm:$0xf0] }
 0x403   :  { %v3518_v15 = vperm.slane %v3501_v16, 7  ;;  %v3511_v55 = vperm.slane %v3501_v16, 0  ;;  %v3512_v43 = vperm.slane %v3501_v16, 1  ;;  %v3513_v47 = vperm.slane %v3501_v16, 2  ;;  %v6102_v44 = vld [vmem:[#allocation23 + $0x158] sm:$0xf0] }
 0x404   :  { %v3514_v32 = vperm.slane %v3501_v16, 3  ;;  %v3515_v10 = vperm.slane %v3501_v16, 4  ;;  %v3516_v62 = vperm.slane %v3501_v16, 5  ;;  %v3517_v0 = vperm.slane %v3501_v16, 6  ;;  %v6166_v5 = vld [vmem:[#allocation23 + $0x1d8] sm:$0xf0] }
 0x405   :  { %v8002_v20 = vadd.f32 %v3518_v15, %v3509_v50  ;;  %v3527_v46 = vadd.f32 %v3511_v55, %v3502_v34  ;;  %v3528_v21 = vadd.f32 %v3512_v43, %v3503_v40  ;;  %v3529_v14 = vadd.f32 %v3513_v47, %v3504_v7  ;;  %v6046_v50 = vld [vmem:[#allocation23 + $0xe8] sm:$0xf0]  ;;  %v6822_v7 = vld [vmem:[#allocation23 + $0x154] sm:$0xf]  ;;  %v6788_v16 = vld [vmem:[#allocation23 + $0x44] sm:$0xf] }
 0x406   :  { %v3530_v57 = vadd.f32 %v3514_v32, %v3505_v54  ;;  %v8004_v12 = vadd.f32 %v3515_v10, %v3506_v59  ;;  %v8006_v27 = vadd.f32 %v3516_v62, %v3507_v31  ;;  %v8008_v30 = vadd.f32 %v3517_v0, %v3508_v60  ;;  %v6838_v54 = vld [vmem:[#allocation23 + $0x1d4] sm:$0xf]  ;;  %v5966_v59 = vld [vmem:[#allocation23 + $0x48] sm:$0xf0]  ;;  %v6804_v60 = vld [vmem:[#allocation23 + $0xc4] sm:$0xf] }
 0x407   :  { %vm3535_vm8 = vcmp.ge.f32.partialorder %v3527_v46, 0.0  ;;  %v3543_v25 = vmul.f32 0.2, %v3527_v46  ;;  %vm3536_vm9 = vcmp.ge.f32.partialorder %v3528_v21, 0.0  ;;  %v3544_v28 = vmul.f32 0.2, %v3528_v21 }
 0x408   :  { %vm3537_vm10 = vcmp.ge.f32.partialorder %v3529_v14, 0.0  ;;  %v3545_v63 = vmul.f32 0.2, %v3529_v14  ;;  %vm3538_vm1 = vcmp.ge.f32.partialorder %v3530_v57, 0.0  ;;  %v3546_v35 = vmul.f32 0.2, %v3530_v57 }
 0x409   :  { %v3551_v29 = vsel %vm3535_vm8, %v3527_v46, %v3543_v25  ;;  %v3552_v48 = vsel %vm3536_vm9, %v3528_v21, %v3544_v28  ;;  %v6049_v34 = vor.u32 %v6808_v53, %v6046_v50  ;;  %v6113_v40 = vor.u32 %v6824_v17, %v6110_v51  ;;  %v6030_v15 = vld [vmem:[#allocation23 + $0xc8] sm:$0xf0]  ;;  %v6820_v55 = vld [vmem:[#allocation23 + $0x144] sm:$0xf]  ;;  %v5958_v25 = vld [vmem:[#allocation23 + $0x38] sm:$0xf0] }
 0x40a   :  { %v8010_v45 = vpack.c.bf16 %v3551_v29, %v3551_v29  ;;  %v3553_v49 = vsel %vm3537_vm10, %v3529_v14, %v3545_v63  ;;  %v8012_v6 = vpack.c.bf16 %v3552_v48, %v3552_v48  ;;  %v3554_v18 = vsel %vm3538_vm1, %v3530_v57, %v3546_v35  ;;  %v6094_v32 = vld [vmem:[#allocation23 + $0x148] sm:$0xf0]  ;;  %v6836_v10 = vld [vmem:[#allocation23 + $0x1c4] sm:$0xf]  ;;  %v6786_v57 = vld [vmem:[#allocation23 + $0x34] sm:$0xf] }
 0x40b   :  { %v8014_v19 = vpack.c.bf16 %v3553_v49, %v3553_v49  ;;  %v8017_v56 = vpack.c.bf16 %v3554_v18, %v3554_v18  ;;  %v5977_v31 = vor.u32 %v6790_v22, %v5974_v8  ;;  %v6041_v43 = vor.u32 %v6806_v37, %v6038_v2  ;;  %v6022_v28 = vld [vmem:[#allocation23 + $0xb8] sm:$0xf0]  ;;  %v6800_v53 = vld [vmem:[#allocation23 + $0xa4] sm:$0xf]  ;;  %v6014_v50 = vld [vmem:[#allocation23 + $0xa8] sm:$0xf0] }
 0x40c   :  { %4349 = vmatmul.bf16.vlgmr.msra.gmra.mxu3 %v8010_v45  ;;  %4362 = vmatmul.bf16.vlgmr.msrb.gmra.mxu0 %v8012_v6  ;;  %v6105_v47 = vor.u32 %v6822_v7, %v6102_v44  ;;  %v3547_v62 = vmul.f32 0.2, %v8004_v12  ;;  %v6169_v0 = vor.u32 %v6838_v54, %v6166_v5  ;;  %vm3539_vm2 = vcmp.ge.f32.partialorder %v8004_v12, 0.0  ;;  %v6086_v13 = vld [vmem:[#allocation23 + $0x138] sm:$0xf0] }
 0x40d   :  { %4375 = vmatmul.bf16.vlgmr.msrb.gmra.mxu1 %v8014_v19  ;;  %4388 = vmatmul.bf16.vlgmr.msrb.gmra.mxu2 %v8017_v56  ;;  %v3548_v46 = vmul.f32 0.2, %v8006_v27  ;;  %v3549_v21 = vmul.f32 0.2, %v8008_v30  ;;  %v3550_v14 = vmul.f32 0.2, %v8002_v20  ;;  %v5969_v4 = vor.u32 %v6788_v16, %v5966_v59 }
 0x40e   :  { %4445 = vmatpush.bf16.msra.mxu3 %v5993_v36  ;;  %4458 = vmatpush.bf16.msrb.mxu0 %v6057_v1  ;;  %vm3540_vm3 = vcmp.ge.f32.partialorder %v8006_v27, 0.0  ;;  %vm3541_vm4 = vcmp.ge.f32.partialorder %v8008_v30, 0.0  ;;  %vm3542_vm5 = vcmp.ge.f32.partialorder %v8002_v20, 0.0  ;;  %v6033_v24 = vor.u32 %v6804_v60, %v6030_v15  ;;  %v6818_v36 = vld [vmem:[#allocation23 + $0x134] sm:$0xf] }
 0x40f   :  { %4471 = vmatpush.bf16.msrb.mxu1 %v6121_v9  ;;  %4484 = vmatpush.bf16.msrb.mxu2 %v6185_v58  ;;  %v6097_v39 = vor.u32 %v6820_v55, %v6094_v32  ;;  %v3555_v41 = vsel %vm3539_vm2, %v8004_v12, %v3547_v62  ;;  %v6161_v63 = vor.u32 %v6836_v10, %v6158_v33  ;;  %v6834_v12 = vld [vmem:[#allocation23 + $0x1b4] sm:$0xf]  ;;  %v6150_v48 = vld [vmem:[#allocation23 + $0x1b8] sm:$0xf0]  ;;  %v6816_v17 = vld [vmem:[#allocation23 + $0x124] sm:$0xf] }
 0x410   :  { %v3556_v29 = vsel %vm3540_vm3, %v8006_v27, %v3548_v46  ;;  %v3557_v35 = vsel %vm3541_vm4, %v8008_v30, %v3549_v21  ;;  %v3558_v42 = vsel %vm3542_vm5, %v8002_v20, %v3550_v14  ;;  %v8040_v49 = vpack.c.bf16 %v3555_v41, %v3555_v41  ;;  %v6078_v51 = vld [vmem:[#allocation23 + $0x128] sm:$0xf0]  ;;  %v6832_v38 = vld [vmem:[#allocation23 + $0x1a4] sm:$0xf]  ;;  %v5942_v8 = vld [vmem:[#allocation23 + $0x18] sm:$0xf0] }
 0x411   :  { %v5961_v1 = vor.u32 %v6786_v57, %v5958_v25  ;;  %v6025_v18 = vor.u32 %v6802_v23, %v6022_v28  ;;  %v8042_v27 = vpack.c.bf16 %v3556_v29, %v3556_v29  ;;  %v8044_v9 = vpack.c.bf16 %v3557_v35, %v3557_v35  ;;  %v6142_v26 = vld [vmem:[#allocation23 + $0x1a8] sm:$0xf0]  ;;  %v6798_v37 = vld [vmem:[#allocation23 + $0x94] sm:$0xf]  ;;  %v6070_v44 = vld [vmem:[#allocation23 + $0x118] sm:$0xf0] }
 0x412   :  { %4446 = vmatpush.bf16.msra.mxu3 %v5985_v11  ;;  %4459 = vmatpush.bf16.msrb.mxu0 %v6049_v34  ;;  %v6089_v30 = vor.u32 %v6818_v36, %v6086_v13  ;;  %v8047_v20 = vpack.c.bf16 %v3558_v42, %v3558_v42  ;;  %v6153_v58 = vor.u32 %v6834_v12, %v6150_v48  ;;  %v6814_v7 = vld [vmem:[#allocation23 + $0x114] sm:$0xf]  ;;  %v6134_v5 = vld [vmem:[#allocation23 + $0x198] sm:$0xf0]  ;;  %v6780_v59 = vld [vmem:[#allocation23 + $0x4] sm:$0xf] }
 0x413   :  { %4472 = vmatpush.bf16.msrb.mxu1 %v6113_v40  ;;  %4485 = vmatpush.bf16.msrb.mxu2 %v6177_v3  ;;  %v5953_v11 = vor.u32 %v6784_v61, %v5950_v52  ;;  %v6017_v22 = vor.u32 %v6800_v53, %v6014_v50  ;;  %v6081_v34 = vor.u32 %v6816_v17, %v6078_v51  ;;  %v6782_v40 = vld [vmem:[#allocation23 + $0x14] sm:$0xf]  ;;  %v6006_v3 = vld [vmem:[#allocation23 + $0x98] sm:$0xf0]  ;;  %v6796_v55 = vld [vmem:[#allocation23 + $0x84] sm:$0xf] }
 0x414   :  { %v6145_v2 = vor.u32 %v6832_v38, %v6142_v26  ;;  %v6830_v54 = vld [vmem:[#allocation23 + $0x194] sm:$0xf]  ;;  %v5945_v16 = vor.u32 %v6782_v40, %v5942_v8  ;;  %v6009_v60 = vor.u32 %v6798_v37, %v6006_v3  ;;  %v6073_v15 = vor.u32 %v6814_v7, %v6070_v44  ;;  %v6062_v10 = vld [vmem:[#allocation23 + $0x108] sm:$0xf0]  ;;  %v6828_v62 = vld [vmem:[#allocation23 + $0x184] sm:$0xf] }
 0x415   :  { %v6137_v32 = vor.u32 %v6830_v54, %v6134_v5  ;;  %v6858_v46 = vld [vmem:[#allocation23 + $0x274] sm:$0xf]  ;;  %v6246_v21 = vld [vmem:[#allocation23 + $0x278] sm:$0xf0]  ;;  %v6856_v36 = vld [vmem:[#allocation23 + $0x264] sm:$0xf] }
 0x416   :  { %4447 = vmatpush.bf16.msra.mxu3 %v5977_v31  ;;  %4460 = vmatpush.bf16.msrb.mxu0 %v6041_v43  ;;  %v5934_v31 = vld [vmem:[#allocation23 + $0x8] sm:$0xf0]  ;;  %v6874_v14 = vld [vmem:[#allocation23 + $0x2f4] sm:$0xf]  ;;  %v6438_v23 = vld [vmem:[#allocation23 + $0x3f8] sm:$0xf0] }
 0x417   :  { %4473 = vmatpush.bf16.msrb.mxu1 %v6105_v47  ;;  %4486 = vmatpush.bf16.msrb.mxu2 %v6169_v0  ;;  %v5998_v43 = vld [vmem:[#allocation23 + $0x88] sm:$0xf0]  ;;  %v6812_v47 = vld [vmem:[#allocation23 + $0x104] sm:$0xf]  ;;  %v5937_v33 = vor.u32 %v6780_v59, %v5934_v31  ;;  %v6890_v57 = vld [vmem:[#allocation23 + $0x374] sm:$0xf] }
 0x418   :  { %v6126_v0 = vld [vmem:[#allocation23 + $0x188] sm:$0xf0]  ;;  %v6065_v41 = vor.u32 %v6812_v47, %v6062_v10  ;;  %v6906_v25 = vld [vmem:[#allocation23 + $0x3f4] sm:$0xf]  ;;  %v6872_v42 = vld [vmem:[#allocation23 + $0x2e4] sm:$0xf] }
 0x419   :  { %v6129_v28 = vor.u32 %v6828_v62, %v6126_v0  ;;  %v6238_v13 = vld [vmem:[#allocation23 + $0x268] sm:$0xf0]  ;;  %v6441_v12 = vor.u32 %v6906_v25, %v6438_v23  ;;  %v6854_v50 = vld [vmem:[#allocation23 + $0x254] sm:$0xf]  ;;  %v6230_v17 = vld [vmem:[#allocation23 + $0x258] sm:$0xf0] }
 0x41a   :  { %4448 = vmatpush.bf16.msra.mxu3 %v5969_v4  ;;  %4461 = vmatpush.bf16.msrb.mxu0 %v6033_v24  ;;  %v6310_v4 = vld [vmem:[#allocation23 + $0x2f8] sm:$0xf0]  ;;  %v6302_v48 = vld [vmem:[#allocation23 + $0x2e8] sm:$0xf0]  ;;  %v6241_v52 = vor.u32 %v6856_v36, %v6238_v13  ;;  %v6870_v51 = vld [vmem:[#allocation23 + $0x2d4] sm:$0xf]  ;;  %v6233_v8 = vor.u32 %v6854_v50, %v6230_v17 }
 0x41b   :  { %4474 = vmatpush.bf16.msrb.mxu1 %v6097_v39  ;;  %4487 = vmatpush.bf16.msrb.mxu2 %v6161_v63  ;;  %v6374_v24 = vld [vmem:[#allocation23 + $0x378] sm:$0xf0]  ;;  %v6001_v39 = vor.u32 %v6796_v55, %v5998_v43  ;;  %v6249_v63 = vor.u32 %v6858_v46, %v6246_v21  ;;  %v6313_v29 = vor.u32 %v6874_v14, %v6310_v4  ;;  %v6430_v61 = vld [vmem:[#allocation23 + $0x3e8] sm:$0xf0]  ;;  %v6852_v3 = vld [vmem:[#allocation23 + $0x244] sm:$0xf] }
 0x41c   :  { %4401 = vmatmul.bf16.vlgmr.msrb.gmra.mxu3 %v8040_v49  ;;  %4414 = vmatmul.bf16.vlgmr.msra.gmra.mxu0 %v8042_v27  ;;  %v6377_v35 = vor.u32 %v6890_v57, %v6374_v24  ;;  %v6305_v53 = vor.u32 %v6872_v42, %v6302_v48  ;;  %v6294_v26 = vld [vmem:[#allocation23 + $0x2d8] sm:$0xf0]  ;;  %v6868_v7 = vld [vmem:[#allocation23 + $0x2c4] sm:$0xf]  ;;  %v6286_v54 = vld [vmem:[#allocation23 + $0x2c8] sm:$0xf0] }
 0x41d   :  { %4427 = vmatmul.bf16.vlgmr.msra.gmra.mxu1 %v8044_v9  ;;  %4440 = vmatmul.bf16.vlgmr.msra.gmra.mxu2 %v8047_v20  ;;  %v6422_v40 = vld [vmem:[#allocation23 + $0x3d8] sm:$0xf0]  ;;  %v6297_v37 = vor.u32 %v6870_v51, %v6294_v26  ;;  %v6884_v5 = vld [vmem:[#allocation23 + $0x344] sm:$0xf]  ;;  %v6866_v55 = vld [vmem:[#allocation23 + $0x2b4] sm:$0xf] }
 0x41e   :  { %4449 = vmatpush.bf16.msra.mxu3 %v5961_v1  ;;  %4462 = vmatpush.bf16.msrb.mxu0 %v6025_v18  ;;  %v6888_v1 = vld [vmem:[#allocation23 + $0x364] sm:$0xf]  ;;  %v6366_v18 = vld [vmem:[#allocation23 + $0x368] sm:$0xf0]  ;;  %v6278_v47 = vld [vmem:[#allocation23 + $0x2b8] sm:$0xf0] }
 0x41f   :  { %4475 = vmatpush.bf16.msrb.mxu1 %v6089_v30  ;;  %4488 = vmatpush.bf16.msrb.mxu2 %v6153_v58  ;;  %v6904_v30 = vld [vmem:[#allocation23 + $0x3e4] sm:$0xf]  ;;  %v6369_v58 = vor.u32 %v6888_v1, %v6366_v18  ;;  %v6342_v10 = vld [vmem:[#allocation23 + $0x338] sm:$0xf0]  ;;  %v6898_v62 = vld [vmem:[#allocation23 + $0x3b4] sm:$0xf]  ;;  %v6281_v21 = vor.u32 %v6866_v55, %v6278_v47 }
 0x420   :  { %v6433_v38 = vor.u32 %v6904_v30, %v6430_v61  ;;  %v6406_v0 = vld [vmem:[#allocation23 + $0x3b8] sm:$0xf0]  ;;  %v6206_v4 = vld [vmem:[#allocation23 + $0x228] sm:$0xf0]  ;;  %v6864_v57 = vld [vmem:[#allocation23 + $0x2a4] sm:$0xf] }
 0x421   :  { %v6409_v24 = vor.u32 %v6898_v62, %v6406_v0  ;;  %v6334_v25 = vld [vmem:[#allocation23 + $0x328] sm:$0xf0]  ;;  %v6896_v23 = vld [vmem:[#allocation23 + $0x3a4] sm:$0xf]  ;;  %v6846_v36 = vld [vmem:[#allocation23 + $0x214] sm:$0xf] }
 0x422   :  { %4450 = vmatpush.bf16.msra.mxu3 %v5953_v11  ;;  %4463 = vmatpush.bf16.msrb.mxu0 %v6017_v22  ;;  %v6886_v11 = vld [vmem:[#allocation23 + $0x354] sm:$0xf]  ;;  %v6358_v22 = vld [vmem:[#allocation23 + $0x358] sm:$0xf0]  ;;  %v6844_v50 = vld [vmem:[#allocation23 + $0x204] sm:$0xf] }
 0x423   :  { %4476 = vmatpush.bf16.msrb.mxu1 %v6081_v34  ;;  %4489 = vmatpush.bf16.msrb.mxu2 %v6145_v2  ;;  %v6902_v34 = vld [vmem:[#allocation23 + $0x3d4] sm:$0xf]  ;;  %v6361_v2 = vor.u32 %v6886_v11, %v6358_v22  ;;  %v6198_v13 = vld [vmem:[#allocation23 + $0x218] sm:$0xf0]  ;;  %v6190_v17 = vld [vmem:[#allocation23 + $0x208] sm:$0xf0] }
 0x424   :  { %v6425_v44 = vor.u32 %v6902_v34, %v6422_v40  ;;  %v6862_v42 = vld [vmem:[#allocation23 + $0x294] sm:$0xf]  ;;  %v6262_v48 = vld [vmem:[#allocation23 + $0x298] sm:$0xf0]  ;;  %v6860_v51 = vld [vmem:[#allocation23 + $0x284] sm:$0xf] }
 0x425   :  { %v6878_v1 = vld [vmem:[#allocation23 + $0x314] sm:$0xf]  ;;  %v6326_v18 = vld [vmem:[#allocation23 + $0x318] sm:$0xf0]  ;;  %v6254_v26 = vld [vmem:[#allocation23 + $0x288] sm:$0xf0] }
 0x426   :  { %4451 = vmatpush.bf16.msra.mxu3 %v5945_v16  ;;  %4464 = vmatpush.bf16.msrb.mxu0 %v6009_v60  ;;  %v6900_v16 = vld [vmem:[#allocation23 + $0x3c4] sm:$0xf]  ;;  %v6850_v60 = vld [vmem:[#allocation23 + $0x234] sm:$0xf]  ;;  %v6390_v61 = vld [vmem:[#allocation23 + $0x398] sm:$0xf0] }
 0x427   :  { %4477 = vmatpush.bf16.msrb.mxu1 %v6073_v15  ;;  %4490 = vmatpush.bf16.msrb.mxu2 %v6137_v32  ;;  %v6214_v15 = vld [vmem:[#allocation23 + $0x238] sm:$0xf0]  ;;  %v6882_v32 = vld [vmem:[#allocation23 + $0x334] sm:$0xf]  ;;  %v6876_v11 = vld [vmem:[#allocation23 + $0x304] sm:$0xf] }
 0x428   :  { %v6217_v46 = vor.u32 %v6850_v60, %v6214_v15  ;;  %v6345_v14 = vor.u32 %v6882_v32, %v6342_v10  ;;  %v6894_v30 = vld [vmem:[#allocation23 + $0x394] sm:$0xf]  ;;  %v6318_v22 = vld [vmem:[#allocation23 + $0x308] sm:$0xf0]  ;;  %v6892_v34 = vld [vmem:[#allocation23 + $0x384] sm:$0xf] }
 0x429   :  { %v6382_v40 = vld [vmem:[#allocation23 + $0x388] sm:$0xf0] }
 0x42a   :  { %4452 = vmatpush.bf16.msra.mxu3 %v5937_v33  ;;  %4465 = vmatpush.bf16.msrb.mxu0 %v6001_v39  ;;  %v6848_v33 = vld [vmem:[#allocation23 + $0x224] sm:$0xf]  ;;  %v6270_v39 = vld [vmem:[#allocation23 + $0x2a8] sm:$0xf0] }
 0x42b   :  { %4478 = vmatpush.bf16.msrb.mxu1 %v6065_v41  ;;  %4491 = vmatpush.bf16.msrb.mxu2 %v6129_v28  ;;  %v6880_v41 = vld [vmem:[#allocation23 + $0x324] sm:$0xf]  ;;  %v6398_v28 = vld [vmem:[#allocation23 + $0x3a8] sm:$0xf0] }
 0x42d   :  { %4453 = vmatmul.bf16.vlgmr.msra.gmra.mxu3 %v8010_v45  ;;  %4466 = vmatmul.bf16.vlgmr.msrb.gmra.mxu0 %v8012_v6  ;;  %v6222_v45 = vld [vmem:[#allocation23 + $0x248] sm:$0xf0] }
 0x42e   :  { %4497 = vmatpush.bf16.msrb.mxu3 %v6249_v63  ;;  %4510 = vmatpush.bf16.msra.mxu0 %v6313_v29  ;;  %v6350_v6 = vld [vmem:[#allocation23 + $0x348] sm:$0xf0]  ;;  %v6225_v59 = vor.u32 %v6852_v3, %v6222_v45  ;;  %v6209_v63 = vor.u32 %v6848_v33, %v6206_v4  ;;  %v6273_v29 = vor.u32 %v6864_v57, %v6270_v39 }
 0x42f   :  { %4523 = vmatpush.bf16.msra.mxu1 %v6377_v35  ;;  %4536 = vmatpush.bf16.msra.mxu2 %v6441_v12  ;;  %v6353_v31 = vor.u32 %v6884_v5, %v6350_v6  ;;  %v6337_v35 = vor.u32 %v6880_v41, %v6334_v25  ;;  %v6401_v12 = vor.u32 %v6896_v23, %v6398_v28 }
 0x430   :  { %4479 = vmatmul.bf16.vlgmr.msrb.gmra.mxu1 %v8014_v19  ;;  %4492 = vmatmul.bf16.vlgmr.msrb.gmra.mxu2 %v8017_v56  ;;  %v6414_v19 = vld [vmem:[#allocation23 + $0x3c8] sm:$0xf0]  ;;  %v6289_v56 = vor.u32 %v6868_v7, %v6286_v54  ;;  %v6385_v3 = vor.u32 %v6892_v34, %v6382_v40 }
 0x431   :  { %v6417_v43 = vor.u32 %v6900_v16, %v6414_v19 }
 0x432   :  { %4498 = vmatpush.bf16.msrb.mxu3 %v6241_v52  ;;  %4511 = vmatpush.bf16.msra.mxu0 %v6305_v53  ;;  %v6201_v52 = vor.u32 %v6846_v36, %v6198_v13  ;;  %v6265_v53 = vor.u32 %v6862_v42, %v6262_v48 }
 0x433   :  { %4524 = vmatpush.bf16.msra.mxu1 %v6369_v58  ;;  %4537 = vmatpush.bf16.msra.mxu2 %v6433_v38  ;;  %v6329_v58 = vor.u32 %v6878_v1, %v6326_v18  ;;  %v6393_v38 = vor.u32 %v6894_v30, %v6390_v61 }
 0x436   :  { %4499 = vmatpush.bf16.msrb.mxu3 %v6233_v8  ;;  %4512 = vmatpush.bf16.msra.mxu0 %v6297_v37  ;;  %v6193_v8 = vor.u32 %v6844_v50, %v6190_v17  ;;  %v6257_v37 = vor.u32 %v6860_v51, %v6254_v26 }
 0x437   :  { %4525 = vmatpush.bf16.msra.mxu1 %v6361_v2  ;;  %4538 = vmatpush.bf16.msra.mxu2 %v6425_v44  ;;  %v6321_v2 = vor.u32 %v6876_v11, %v6318_v22  ;;  %v3695_v44 = vld [vmem:[%s8082_s16] sm:$0x3]  ;;  %s7369_s16 = smov [#allocation25]  }
 0x438   :  { %v3697_v54 = vperm.slane %v3695_v44, 0  ;;  %v3698_v28 = vperm.slane %v3695_v44, 1  ;;  %s4558_s5 = sshll.u32 %s7369_s16, 4  ;;  %s4559_s5 = int_to_ptr.vmem [resolvable:$true] %s4558_s5 }
 0x43a   :  { %4500 = vmatpush.bf16.msrb.mxu3 %v6225_v59  ;;  %4513 = vmatpush.bf16.msra.mxu0 %v6289_v56 }
 0x43b   :  { %4526 = vmatpush.bf16.msra.mxu1 %v6353_v31  ;;  %4539 = vmatpush.bf16.msra.mxu2 %v6417_v43 }
 0x43e   :  { %4501 = vmatpush.bf16.msrb.mxu3 %v6217_v46  ;;  %4514 = vmatpush.bf16.msra.mxu0 %v6281_v21 }
 0x43f   :  { %4527 = vmatpush.bf16.msra.mxu1 %v6345_v14  ;;  %4540 = vmatpush.bf16.msra.mxu2 %v6409_v24 }
 0x442   :  { %4502 = vmatpush.bf16.msrb.mxu3 %v6209_v63  ;;  %4515 = vmatpush.bf16.msra.mxu0 %v6273_v29 }
 0x443   :  { %4528 = vmatpush.bf16.msra.mxu1 %v6337_v35  ;;  %4541 = vmatpush.bf16.msra.mxu2 %v6401_v12 }
 0x446   :  { %4503 = vmatpush.bf16.msrb.mxu3 %v6201_v52  ;;  %4516 = vmatpush.bf16.msra.mxu0 %v6265_v53 }
 0x447   :  { %4529 = vmatpush.bf16.msra.mxu1 %v6329_v58  ;;  %4542 = vmatpush.bf16.msra.mxu2 %v6393_v38 }
 0x44a   :  { %4504 = vmatpush.bf16.msrb.mxu3 %v6193_v8  ;;  %4517 = vmatpush.bf16.msra.mxu0 %v6257_v37 }
 0x44b   :  { %4530 = vmatpush.bf16.msra.mxu1 %v6321_v2  ;;  %4543 = vmatpush.bf16.msra.mxu2 %v6385_v3 }
 0x44d   :  { %4505 = vmatmul.bf16.vlgmr.msrb.gmra.mxu3 %v8040_v49  ;;  %4518 = vmatmul.bf16.vlgmr.msra.gmra.mxu0 %v8042_v27 }
 0x44e   :  { %4531 = vmatmul.bf16.vlgmr.msra.gmra.mxu1 %v8044_v9  ;;  %4544 = vmatmul.bf16.vlgmr.msra.gmra.mxu2 %v8047_v20 }
 0x489   :  { %v4363_v45 = vpop.f32.mrf.mxu0 }
 0x48a   :  { %v4376_v7 = vpop.f32.mrf.mxu1 }
 0x48f   :  { %v4350_v5 = vpop.f32.mrf.mxu3 }
 0x490   :  { %v4389_v6 = vpop.f32.mrf.mxu2  ;;  %v4351_v16 = vadd.f32 %v4350_v5, %v3697_v54 }
 0x491   :  { %v4365_v19 = vpop.f32.mrf.mxu0 }
 0x492   :  { %v4378_v59 = vpop.f32.mrf.mxu1  ;;  %v4364_v56 = vadd.f32 %v4363_v45, %v4351_v16 }
 0x494   :  { %v4377_v27 = vadd.f32 %v4376_v7, %v4364_v56 }
 0x496   :  { %v4390_v15 = vadd.f32 %v4389_v6, %v4377_v27 }
 0x497   :  { %v4352_v49 = vpop.f32.mrf.mxu3 }
 0x498   :  { %v4391_v31 = vpop.f32.mrf.mxu2 }
 0x499   :  { %v4415_v60 = vpop.f32.mrf.mxu0 }
 0x49a   :  { %v4428_v9 = vpop.f32.mrf.mxu1 }
 0x49f   :  { %v4402_v20 = vpop.f32.mrf.mxu3 }
 0x4a0   :  { %v4403_v55 = vadd.f32 %v4402_v20, %v4390_v15  ;;  %v4441_v43 = vpop.f32.mrf.mxu2 }
 0x4a1   :  { %v4417_v32 = vpop.f32.mrf.mxu0 }
 0x4a2   :  { %v4416_v47 = vadd.f32 %v4415_v60, %v4403_v55  ;;  %v4430_v10 = vpop.f32.mrf.mxu1 }
 0x4a4   :  { %v4429_v62 = vadd.f32 %v4428_v9, %v4416_v47 }
 0x4a6   :  { %v4442_v0 = vadd.f32 %v4441_v43, %v4429_v62 }
 0x4a7   :  { %v4404_v46 = vpop.f32.mrf.mxu3 }
 0x4a8   :  { %6963 = vtanh.f32 %v4442_v0  ;;  %v4443_v21 = vpop.f32.mrf.mxu2 }
 0x4aa   :  { %v4467_v14 = vpop.f32.mrf.mxu0 }
 0x4ad   :  { %v4480_v33 = vpop.f32.mrf.mxu1 }
 0x4ae   :  { %v6964_v4 = vpop.eup %6963 }
 0x4af   :  { %4551 = vst [vmem:[#allocation25] sm:$0xff] %v6964_v4 }
 0x4b0   :  { %v4454_v57 = vpop.f32.mrf.mxu3 }
 0x4b1   :  { %v4455_v63 = vadd.f32 %v4454_v57, %v3698_v28 }
 0x4b2   :  { %v4469_v39 = vpop.f32.mrf.mxu0 }
 0x4b3   :  { %v4493_v24 = vpop.f32.mrf.mxu2  ;;  %v4468_v29 = vadd.f32 %v4467_v14, %v4455_v63 }
 0x4b5   :  { %v4482_v41 = vpop.f32.mrf.mxu1  ;;  %v4481_v35 = vadd.f32 %v4480_v33, %v4468_v29 }
 0x4b7   :  { %v4494_v42 = vadd.f32 %v4493_v24, %v4481_v35 }
 0x4b8   :  { %v4456_v25 = vpop.f32.mrf.mxu3 }
 0x4bb   :  { %v4495_v23 = vpop.f32.mrf.mxu2 }
 0x4ca   :  { %v4519_v36 = vpop.f32.mrf.mxu0 }
 0x4cb   :  { %v4532_v13 = vpop.f32.mrf.mxu1 }
 0x4d0   :  { %v4506_v12 = vpop.f32.mrf.mxu3 }
 0x4d1   :  { %v4507_v48 = vadd.f32 %v4506_v12, %v4494_v42  ;;  %v4545_v1 = vpop.f32.mrf.mxu2 }
 0x4d2   :  { %v4521_v30 = vpop.f32.mrf.mxu0 }
 0x4d3   :  { %v4520_v18 = vadd.f32 %v4519_v36, %v4507_v48  ;;  %v4534_v61 = vpop.f32.mrf.mxu1 }
 0x4d5   :  { %v4533_v52 = vadd.f32 %v4532_v13, %v4520_v18 }
 0x4d7   :  { %v4546_v53 = vadd.f32 %v4545_v1, %v4533_v52 }
 0x4d8   :  { %v4508_v58 = vpop.f32.mrf.mxu3 }
 0x4d9   :  { %6965 = vtanh.f32 %v4546_v53  ;;  %v4547_v50 = vpop.f32.mrf.mxu2 }
 0x4df   :  { %v6966_v17 = vpop.eup %6965 }
 0x4e0   :  { %4552 = vst [vmem:[#allocation25 + $0x8] sm:$0xff] %v6966_v17 }
 0x4e1   :  { %4563 = dma.vmem_to_hbm [thread:$0]  %s4559_s5, 256, %s4561_s1, [#allocation4]  }
 0x4e2   :  { %7344 = dma.done.wait [#allocation4], 256  }
 0x4e3   :  { %7345 = vsyncadd [#allocation4], 4294967040 }
 0x4e4   :  { %4568 = vsyncpa [#allocation3], 1 }
 0x4e5   :  { %4569 = vsyncpa [#allocation6], 1 }
 0x4e6   :  { %4570 = vsyncpa [#allocation9], 1 }
 0x4e7   :  { %4571 = vsyncpa [#allocation12], 1 }
 0x4e8   :  { %4572 = vsyncpa [#allocation15], 1 }
 0x4e9   :  { %4573 = vsyncpa [#allocation18], 1 }
 0x4ea   :  { %4574 = vsyncpa [#allocation21], 1 }
 0x4eb   :  { %4575 = vsyncpa [#allocation24], 1 }
 0x4ec   :  { %4576 = vsyncpa [#allocation4], 1 }

</bundles_post_ra>
